<compile_context>
chip_gen: v6e
topology: v6e:2x2x1
jax: 0.10.0
libtpu: 0.0.40
codegen_flags: <defaults>
</compile_context>

<pallas_src>
import functools

import jax
import jax.numpy as jnp
from jax import lax
from jax.experimental import pallas as pl
from jax.experimental.pallas import tpu as pltpu

_INT32_MIN = -2147483648
_INT32_MAX = 2147483647
_SIGN_FLIP = 0x7FFFFFFF  # xor-mask mapping negative-float bit patterns to monotone int32 keys


def _round_up(v, m):
    return (v + m - 1) // m * m


def _xsrelu_kernel(x_ref, o_ref, *, k_low, k_high, p, n_iters, key_shift):
    """One (TR, Lp) row-tile: exact k_low/k_high order statistics per row + ReLU blend."""
    x = x_ref[...].astype(jnp.float32)                      # (TR, Lp)

    # Monotone key: float ordering == signed-int32 ordering of `key`.
    #   non-negative floats: key = bits
    #   negative floats    : key = bits ^ 0x7FFFFFFF
    bits = pltpu.bitcast(x, jnp.int32)
    key = jnp.where(bits >= 0, bits, bits ^ jnp.int32(_SIGN_FLIP))
    if key_shift:
        # bf16-sourced f32 has zero low 16 bits (0xFFFF after the flip for negatives),
        # so an arithmetic shift preserves order and shrinks the search range to 2^16.
        key = key >> key_shift

    tgt_low = jnp.int32(k_low + 1)
    tgt_high = jnp.int32(k_high + 1)

    def count_le(mid):
        # per-row count of elements with key <= mid (exact int32 accumulation).
        return jnp.sum((key <= mid).astype(jnp.int32), axis=-1, keepdims=True)

    # Full-range bisection bounds (shrunk for the 16-bit bf16 keys).
    lo_init = _INT32_MIN >> key_shift
    hi_init = _INT32_MAX >> key_shift
    tr = x.shape[0]
    lo1 = jnp.full((tr, 1), lo_init, jnp.int32)
    hi1 = jnp.full((tr, 1), hi_init, jnp.int32)
    lo2 = lo1
    hi2 = hi1

    def body(_, carry):
        lo1, hi1, lo2, hi2 = carry
        # Overflow-free floor midpoint: floor((lo + hi) / 2) without int32 overflow.
        mid1 = (lo1 >> 1) + (hi1 >> 1) + (lo1 & hi1 & 1)
        mid2 = (lo2 >> 1) + (hi2 >> 1) + (lo2 & hi2 & 1)
        ok1 = count_le(mid1) >= tgt_low
        ok2 = count_le(mid2) >= tgt_high
        hi1 = jnp.where(ok1, mid1, hi1)
        lo1 = jnp.where(ok1, lo1, mid1 + 1)
        hi2 = jnp.where(ok2, mid2, hi2)
        lo2 = jnp.where(ok2, lo2, mid2 + 1)
        return lo1, hi1, lo2, hi2

    # n_iters halvings shrink the (2^32 or 2^16)-wide key range to a single value.
    lo1, hi1, lo2, hi2 = lax.fori_loop(
        0, n_iters, body, (lo1, hi1, lo2, hi2), unroll=True)

    # The converged key is the key of an element present in the row; recover the float
    # value by inverting the key transform (no extra (TR, Lp) passes).
    flip = jnp.int32(_SIGN_FLIP >> key_shift)

    def key_to_float(kv):
        b = jnp.where(kv >= 0, kv, kv ^ flip)
        if key_shift:
            b = b << key_shift
        return pltpu.bitcast(b, jnp.float32)

    x_low = key_to_float(lo1)    # (TR, 1)
    x_high = key_to_float(lo2)   # (TR, 1)

    r_low = jnp.maximum(x - x_low, 0.0)
    r_high = jnp.maximum(x - x_high, 0.0)
    out = r_low + (r_high - r_low) * jnp.float32(p)
    o_ref[...] = out.astype(o_ref.dtype)


def _pick_tiling(rows, l_pad, itemsize):
    """Generation-aware row tile and VMEM limit."""
    try:
        vmem_cap = int(getattr(pltpu.get_tpu_info(), "vmem_capacity_bytes"))
    except Exception:
        vmem_cap = 64 << 20                       # assume the smallest (v7x) if unknown
    if vmem_cap >= (128 << 20):                   # v5e / v6e: room for bigger tiles
        budget, vmem_limit = 20 << 20, 64 << 20
    else:                                         # v7x: 64 MiB physical VMEM
        budget, vmem_limit = 10 << 20, 48 << 20

    # Per-row working set: double-buffered in+out blocks plus f32/int32 temporaries.
    bytes_per_row = l_pad * (4 * itemsize + 20)
    row_tile = max(8, min(2048, (budget // max(bytes_per_row, 1)) // 8 * 8))

    rows8 = _round_up(rows, 8)
    tr = min(row_tile, rows8)
    if rows8 >= 16:
        # Guarantee >= 2 grid steps so both v7x TensorCores get work (and the
        # in/out DMA pipeline has something to overlap with); cheap on 1-TC chips.
        tr = min(tr, max(8, (rows8 // 2) // 8 * 8))
    return tr, vmem_limit


def xsrelu_cw_perc_param_2(x, plogit=1.5, spread=0.01, *, row_tile=None):
    """Forward pass of XSReLU_cw_perc_param_2 for NCHW (or 2-D) input."""
    orig_shape = x.shape
    if x.ndim > 2:
        rows = orig_shape[0] * orig_shape[1]
    else:
        rows = orig_shape[0]        # torch views 2-D input as (B, 1, -1); row count is B
    x2 = x.reshape(rows, -1)
    L = x2.shape[-1]

    # p and the percentile indices come from the parameter on the host (static,
    # non-differentiable ints), exactly like the torch module's `.data[0]` + int(...).
    # Clamp to [0, L-1] so extreme plogit/spread cannot index past the end.
    p = float(jax.nn.sigmoid(jnp.float32(plogit)))
    k_low = min(max(int(L * (p - spread)), 0), L - 1)
    k_high = min(max(int(L * (p + spread)), 0), L - 1)

    # bf16 fast path: effective 16-bit keys -> 16 bisection steps; otherwise 32.
    if x2.dtype == jnp.bfloat16:
        key_shift, n_iters = 16, 16
    else:
        key_shift, n_iters = 0, 32

    # Pad columns to a lane-dense multiple of 128 with +inf: +inf keys sort above every
    # finite value and k_low/k_high < L, so the order statistics are unchanged.
    Lp = _round_up(L, 128)
    if Lp != L:
        x2 = jnp.pad(x2, ((0, 0), (0, Lp - L)), constant_values=jnp.inf)

    tr_auto, vmem_limit = _pick_tiling(rows, Lp, x2.dtype.itemsize)
    if row_tile is None:
        TR = tr_auto
    else:
        TR = max(8, (min(row_tile, _round_up(rows, 8)) // 8) * 8)

    rows_pad = _round_up(rows, TR)
    if rows_pad != rows:
        x2 = jnp.pad(x2, ((0, rows_pad - rows), (0, 0)))   # padded rows computed, then dropped

    kern = functools.partial(_xsrelu_kernel, k_low=k_low, k_high=k_high, p=p,
                             n_iters=n_iters, key_shift=key_shift)
    out2 = pl.pallas_call(
        kern,
        out_shape=jax.ShapeDtypeStruct((rows_pad, Lp), x2.dtype),
        grid=(rows_pad // TR,),
        in_specs=[pl.BlockSpec((TR, Lp), lambda i: (i, 0))],
        out_specs=pl.BlockSpec((TR, Lp), lambda i: (i, 0)),
        compiler_params=pltpu.CompilerParams(
            dimension_semantics=("parallel",),      # rows are independent -> shard across TCs
            vmem_limit_bytes=vmem_limit,
        ),
        cost_estimate=pl.CostEstimate(
            flops=(6 * n_iters + 12) * int(rows_pad) * int(Lp),
            transcendentals=0,
            bytes_accessed=2 * int(rows_pad) * int(Lp) * x2.dtype.itemsize,
        ),
    )(x2)

    if rows_pad != rows or Lp != L:
        out2 = out2[:rows, :L]
    return out2.reshape(orig_shape)


def _reference(x, plogit=1.5, spread=0.01):
    """Pure-JAX reference mirroring the torch forward."""
    shape = x.shape
    if x.ndim > 2:
        xf = x.reshape(shape[0], shape[1], -1)
    else:
        xf = x.reshape(shape[0], 1, -1)
    L = xf.shape[-1]
    p = float(jax.nn.sigmoid(jnp.float32(plogit)))
    k_low = min(max(int(L * (p - spread)), 0), L - 1)
    k_high = min(max(int(L * (p + spread)), 0), L - 1)
    srt = jnp.sort(xf, axis=-1)
    x_low = srt[:, :, k_low][..., None]
    x_high = srt[:, :, k_high][..., None]
    r_low = jnp.maximum(xf - x_low, 0.0)
    r_high = jnp.maximum(xf - x_high, 0.0)
    res = r_low + (r_high - r_low) * jnp.float32(p)
    return res.reshape(shape)


if __name__ == "__main__":
    key = jax.random.PRNGKey(0)
    # NCHW input: batch=2, channels=4, spatial=16x16  ->  rows=8, L=256
    x = jax.random.normal(key, (2, 4, 16, 16), dtype=jnp.float32)

    out = jax.block_until_ready(xsrelu_cw_perc_param_2(x, plogit=1.5, spread=0.01))
    ref = _reference(x, plogit=1.5, spread=0.01)
    assert out.shape == x.shape and out.dtype == x.dtype
    assert jnp.allclose(out, ref, atol=1e-6, rtol=1e-6), float(jnp.max(jnp.abs(out - ref)))

    # bf16 fast path (16-bit keys, 16 bisection steps); compare in f32 with bf16 tolerance.
    xb = x.astype(jnp.bfloat16)
    out_b = jax.block_until_ready(xsrelu_cw_perc_param_2(xb, plogit=1.5, spread=0.01))
    ref_b = _reference(xb.astype(jnp.float32), plogit=1.5, spread=0.01)
    assert out_b.shape == xb.shape and out_b.dtype == jnp.bfloat16
    assert jnp.allclose(out_b.astype(jnp.float32), ref_b, atol=5e-2, rtol=5e-2), \
        float(jnp.max(jnp.abs(out_b.astype(jnp.float32) - ref_b)))

    print("KERNEL_OK")
</pallas_src>

<mosaic_0001>
module attributes {stable_mosaic.version = 11 : i64} {
  func.func @_xsrelu_kernel(%arg0: i32, %arg1: memref<8x256xf32, #tpu.memory_space<vmem>>, %arg2: memref<8x256xf32, #tpu.memory_space<vmem>>) attributes {dimension_semantics = [#tpu.dimension_semantics<parallel>], iteration_bounds = array<i64: 1>, scalar_prefetch = 0 : i64, scratch_operands = 0 : i64, tpu.core_type = #tpu.core_type<tc>, window_params = [{transform_indices = @transform_0, window_bounds = array<i64: 8, 256>}, {transform_indices = @transform_1, window_bounds = array<i64: 8, 256>}]} {
    %c0 = arith.constant 0 : index
    %c0_0 = arith.constant 0 : index
    %0 = vector.load %arg1[%c0, %c0_0] : memref<8x256xf32, #tpu.memory_space<vmem>>, vector<8x256xf32>
    %1 = tpu.bitcast %0 : vector<8x256xf32> -> vector<8x256xi32>
    %c0_i32 = arith.constant 0 : i32
    %2 = vector.broadcast %c0_i32 : i32 to vector<8x256xi32>
    %3 = arith.cmpi sge, %1, %2 : vector<8x256xi32>
    %c2147483647_i32 = arith.constant 2147483647 : i32
    %4 = vector.broadcast %c2147483647_i32 : i32 to vector<8x256xi32>
    %5 = arith.xori %1, %4 : vector<8x256xi32>
    %6 = arith.select %3, %1, %5 : vector<8x256xi1>, vector<8x256xi32>
    %c-2147483648_i32 = arith.constant -2147483648 : i32
    %7 = vector.broadcast %c-2147483648_i32 : i32 to vector<8x1xi32>
    %c2147483647_i32_1 = arith.constant 2147483647 : i32
    %8 = vector.broadcast %c2147483647_i32_1 : i32 to vector<8x1xi32>
    %c207_i32 = arith.constant 207 : i32
    %c212_i32 = arith.constant 212 : i32
    %c0_i32_2 = arith.constant 0 : i32
    %c1_i32 = arith.constant 1 : i32
    %9 = vector.broadcast %c1_i32 : i32 to vector<8x1xi32>
    %10 = arith.shrsi %7, %9 : vector<8x1xi32>
    %c1_i32_3 = arith.constant 1 : i32
    %11 = vector.broadcast %c1_i32_3 : i32 to vector<8x1xi32>
    %12 = arith.shrsi %8, %11 : vector<8x1xi32>
    %13 = arith.addi %10, %12 : vector<8x1xi32>
    %14 = arith.andi %7, %8 : vector<8x1xi32>
    %c1_i32_4 = arith.constant 1 : i32
    %15 = vector.broadcast %c1_i32_4 : i32 to vector<8x1xi32>
    %16 = arith.andi %14, %15 : vector<8x1xi32>
    %17 = arith.addi %13, %16 : vector<8x1xi32>
    %c1_i32_5 = arith.constant 1 : i32
    %18 = vector.broadcast %c1_i32_5 : i32 to vector<8x1xi32>
    %19 = arith.shrsi %7, %18 : vector<8x1xi32>
    %c1_i32_6 = arith.constant 1 : i32
    %20 = vector.broadcast %c1_i32_6 : i32 to vector<8x1xi32>
    %21 = arith.shrsi %8, %20 : vector<8x1xi32>
    %22 = arith.addi %19, %21 : vector<8x1xi32>
    %23 = arith.andi %7, %8 : vector<8x1xi32>
    %c1_i32_7 = arith.constant 1 : i32
    %24 = vector.broadcast %c1_i32_7 : i32 to vector<8x1xi32>
    %25 = arith.andi %23, %24 : vector<8x1xi32>
    %26 = arith.addi %22, %25 : vector<8x1xi32>
    %27 = vector.broadcast %17 : vector<8x1xi32> to vector<8x256xi32>
    %28 = arith.cmpi sle, %6, %27 : vector<8x256xi32>
    %29 = arith.extui %28 : vector<8x256xi1> to vector<8x256xi32>
    %cst = arith.constant dense<0> : vector<8xi32>
    %30 = vector.multi_reduction <add>, %29, %cst [1] : vector<8x256xi32> to vector<8xi32>
    %31 = vector.shape_cast %30 : vector<8xi32> to vector<8x1xi32>
    %32 = vector.broadcast %c207_i32 : i32 to vector<8x1xi32>
    %33 = arith.cmpi sge, %31, %32 : vector<8x1xi32>
    %34 = vector.broadcast %26 : vector<8x1xi32> to vector<8x256xi32>
    %35 = arith.cmpi sle, %6, %34 : vector<8x256xi32>
    %36 = arith.extui %35 : vector<8x256xi1> to vector<8x256xi32>
    %cst_8 = arith.constant dense<0> : vector<8xi32>
    %37 = vector.multi_reduction <add>, %36, %cst_8 [1] : vector<8x256xi32> to vector<8xi32>
    %38 = vector.shape_cast %37 : vector<8xi32> to vector<8x1xi32>
    %39 = vector.broadcast %c212_i32 : i32 to vector<8x1xi32>
    %40 = arith.cmpi sge, %38, %39 : vector<8x1xi32>
    %41 = arith.select %33, %17, %8 : vector<8x1xi1>, vector<8x1xi32>
    %c1_i32_9 = arith.constant 1 : i32
    %42 = vector.broadcast %c1_i32_9 : i32 to vector<8x1xi32>
    %43 = arith.addi %17, %42 : vector<8x1xi32>
    %44 = arith.select %33, %7, %43 : vector<8x1xi1>, vector<8x1xi32>
    %45 = arith.select %40, %26, %8 : vector<8x1xi1>, vector<8x1xi32>
    %c1_i32_10 = arith.constant 1 : i32
    %46 = vector.broadcast %c1_i32_10 : i32 to vector<8x1xi32>
    %47 = arith.addi %26, %46 : vector<8x1xi32>
    %48 = arith.select %40, %7, %47 : vector<8x1xi1>, vector<8x1xi32>
    %c1_i32_11 = arith.constant 1 : i32
    %c1_i32_12 = arith.constant 1 : i32
    %49 = vector.broadcast %c1_i32_12 : i32 to vector<8x1xi32>
    %50 = arith.shrsi %44, %49 : vector<8x1xi32>
    %c1_i32_13 = arith.constant 1 : i32
    %51 = vector.broadcast %c1_i32_13 : i32 to vector<8x1xi32>
    %52 = arith.shrsi %41, %51 : vector<8x1xi32>
    %53 = arith.addi %50, %52 : vector<8x1xi32>
    %54 = arith.andi %44, %41 : vector<8x1xi32>
    %c1_i32_14 = arith.constant 1 : i32
    %55 = vector.broadcast %c1_i32_14 : i32 to vector<8x1xi32>
    %56 = arith.andi %54, %55 : vector<8x1xi32>
    %57 = arith.addi %53, %56 : vector<8x1xi32>
    %c1_i32_15 = arith.constant 1 : i32
    %58 = vector.broadcast %c1_i32_15 : i32 to vector<8x1xi32>
    %59 = arith.shrsi %48, %58 : vector<8x1xi32>
    %c1_i32_16 = arith.constant 1 : i32
    %60 = vector.broadcast %c1_i32_16 : i32 to vector<8x1xi32>
    %61 = arith.shrsi %45, %60 : vector<8x1xi32>
    %62 = arith.addi %59, %61 : vector<8x1xi32>
    %63 = arith.andi %48, %45 : vector<8x1xi32>
    %c1_i32_17 = arith.constant 1 : i32
    %64 = vector.broadcast %c1_i32_17 : i32 to vector<8x1xi32>
    %65 = arith.andi %63, %64 : vector<8x1xi32>
    %66 = arith.addi %62, %65 : vector<8x1xi32>
    %67 = vector.broadcast %57 : vector<8x1xi32> to vector<8x256xi32>
    %68 = arith.cmpi sle, %6, %67 : vector<8x256xi32>
    %69 = arith.extui %68 : vector<8x256xi1> to vector<8x256xi32>
    %cst_18 = arith.constant dense<0> : vector<8xi32>
    %70 = vector.multi_reduction <add>, %69, %cst_18 [1] : vector<8x256xi32> to vector<8xi32>
    %71 = vector.shape_cast %70 : vector<8xi32> to vector<8x1xi32>
    %72 = vector.broadcast %c207_i32 : i32 to vector<8x1xi32>
    %73 = arith.cmpi sge, %71, %72 : vector<8x1xi32>
    %74 = vector.broadcast %66 : vector<8x1xi32> to vector<8x256xi32>
    %75 = arith.cmpi sle, %6, %74 : vector<8x256xi32>
    %76 = arith.extui %75 : vector<8x256xi1> to vector<8x256xi32>
    %cst_19 = arith.constant dense<0> : vector<8xi32>
    %77 = vector.multi_reduction <add>, %76, %cst_19 [1] : vector<8x256xi32> to vector<8xi32>
    %78 = vector.shape_cast %77 : vector<8xi32> to vector<8x1xi32>
    %79 = vector.broadcast %c212_i32 : i32 to vector<8x1xi32>
    %80 = arith.cmpi sge, %78, %79 : vector<8x1xi32>
    %81 = arith.select %73, %57, %41 : vector<8x1xi1>, vector<8x1xi32>
    %c1_i32_20 = arith.constant 1 : i32
    %82 = vector.broadcast %c1_i32_20 : i32 to vector<8x1xi32>
    %83 = arith.addi %57, %82 : vector<8x1xi32>
    %84 = arith.select %73, %44, %83 : vector<8x1xi1>, vector<8x1xi32>
    %85 = arith.select %80, %66, %45 : vector<8x1xi1>, vector<8x1xi32>
    %c1_i32_21 = arith.constant 1 : i32
    %86 = vector.broadcast %c1_i32_21 : i32 to vector<8x1xi32>
    %87 = arith.addi %66, %86 : vector<8x1xi32>
    %88 = arith.select %80, %48, %87 : vector<8x1xi1>, vector<8x1xi32>
    %c2_i32 = arith.constant 2 : i32
    %c1_i32_22 = arith.constant 1 : i32
    %89 = vector.broadcast %c1_i32_22 : i32 to vector<8x1xi32>
    %90 = arith.shrsi %84, %89 : vector<8x1xi32>
    %c1_i32_23 = arith.constant 1 : i32
    %91 = vector.broadcast %c1_i32_23 : i32 to vector<8x1xi32>
    %92 = arith.shrsi %81, %91 : vector<8x1xi32>
    %93 = arith.addi %90, %92 : vector<8x1xi32>
    %94 = arith.andi %84, %81 : vector<8x1xi32>
    %c1_i32_24 = arith.constant 1 : i32
    %95 = vector.broadcast %c1_i32_24 : i32 to vector<8x1xi32>
    %96 = arith.andi %94, %95 : vector<8x1xi32>
    %97 = arith.addi %93, %96 : vector<8x1xi32>
    %c1_i32_25 = arith.constant 1 : i32
    %98 = vector.broadcast %c1_i32_25 : i32 to vector<8x1xi32>
    %99 = arith.shrsi %88, %98 : vector<8x1xi32>
    %c1_i32_26 = arith.constant 1 : i32
    %100 = vector.broadcast %c1_i32_26 : i32 to vector<8x1xi32>
    %101 = arith.shrsi %85, %100 : vector<8x1xi32>
    %102 = arith.addi %99, %101 : vector<8x1xi32>
    %103 = arith.andi %88, %85 : vector<8x1xi32>
    %c1_i32_27 = arith.constant 1 : i32
    %104 = vector.broadcast %c1_i32_27 : i32 to vector<8x1xi32>
    %105 = arith.andi %103, %104 : vector<8x1xi32>
    %106 = arith.addi %102, %105 : vector<8x1xi32>
    %107 = vector.broadcast %97 : vector<8x1xi32> to vector<8x256xi32>
    %108 = arith.cmpi sle, %6, %107 : vector<8x256xi32>
    %109 = arith.extui %108 : vector<8x256xi1> to vector<8x256xi32>
    %cst_28 = arith.constant dense<0> : vector<8xi32>
    %110 = vector.multi_reduction <add>, %109, %cst_28 [1] : vector<8x256xi32> to vector<8xi32>
    %111 = vector.shape_cast %110 : vector<8xi32> to vector<8x1xi32>
    %112 = vector.broadcast %c207_i32 : i32 to vector<8x1xi32>
    %113 = arith.cmpi sge, %111, %112 : vector<8x1xi32>
    %114 = vector.broadcast %106 : vector<8x1xi32> to vector<8x256xi32>
    %115 = arith.cmpi sle, %6, %114 : vector<8x256xi32>
    %116 = arith.extui %115 : vector<8x256xi1> to vector<8x256xi32>
    %cst_29 = arith.constant dense<0> : vector<8xi32>
    %117 = vector.multi_reduction <add>, %116, %cst_29 [1] : vector<8x256xi32> to vector<8xi32>
    %118 = vector.shape_cast %117 : vector<8xi32> to vector<8x1xi32>
    %119 = vector.broadcast %c212_i32 : i32 to vector<8x1xi32>
    %120 = arith.cmpi sge, %118, %119 : vector<8x1xi32>
    %121 = arith.select %113, %97, %81 : vector<8x1xi1>, vector<8x1xi32>
    %c1_i32_30 = arith.constant 1 : i32
    %122 = vector.broadcast %c1_i32_30 : i32 to vector<8x1xi32>
    %123 = arith.addi %97, %122 : vector<8x1xi32>
    %124 = arith.select %113, %84, %123 : vector<8x1xi1>, vector<8x1xi32>
    %125 = arith.select %120, %106, %85 : vector<8x1xi1>, vector<8x1xi32>
    %c1_i32_31 = arith.constant 1 : i32
    %126 = vector.broadcast %c1_i32_31 : i32 to vector<8x1xi32>
    %127 = arith.addi %106, %126 : vector<8x1xi32>
    %128 = arith.select %120, %88, %127 : vector<8x1xi1>, vector<8x1xi32>
    %c3_i32 = arith.constant 3 : i32
    %c1_i32_32 = arith.constant 1 : i32
    %129 = vector.broadcast %c1_i32_32 : i32 to vector<8x1xi32>
    %130 = arith.shrsi %124, %129 : vector<8x1xi32>
    %c1_i32_33 = arith.constant 1 : i32
    %131 = vector.broadcast %c1_i32_33 : i32 to vector<8x1xi32>
    %132 = arith.shrsi %121, %131 : vector<8x1xi32>
    %133 = arith.addi %130, %132 : vector<8x1xi32>
    %134 = arith.andi %124, %121 : vector<8x1xi32>
    %c1_i32_34 = arith.constant 1 : i32
    %135 = vector.broadcast %c1_i32_34 : i32 to vector<8x1xi32>
    %136 = arith.andi %134, %135 : vector<8x1xi32>
    %137 = arith.addi %133, %136 : vector<8x1xi32>
    %c1_i32_35 = arith.constant 1 : i32
    %138 = vector.broadcast %c1_i32_35 : i32 to vector<8x1xi32>
    %139 = arith.shrsi %128, %138 : vector<8x1xi32>
    %c1_i32_36 = arith.constant 1 : i32
    %140 = vector.broadcast %c1_i32_36 : i32 to vector<8x1xi32>
    %141 = arith.shrsi %125, %140 : vector<8x1xi32>
    %142 = arith.addi %139, %141 : vector<8x1xi32>
    %143 = arith.andi %128, %125 : vector<8x1xi32>
    %c1_i32_37 = arith.constant 1 : i32
    %144 = vector.broadcast %c1_i32_37 : i32 to vector<8x1xi32>
    %145 = arith.andi %143, %144 : vector<8x1xi32>
    %146 = arith.addi %142, %145 : vector<8x1xi32>
    %147 = vector.broadcast %137 : vector<8x1xi32> to vector<8x256xi32>
    %148 = arith.cmpi sle, %6, %147 : vector<8x256xi32>
    %149 = arith.extui %148 : vector<8x256xi1> to vector<8x256xi32>
    %cst_38 = arith.constant dense<0> : vector<8xi32>
    %150 = vector.multi_reduction <add>, %149, %cst_38 [1] : vector<8x256xi32> to vector<8xi32>
    %151 = vector.shape_cast %150 : vector<8xi32> to vector<8x1xi32>
    %152 = vector.broadcast %c207_i32 : i32 to vector<8x1xi32>
    %153 = arith.cmpi sge, %151, %152 : vector<8x1xi32>
    %154 = vector.broadcast %146 : vector<8x1xi32> to vector<8x256xi32>
    %155 = arith.cmpi sle, %6, %154 : vector<8x256xi32>
    %156 = arith.extui %155 : vector<8x256xi1> to vector<8x256xi32>
    %cst_39 = arith.constant dense<0> : vector<8xi32>
    %157 = vector.multi_reduction <add>, %156, %cst_39 [1] : vector<8x256xi32> to vector<8xi32>
    %158 = vector.shape_cast %157 : vector<8xi32> to vector<8x1xi32>
    %159 = vector.broadcast %c212_i32 : i32 to vector<8x1xi32>
    %160 = arith.cmpi sge, %158, %159 : vector<8x1xi32>
    %161 = arith.select %153, %137, %121 : vector<8x1xi1>, vector<8x1xi32>
    %c1_i32_40 = arith.constant 1 : i32
    %162 = vector.broadcast %c1_i32_40 : i32 to vector<8x1xi32>
    %163 = arith.addi %137, %162 : vector<8x1xi32>
    %164 = arith.select %153, %124, %163 : vector<8x1xi1>, vector<8x1xi32>
    %165 = arith.select %160, %146, %125 : vector<8x1xi1>, vector<8x1xi32>
    %c1_i32_41 = arith.constant 1 : i32
    %166 = vector.broadcast %c1_i32_41 : i32 to vector<8x1xi32>
    %167 = arith.addi %146, %166 : vector<8x1xi32>
    %168 = arith.select %160, %128, %167 : vector<8x1xi1>, vector<8x1xi32>
    %c4_i32 = arith.constant 4 : i32
    %c1_i32_42 = arith.constant 1 : i32
    %169 = vector.broadcast %c1_i32_42 : i32 to vector<8x1xi32>
    %170 = arith.shrsi %164, %169 : vector<8x1xi32>
    %c1_i32_43 = arith.constant 1 : i32
    %171 = vector.broadcast %c1_i32_43 : i32 to vector<8x1xi32>
    %172 = arith.shrsi %161, %171 : vector<8x1xi32>
    %173 = arith.addi %170, %172 : vector<8x1xi32>
    %174 = arith.andi %164, %161 : vector<8x1xi32>
    %c1_i32_44 = arith.constant 1 : i32
    %175 = vector.broadcast %c1_i32_44 : i32 to vector<8x1xi32>
    %176 = arith.andi %174, %175 : vector<8x1xi32>
    %177 = arith.addi %173, %176 : vector<8x1xi32>
    %c1_i32_45 = arith.constant 1 : i32
    %178 = vector.broadcast %c1_i32_45 : i32 to vector<8x1xi32>
    %179 = arith.shrsi %168, %178 : vector<8x1xi32>
    %c1_i32_46 = arith.constant 1 : i32
    %180 = vector.broadcast %c1_i32_46 : i32 to vector<8x1xi32>
    %181 = arith.shrsi %165, %180 : vector<8x1xi32>
    %182 = arith.addi %179, %181 : vector<8x1xi32>
    %183 = arith.andi %168, %165 : vector<8x1xi32>
    %c1_i32_47 = arith.constant 1 : i32
    %184 = vector.broadcast %c1_i32_47 : i32 to vector<8x1xi32>
    %185 = arith.andi %183, %184 : vector<8x1xi32>
    %186 = arith.addi %182, %185 : vector<8x1xi32>
    %187 = vector.broadcast %177 : vector<8x1xi32> to vector<8x256xi32>
    %188 = arith.cmpi sle, %6, %187 : vector<8x256xi32>
    %189 = arith.extui %188 : vector<8x256xi1> to vector<8x256xi32>
    %cst_48 = arith.constant dense<0> : vector<8xi32>
    %190 = vector.multi_reduction <add>, %189, %cst_48 [1] : vector<8x256xi32> to vector<8xi32>
    %191 = vector.shape_cast %190 : vector<8xi32> to vector<8x1xi32>
    %192 = vector.broadcast %c207_i32 : i32 to vector<8x1xi32>
    %193 = arith.cmpi sge, %191, %192 : vector<8x1xi32>
    %194 = vector.broadcast %186 : vector<8x1xi32> to vector<8x256xi32>
    %195 = arith.cmpi sle, %6, %194 : vector<8x256xi32>
    %196 = arith.extui %195 : vector<8x256xi1> to vector<8x256xi32>
    %cst_49 = arith.constant dense<0> : vector<8xi32>
    %197 = vector.multi_reduction <add>, %196, %cst_49 [1] : vector<8x256xi32> to vector<8xi32>
    %198 = vector.shape_cast %197 : vector<8xi32> to vector<8x1xi32>
    %199 = vector.broadcast %c212_i32 : i32 to vector<8x1xi32>
    %200 = arith.cmpi sge, %198, %199 : vector<8x1xi32>
    %201 = arith.select %193, %177, %161 : vector<8x1xi1>, vector<8x1xi32>
    %c1_i32_50 = arith.constant 1 : i32
    %202 = vector.broadcast %c1_i32_50 : i32 to vector<8x1xi32>
    %203 = arith.addi %177, %202 : vector<8x1xi32>
    %204 = arith.select %193, %164, %203 : vector<8x1xi1>, vector<8x1xi32>
    %205 = arith.select %200, %186, %165 : vector<8x1xi1>, vector<8x1xi32>
    %c1_i32_51 = arith.constant 1 : i32
    %206 = vector.broadcast %c1_i32_51 : i32 to vector<8x1xi32>
    %207 = arith.addi %186, %206 : vector<8x1xi32>
    %208 = arith.select %200, %168, %207 : vector<8x1xi1>, vector<8x1xi32>
    %c5_i32 = arith.constant 5 : i32
    %c1_i32_52 = arith.constant 1 : i32
    %209 = vector.broadcast %c1_i32_52 : i32 to vector<8x1xi32>
    %210 = arith.shrsi %204, %209 : vector<8x1xi32>
    %c1_i32_53 = arith.constant 1 : i32
    %211 = vector.broadcast %c1_i32_53 : i32 to vector<8x1xi32>
    %212 = arith.shrsi %201, %211 : vector<8x1xi32>
    %213 = arith.addi %210, %212 : vector<8x1xi32>
    %214 = arith.andi %204, %201 : vector<8x1xi32>
    %c1_i32_54 = arith.constant 1 : i32
    %215 = vector.broadcast %c1_i32_54 : i32 to vector<8x1xi32>
    %216 = arith.andi %214, %215 : vector<8x1xi32>
    %217 = arith.addi %213, %216 : vector<8x1xi32>
    %c1_i32_55 = arith.constant 1 : i32
    %218 = vector.broadcast %c1_i32_55 : i32 to vector<8x1xi32>
    %219 = arith.shrsi %208, %218 : vector<8x1xi32>
    %c1_i32_56 = arith.constant 1 : i32
    %220 = vector.broadcast %c1_i32_56 : i32 to vector<8x1xi32>
    %221 = arith.shrsi %205, %220 : vector<8x1xi32>
    %222 = arith.addi %219, %221 : vector<8x1xi32>
    %223 = arith.andi %208, %205 : vector<8x1xi32>
    %c1_i32_57 = arith.constant 1 : i32
    %224 = vector.broadcast %c1_i32_57 : i32 to vector<8x1xi32>
    %225 = arith.andi %223, %224 : vector<8x1xi32>
    %226 = arith.addi %222, %225 : vector<8x1xi32>
    %227 = vector.broadcast %217 : vector<8x1xi32> to vector<8x256xi32>
    %228 = arith.cmpi sle, %6, %227 : vector<8x256xi32>
    %229 = arith.extui %228 : vector<8x256xi1> to vector<8x256xi32>
    %cst_58 = arith.constant dense<0> : vector<8xi32>
    %230 = vector.multi_reduction <add>, %229, %cst_58 [1] : vector<8x256xi32> to vector<8xi32>
    %231 = vector.shape_cast %230 : vector<8xi32> to vector<8x1xi32>
    %232 = vector.broadcast %c207_i32 : i32 to vector<8x1xi32>
    %233 = arith.cmpi sge, %231, %232 : vector<8x1xi32>
    %234 = vector.broadcast %226 : vector<8x1xi32> to vector<8x256xi32>
    %235 = arith.cmpi sle, %6, %234 : vector<8x256xi32>
    %236 = arith.extui %235 : vector<8x256xi1> to vector<8x256xi32>
    %cst_59 = arith.constant dense<0> : vector<8xi32>
    %237 = vector.multi_reduction <add>, %236, %cst_59 [1] : vector<8x256xi32> to vector<8xi32>
    %238 = vector.shape_cast %237 : vector<8xi32> to vector<8x1xi32>
    %239 = vector.broadcast %c212_i32 : i32 to vector<8x1xi32>
    %240 = arith.cmpi sge, %238, %239 : vector<8x1xi32>
    %241 = arith.select %233, %217, %201 : vector<8x1xi1>, vector<8x1xi32>
    %c1_i32_60 = arith.constant 1 : i32
    %242 = vector.broadcast %c1_i32_60 : i32 to vector<8x1xi32>
    %243 = arith.addi %217, %242 : vector<8x1xi32>
    %244 = arith.select %233, %204, %243 : vector<8x1xi1>, vector<8x1xi32>
    %245 = arith.select %240, %226, %205 : vector<8x1xi1>, vector<8x1xi32>
    %c1_i32_61 = arith.constant 1 : i32
    %246 = vector.broadcast %c1_i32_61 : i32 to vector<8x1xi32>
    %247 = arith.addi %226, %246 : vector<8x1xi32>
    %248 = arith.select %240, %208, %247 : vector<8x1xi1>, vector<8x1xi32>
    %c6_i32 = arith.constant 6 : i32
    %c1_i32_62 = arith.constant 1 : i32
    %249 = vector.broadcast %c1_i32_62 : i32 to vector<8x1xi32>
    %250 = arith.shrsi %244, %249 : vector<8x1xi32>
    %c1_i32_63 = arith.constant 1 : i32
    %251 = vector.broadcast %c1_i32_63 : i32 to vector<8x1xi32>
    %252 = arith.shrsi %241, %251 : vector<8x1xi32>
    %253 = arith.addi %250, %252 : vector<8x1xi32>
    %254 = arith.andi %244, %241 : vector<8x1xi32>
    %c1_i32_64 = arith.constant 1 : i32
    %255 = vector.broadcast %c1_i32_64 : i32 to vector<8x1xi32>
    %256 = arith.andi %254, %255 : vector<8x1xi32>
    %257 = arith.addi %253, %256 : vector<8x1xi32>
    %c1_i32_65 = arith.constant 1 : i32
    %258 = vector.broadcast %c1_i32_65 : i32 to vector<8x1xi32>
    %259 = arith.shrsi %248, %258 : vector<8x1xi32>
    %c1_i32_66 = arith.constant 1 : i32
    %260 = vector.broadcast %c1_i32_66 : i32 to vector<8x1xi32>
    %261 = arith.shrsi %245, %260 : vector<8x1xi32>
    %262 = arith.addi %259, %261 : vector<8x1xi32>
    %263 = arith.andi %248, %245 : vector<8x1xi32>
    %c1_i32_67 = arith.constant 1 : i32
    %264 = vector.broadcast %c1_i32_67 : i32 to vector<8x1xi32>
    %265 = arith.andi %263, %264 : vector<8x1xi32>
    %266 = arith.addi %262, %265 : vector<8x1xi32>
    %267 = vector.broadcast %257 : vector<8x1xi32> to vector<8x256xi32>
    %268 = arith.cmpi sle, %6, %267 : vector<8x256xi32>
    %269 = arith.extui %268 : vector<8x256xi1> to vector<8x256xi32>
    %cst_68 = arith.constant dense<0> : vector<8xi32>
    %270 = vector.multi_reduction <add>, %269, %cst_68 [1] : vector<8x256xi32> to vector<8xi32>
    %271 = vector.shape_cast %270 : vector<8xi32> to vector<8x1xi32>
    %272 = vector.broadcast %c207_i32 : i32 to vector<8x1xi32>
    %273 = arith.cmpi sge, %271, %272 : vector<8x1xi32>
    %274 = vector.broadcast %266 : vector<8x1xi32> to vector<8x256xi32>
    %275 = arith.cmpi sle, %6, %274 : vector<8x256xi32>
    %276 = arith.extui %275 : vector<8x256xi1> to vector<8x256xi32>
    %cst_69 = arith.constant dense<0> : vector<8xi32>
    %277 = vector.multi_reduction <add>, %276, %cst_69 [1] : vector<8x256xi32> to vector<8xi32>
    %278 = vector.shape_cast %277 : vector<8xi32> to vector<8x1xi32>
    %279 = vector.broadcast %c212_i32 : i32 to vector<8x1xi32>
    %280 = arith.cmpi sge, %278, %279 : vector<8x1xi32>
    %281 = arith.select %273, %257, %241 : vector<8x1xi1>, vector<8x1xi32>
    %c1_i32_70 = arith.constant 1 : i32
    %282 = vector.broadcast %c1_i32_70 : i32 to vector<8x1xi32>
    %283 = arith.addi %257, %282 : vector<8x1xi32>
    %284 = arith.select %273, %244, %283 : vector<8x1xi1>, vector<8x1xi32>
    %285 = arith.select %280, %266, %245 : vector<8x1xi1>, vector<8x1xi32>
    %c1_i32_71 = arith.constant 1 : i32
    %286 = vector.broadcast %c1_i32_71 : i32 to vector<8x1xi32>
    %287 = arith.addi %266, %286 : vector<8x1xi32>
    %288 = arith.select %280, %248, %287 : vector<8x1xi1>, vector<8x1xi32>
    %c7_i32 = arith.constant 7 : i32
    %c1_i32_72 = arith.constant 1 : i32
    %289 = vector.broadcast %c1_i32_72 : i32 to vector<8x1xi32>
    %290 = arith.shrsi %284, %289 : vector<8x1xi32>
    %c1_i32_73 = arith.constant 1 : i32
    %291 = vector.broadcast %c1_i32_73 : i32 to vector<8x1xi32>
    %292 = arith.shrsi %281, %291 : vector<8x1xi32>
    %293 = arith.addi %290, %292 : vector<8x1xi32>
    %294 = arith.andi %284, %281 : vector<8x1xi32>
    %c1_i32_74 = arith.constant 1 : i32
    %295 = vector.broadcast %c1_i32_74 : i32 to vector<8x1xi32>
    %296 = arith.andi %294, %295 : vector<8x1xi32>
    %297 = arith.addi %293, %296 : vector<8x1xi32>
    %c1_i32_75 = arith.constant 1 : i32
    %298 = vector.broadcast %c1_i32_75 : i32 to vector<8x1xi32>
    %299 = arith.shrsi %288, %298 : vector<8x1xi32>
    %c1_i32_76 = arith.constant 1 : i32
    %300 = vector.broadcast %c1_i32_76 : i32 to vector<8x1xi32>
    %301 = arith.shrsi %285, %300 : vector<8x1xi32>
    %302 = arith.addi %299, %301 : vector<8x1xi32>
    %303 = arith.andi %288, %285 : vector<8x1xi32>
    %c1_i32_77 = arith.constant 1 : i32
    %304 = vector.broadcast %c1_i32_77 : i32 to vector<8x1xi32>
    %305 = arith.andi %303, %304 : vector<8x1xi32>
    %306 = arith.addi %302, %305 : vector<8x1xi32>
    %307 = vector.broadcast %297 : vector<8x1xi32> to vector<8x256xi32>
    %308 = arith.cmpi sle, %6, %307 : vector<8x256xi32>
    %309 = arith.extui %308 : vector<8x256xi1> to vector<8x256xi32>
    %cst_78 = arith.constant dense<0> : vector<8xi32>
    %310 = vector.multi_reduction <add>, %309, %cst_78 [1] : vector<8x256xi32> to vector<8xi32>
    %311 = vector.shape_cast %310 : vector<8xi32> to vector<8x1xi32>
    %312 = vector.broadcast %c207_i32 : i32 to vector<8x1xi32>
    %313 = arith.cmpi sge, %311, %312 : vector<8x1xi32>
    %314 = vector.broadcast %306 : vector<8x1xi32> to vector<8x256xi32>
    %315 = arith.cmpi sle, %6, %314 : vector<8x256xi32>
    %316 = arith.extui %315 : vector<8x256xi1> to vector<8x256xi32>
    %cst_79 = arith.constant dense<0> : vector<8xi32>
    %317 = vector.multi_reduction <add>, %316, %cst_79 [1] : vector<8x256xi32> to vector<8xi32>
    %318 = vector.shape_cast %317 : vector<8xi32> to vector<8x1xi32>
    %319 = vector.broadcast %c212_i32 : i32 to vector<8x1xi32>
    %320 = arith.cmpi sge, %318, %319 : vector<8x1xi32>
    %321 = arith.select %313, %297, %281 : vector<8x1xi1>, vector<8x1xi32>
    %c1_i32_80 = arith.constant 1 : i32
    %322 = vector.broadcast %c1_i32_80 : i32 to vector<8x1xi32>
    %323 = arith.addi %297, %322 : vector<8x1xi32>
    %324 = arith.select %313, %284, %323 : vector<8x1xi1>, vector<8x1xi32>
    %325 = arith.select %320, %306, %285 : vector<8x1xi1>, vector<8x1xi32>
    %c1_i32_81 = arith.constant 1 : i32
    %326 = vector.broadcast %c1_i32_81 : i32 to vector<8x1xi32>
    %327 = arith.addi %306, %326 : vector<8x1xi32>
    %328 = arith.select %320, %288, %327 : vector<8x1xi1>, vector<8x1xi32>
    %c8_i32 = arith.constant 8 : i32
    %c1_i32_82 = arith.constant 1 : i32
    %329 = vector.broadcast %c1_i32_82 : i32 to vector<8x1xi32>
    %330 = arith.shrsi %324, %329 : vector<8x1xi32>
    %c1_i32_83 = arith.constant 1 : i32
    %331 = vector.broadcast %c1_i32_83 : i32 to vector<8x1xi32>
    %332 = arith.shrsi %321, %331 : vector<8x1xi32>
    %333 = arith.addi %330, %332 : vector<8x1xi32>
    %334 = arith.andi %324, %321 : vector<8x1xi32>
    %c1_i32_84 = arith.constant 1 : i32
    %335 = vector.broadcast %c1_i32_84 : i32 to vector<8x1xi32>
    %336 = arith.andi %334, %335 : vector<8x1xi32>
    %337 = arith.addi %333, %336 : vector<8x1xi32>
    %c1_i32_85 = arith.constant 1 : i32
    %338 = vector.broadcast %c1_i32_85 : i32 to vector<8x1xi32>
    %339 = arith.shrsi %328, %338 : vector<8x1xi32>
    %c1_i32_86 = arith.constant 1 : i32
    %340 = vector.broadcast %c1_i32_86 : i32 to vector<8x1xi32>
    %341 = arith.shrsi %325, %340 : vector<8x1xi32>
    %342 = arith.addi %339, %341 : vector<8x1xi32>
    %343 = arith.andi %328, %325 : vector<8x1xi32>
    %c1_i32_87 = arith.constant 1 : i32
    %344 = vector.broadcast %c1_i32_87 : i32 to vector<8x1xi32>
    %345 = arith.andi %343, %344 : vector<8x1xi32>
    %346 = arith.addi %342, %345 : vector<8x1xi32>
    %347 = vector.broadcast %337 : vector<8x1xi32> to vector<8x256xi32>
    %348 = arith.cmpi sle, %6, %347 : vector<8x256xi32>
    %349 = arith.extui %348 : vector<8x256xi1> to vector<8x256xi32>
    %cst_88 = arith.constant dense<0> : vector<8xi32>
    %350 = vector.multi_reduction <add>, %349, %cst_88 [1] : vector<8x256xi32> to vector<8xi32>
    %351 = vector.shape_cast %350 : vector<8xi32> to vector<8x1xi32>
    %352 = vector.broadcast %c207_i32 : i32 to vector<8x1xi32>
    %353 = arith.cmpi sge, %351, %352 : vector<8x1xi32>
    %354 = vector.broadcast %346 : vector<8x1xi32> to vector<8x256xi32>
    %355 = arith.cmpi sle, %6, %354 : vector<8x256xi32>
    %356 = arith.extui %355 : vector<8x256xi1> to vector<8x256xi32>
    %cst_89 = arith.constant dense<0> : vector<8xi32>
    %357 = vector.multi_reduction <add>, %356, %cst_89 [1] : vector<8x256xi32> to vector<8xi32>
    %358 = vector.shape_cast %357 : vector<8xi32> to vector<8x1xi32>
    %359 = vector.broadcast %c212_i32 : i32 to vector<8x1xi32>
    %360 = arith.cmpi sge, %358, %359 : vector<8x1xi32>
    %361 = arith.select %353, %337, %321 : vector<8x1xi1>, vector<8x1xi32>
    %c1_i32_90 = arith.constant 1 : i32
    %362 = vector.broadcast %c1_i32_90 : i32 to vector<8x1xi32>
    %363 = arith.addi %337, %362 : vector<8x1xi32>
    %364 = arith.select %353, %324, %363 : vector<8x1xi1>, vector<8x1xi32>
    %365 = arith.select %360, %346, %325 : vector<8x1xi1>, vector<8x1xi32>
    %c1_i32_91 = arith.constant 1 : i32
    %366 = vector.broadcast %c1_i32_91 : i32 to vector<8x1xi32>
    %367 = arith.addi %346, %366 : vector<8x1xi32>
    %368 = arith.select %360, %328, %367 : vector<8x1xi1>, vector<8x1xi32>
    %c9_i32 = arith.constant 9 : i32
    %c1_i32_92 = arith.constant 1 : i32
    %369 = vector.broadcast %c1_i32_92 : i32 to vector<8x1xi32>
    %370 = arith.shrsi %364, %369 : vector<8x1xi32>
    %c1_i32_93 = arith.constant 1 : i32
    %371 = vector.broadcast %c1_i32_93 : i32 to vector<8x1xi32>
    %372 = arith.shrsi %361, %371 : vector<8x1xi32>
    %373 = arith.addi %370, %372 : vector<8x1xi32>
    %374 = arith.andi %364, %361 : vector<8x1xi32>
    %c1_i32_94 = arith.constant 1 : i32
    %375 = vector.broadcast %c1_i32_94 : i32 to vector<8x1xi32>
    %376 = arith.andi %374, %375 : vector<8x1xi32>
    %377 = arith.addi %373, %376 : vector<8x1xi32>
    %c1_i32_95 = arith.constant 1 : i32
    %378 = vector.broadcast %c1_i32_95 : i32 to vector<8x1xi32>
    %379 = arith.shrsi %368, %378 : vector<8x1xi32>
    %c1_i32_96 = arith.constant 1 : i32
    %380 = vector.broadcast %c1_i32_96 : i32 to vector<8x1xi32>
    %381 = arith.shrsi %365, %380 : vector<8x1xi32>
    %382 = arith.addi %379, %381 : vector<8x1xi32>
    %383 = arith.andi %368, %365 : vector<8x1xi32>
    %c1_i32_97 = arith.constant 1 : i32
    %384 = vector.broadcast %c1_i32_97 : i32 to vector<8x1xi32>
    %385 = arith.andi %383, %384 : vector<8x1xi32>
    %386 = arith.addi %382, %385 : vector<8x1xi32>
    %387 = vector.broadcast %377 : vector<8x1xi32> to vector<8x256xi32>
    %388 = arith.cmpi sle, %6, %387 : vector<8x256xi32>
    %389 = arith.extui %388 : vector<8x256xi1> to vector<8x256xi32>
    %cst_98 = arith.constant dense<0> : vector<8xi32>
    %390 = vector.multi_reduction <add>, %389, %cst_98 [1] : vector<8x256xi32> to vector<8xi32>
    %391 = vector.shape_cast %390 : vector<8xi32> to vector<8x1xi32>
    %392 = vector.broadcast %c207_i32 : i32 to vector<8x1xi32>
    %393 = arith.cmpi sge, %391, %392 : vector<8x1xi32>
    %394 = vector.broadcast %386 : vector<8x1xi32> to vector<8x256xi32>
    %395 = arith.cmpi sle, %6, %394 : vector<8x256xi32>
    %396 = arith.extui %395 : vector<8x256xi1> to vector<8x256xi32>
    %cst_99 = arith.constant dense<0> : vector<8xi32>
    %397 = vector.multi_reduction <add>, %396, %cst_99 [1] : vector<8x256xi32> to vector<8xi32>
    %398 = vector.shape_cast %397 : vector<8xi32> to vector<8x1xi32>
    %399 = vector.broadcast %c212_i32 : i32 to vector<8x1xi32>
    %400 = arith.cmpi sge, %398, %399 : vector<8x1xi32>
    %401 = arith.select %393, %377, %361 : vector<8x1xi1>, vector<8x1xi32>
    %c1_i32_100 = arith.constant 1 : i32
    %402 = vector.broadcast %c1_i32_100 : i32 to vector<8x1xi32>
    %403 = arith.addi %377, %402 : vector<8x1xi32>
    %404 = arith.select %393, %364, %403 : vector<8x1xi1>, vector<8x1xi32>
    %405 = arith.select %400, %386, %365 : vector<8x1xi1>, vector<8x1xi32>
    %c1_i32_101 = arith.constant 1 : i32
    %406 = vector.broadcast %c1_i32_101 : i32 to vector<8x1xi32>
    %407 = arith.addi %386, %406 : vector<8x1xi32>
    %408 = arith.select %400, %368, %407 : vector<8x1xi1>, vector<8x1xi32>
    %c10_i32 = arith.constant 10 : i32
    %c1_i32_102 = arith.constant 1 : i32
    %409 = vector.broadcast %c1_i32_102 : i32 to vector<8x1xi32>
    %410 = arith.shrsi %404, %409 : vector<8x1xi32>
    %c1_i32_103 = arith.constant 1 : i32
    %411 = vector.broadcast %c1_i32_103 : i32 to vector<8x1xi32>
    %412 = arith.shrsi %401, %411 : vector<8x1xi32>
    %413 = arith.addi %410, %412 : vector<8x1xi32>
    %414 = arith.andi %404, %401 : vector<8x1xi32>
    %c1_i32_104 = arith.constant 1 : i32
    %415 = vector.broadcast %c1_i32_104 : i32 to vector<8x1xi32>
    %416 = arith.andi %414, %415 : vector<8x1xi32>
    %417 = arith.addi %413, %416 : vector<8x1xi32>
    %c1_i32_105 = arith.constant 1 : i32
    %418 = vector.broadcast %c1_i32_105 : i32 to vector<8x1xi32>
    %419 = arith.shrsi %408, %418 : vector<8x1xi32>
    %c1_i32_106 = arith.constant 1 : i32
    %420 = vector.broadcast %c1_i32_106 : i32 to vector<8x1xi32>
    %421 = arith.shrsi %405, %420 : vector<8x1xi32>
    %422 = arith.addi %419, %421 : vector<8x1xi32>
    %423 = arith.andi %408, %405 : vector<8x1xi32>
    %c1_i32_107 = arith.constant 1 : i32
    %424 = vector.broadcast %c1_i32_107 : i32 to vector<8x1xi32>
    %425 = arith.andi %423, %424 : vector<8x1xi32>
    %426 = arith.addi %422, %425 : vector<8x1xi32>
    %427 = vector.broadcast %417 : vector<8x1xi32> to vector<8x256xi32>
    %428 = arith.cmpi sle, %6, %427 : vector<8x256xi32>
    %429 = arith.extui %428 : vector<8x256xi1> to vector<8x256xi32>
    %cst_108 = arith.constant dense<0> : vector<8xi32>
    %430 = vector.multi_reduction <add>, %429, %cst_108 [1] : vector<8x256xi32> to vector<8xi32>
    %431 = vector.shape_cast %430 : vector<8xi32> to vector<8x1xi32>
    %432 = vector.broadcast %c207_i32 : i32 to vector<8x1xi32>
    %433 = arith.cmpi sge, %431, %432 : vector<8x1xi32>
    %434 = vector.broadcast %426 : vector<8x1xi32> to vector<8x256xi32>
    %435 = arith.cmpi sle, %6, %434 : vector<8x256xi32>
    %436 = arith.extui %435 : vector<8x256xi1> to vector<8x256xi32>
    %cst_109 = arith.constant dense<0> : vector<8xi32>
    %437 = vector.multi_reduction <add>, %436, %cst_109 [1] : vector<8x256xi32> to vector<8xi32>
    %438 = vector.shape_cast %437 : vector<8xi32> to vector<8x1xi32>
    %439 = vector.broadcast %c212_i32 : i32 to vector<8x1xi32>
    %440 = arith.cmpi sge, %438, %439 : vector<8x1xi32>
    %441 = arith.select %433, %417, %401 : vector<8x1xi1>, vector<8x1xi32>
    %c1_i32_110 = arith.constant 1 : i32
    %442 = vector.broadcast %c1_i32_110 : i32 to vector<8x1xi32>
    %443 = arith.addi %417, %442 : vector<8x1xi32>
    %444 = arith.select %433, %404, %443 : vector<8x1xi1>, vector<8x1xi32>
    %445 = arith.select %440, %426, %405 : vector<8x1xi1>, vector<8x1xi32>
    %c1_i32_111 = arith.constant 1 : i32
    %446 = vector.broadcast %c1_i32_111 : i32 to vector<8x1xi32>
    %447 = arith.addi %426, %446 : vector<8x1xi32>
    %448 = arith.select %440, %408, %447 : vector<8x1xi1>, vector<8x1xi32>
    %c11_i32 = arith.constant 11 : i32
    %c1_i32_112 = arith.constant 1 : i32
    %449 = vector.broadcast %c1_i32_112 : i32 to vector<8x1xi32>
    %450 = arith.shrsi %444, %449 : vector<8x1xi32>
    %c1_i32_113 = arith.constant 1 : i32
    %451 = vector.broadcast %c1_i32_113 : i32 to vector<8x1xi32>
    %452 = arith.shrsi %441, %451 : vector<8x1xi32>
    %453 = arith.addi %450, %452 : vector<8x1xi32>
    %454 = arith.andi %444, %441 : vector<8x1xi32>
    %c1_i32_114 = arith.constant 1 : i32
    %455 = vector.broadcast %c1_i32_114 : i32 to vector<8x1xi32>
    %456 = arith.andi %454, %455 : vector<8x1xi32>
    %457 = arith.addi %453, %456 : vector<8x1xi32>
    %c1_i32_115 = arith.constant 1 : i32
    %458 = vector.broadcast %c1_i32_115 : i32 to vector<8x1xi32>
    %459 = arith.shrsi %448, %458 : vector<8x1xi32>
    %c1_i32_116 = arith.constant 1 : i32
    %460 = vector.broadcast %c1_i32_116 : i32 to vector<8x1xi32>
    %461 = arith.shrsi %445, %460 : vector<8x1xi32>
    %462 = arith.addi %459, %461 : vector<8x1xi32>
    %463 = arith.andi %448, %445 : vector<8x1xi32>
    %c1_i32_117 = arith.constant 1 : i32
    %464 = vector.broadcast %c1_i32_117 : i32 to vector<8x1xi32>
    %465 = arith.andi %463, %464 : vector<8x1xi32>
    %466 = arith.addi %462, %465 : vector<8x1xi32>
    %467 = vector.broadcast %457 : vector<8x1xi32> to vector<8x256xi32>
    %468 = arith.cmpi sle, %6, %467 : vector<8x256xi32>
    %469 = arith.extui %468 : vector<8x256xi1> to vector<8x256xi32>
    %cst_118 = arith.constant dense<0> : vector<8xi32>
    %470 = vector.multi_reduction <add>, %469, %cst_118 [1] : vector<8x256xi32> to vector<8xi32>
    %471 = vector.shape_cast %470 : vector<8xi32> to vector<8x1xi32>
    %472 = vector.broadcast %c207_i32 : i32 to vector<8x1xi32>
    %473 = arith.cmpi sge, %471, %472 : vector<8x1xi32>
    %474 = vector.broadcast %466 : vector<8x1xi32> to vector<8x256xi32>
    %475 = arith.cmpi sle, %6, %474 : vector<8x256xi32>
    %476 = arith.extui %475 : vector<8x256xi1> to vector<8x256xi32>
    %cst_119 = arith.constant dense<0> : vector<8xi32>
    %477 = vector.multi_reduction <add>, %476, %cst_119 [1] : vector<8x256xi32> to vector<8xi32>
    %478 = vector.shape_cast %477 : vector<8xi32> to vector<8x1xi32>
    %479 = vector.broadcast %c212_i32 : i32 to vector<8x1xi32>
    %480 = arith.cmpi sge, %478, %479 : vector<8x1xi32>
    %481 = arith.select %473, %457, %441 : vector<8x1xi1>, vector<8x1xi32>
    %c1_i32_120 = arith.constant 1 : i32
    %482 = vector.broadcast %c1_i32_120 : i32 to vector<8x1xi32>
    %483 = arith.addi %457, %482 : vector<8x1xi32>
    %484 = arith.select %473, %444, %483 : vector<8x1xi1>, vector<8x1xi32>
    %485 = arith.select %480, %466, %445 : vector<8x1xi1>, vector<8x1xi32>
    %c1_i32_121 = arith.constant 1 : i32
    %486 = vector.broadcast %c1_i32_121 : i32 to vector<8x1xi32>
    %487 = arith.addi %466, %486 : vector<8x1xi32>
    %488 = arith.select %480, %448, %487 : vector<8x1xi1>, vector<8x1xi32>
    %c12_i32 = arith.constant 12 : i32
    %c1_i32_122 = arith.constant 1 : i32
    %489 = vector.broadcast %c1_i32_122 : i32 to vector<8x1xi32>
    %490 = arith.shrsi %484, %489 : vector<8x1xi32>
    %c1_i32_123 = arith.constant 1 : i32
    %491 = vector.broadcast %c1_i32_123 : i32 to vector<8x1xi32>
    %492 = arith.shrsi %481, %491 : vector<8x1xi32>
    %493 = arith.addi %490, %492 : vector<8x1xi32>
    %494 = arith.andi %484, %481 : vector<8x1xi32>
    %c1_i32_124 = arith.constant 1 : i32
    %495 = vector.broadcast %c1_i32_124 : i32 to vector<8x1xi32>
    %496 = arith.andi %494, %495 : vector<8x1xi32>
    %497 = arith.addi %493, %496 : vector<8x1xi32>
    %c1_i32_125 = arith.constant 1 : i32
    %498 = vector.broadcast %c1_i32_125 : i32 to vector<8x1xi32>
    %499 = arith.shrsi %488, %498 : vector<8x1xi32>
    %c1_i32_126 = arith.constant 1 : i32
    %500 = vector.broadcast %c1_i32_126 : i32 to vector<8x1xi32>
    %501 = arith.shrsi %485, %500 : vector<8x1xi32>
    %502 = arith.addi %499, %501 : vector<8x1xi32>
    %503 = arith.andi %488, %485 : vector<8x1xi32>
    %c1_i32_127 = arith.constant 1 : i32
    %504 = vector.broadcast %c1_i32_127 : i32 to vector<8x1xi32>
    %505 = arith.andi %503, %504 : vector<8x1xi32>
    %506 = arith.addi %502, %505 : vector<8x1xi32>
    %507 = vector.broadcast %497 : vector<8x1xi32> to vector<8x256xi32>
    %508 = arith.cmpi sle, %6, %507 : vector<8x256xi32>
    %509 = arith.extui %508 : vector<8x256xi1> to vector<8x256xi32>
    %cst_128 = arith.constant dense<0> : vector<8xi32>
    %510 = vector.multi_reduction <add>, %509, %cst_128 [1] : vector<8x256xi32> to vector<8xi32>
    %511 = vector.shape_cast %510 : vector<8xi32> to vector<8x1xi32>
    %512 = vector.broadcast %c207_i32 : i32 to vector<8x1xi32>
    %513 = arith.cmpi sge, %511, %512 : vector<8x1xi32>
    %514 = vector.broadcast %506 : vector<8x1xi32> to vector<8x256xi32>
    %515 = arith.cmpi sle, %6, %514 : vector<8x256xi32>
    %516 = arith.extui %515 : vector<8x256xi1> to vector<8x256xi32>
    %cst_129 = arith.constant dense<0> : vector<8xi32>
    %517 = vector.multi_reduction <add>, %516, %cst_129 [1] : vector<8x256xi32> to vector<8xi32>
    %518 = vector.shape_cast %517 : vector<8xi32> to vector<8x1xi32>
    %519 = vector.broadcast %c212_i32 : i32 to vector<8x1xi32>
    %520 = arith.cmpi sge, %518, %519 : vector<8x1xi32>
    %521 = arith.select %513, %497, %481 : vector<8x1xi1>, vector<8x1xi32>
    %c1_i32_130 = arith.constant 1 : i32
    %522 = vector.broadcast %c1_i32_130 : i32 to vector<8x1xi32>
    %523 = arith.addi %497, %522 : vector<8x1xi32>
    %524 = arith.select %513, %484, %523 : vector<8x1xi1>, vector<8x1xi32>
    %525 = arith.select %520, %506, %485 : vector<8x1xi1>, vector<8x1xi32>
    %c1_i32_131 = arith.constant 1 : i32
    %526 = vector.broadcast %c1_i32_131 : i32 to vector<8x1xi32>
    %527 = arith.addi %506, %526 : vector<8x1xi32>
    %528 = arith.select %520, %488, %527 : vector<8x1xi1>, vector<8x1xi32>
    %c13_i32 = arith.constant 13 : i32
    %c1_i32_132 = arith.constant 1 : i32
    %529 = vector.broadcast %c1_i32_132 : i32 to vector<8x1xi32>
    %530 = arith.shrsi %524, %529 : vector<8x1xi32>
    %c1_i32_133 = arith.constant 1 : i32
    %531 = vector.broadcast %c1_i32_133 : i32 to vector<8x1xi32>
    %532 = arith.shrsi %521, %531 : vector<8x1xi32>
    %533 = arith.addi %530, %532 : vector<8x1xi32>
    %534 = arith.andi %524, %521 : vector<8x1xi32>
    %c1_i32_134 = arith.constant 1 : i32
    %535 = vector.broadcast %c1_i32_134 : i32 to vector<8x1xi32>
    %536 = arith.andi %534, %535 : vector<8x1xi32>
    %537 = arith.addi %533, %536 : vector<8x1xi32>
    %c1_i32_135 = arith.constant 1 : i32
    %538 = vector.broadcast %c1_i32_135 : i32 to vector<8x1xi32>
    %539 = arith.shrsi %528, %538 : vector<8x1xi32>
    %c1_i32_136 = arith.constant 1 : i32
    %540 = vector.broadcast %c1_i32_136 : i32 to vector<8x1xi32>
    %541 = arith.shrsi %525, %540 : vector<8x1xi32>
    %542 = arith.addi %539, %541 : vector<8x1xi32>
    %543 = arith.andi %528, %525 : vector<8x1xi32>
    %c1_i32_137 = arith.constant 1 : i32
    %544 = vector.broadcast %c1_i32_137 : i32 to vector<8x1xi32>
    %545 = arith.andi %543, %544 : vector<8x1xi32>
    %546 = arith.addi %542, %545 : vector<8x1xi32>
    %547 = vector.broadcast %537 : vector<8x1xi32> to vector<8x256xi32>
    %548 = arith.cmpi sle, %6, %547 : vector<8x256xi32>
    %549 = arith.extui %548 : vector<8x256xi1> to vector<8x256xi32>
    %cst_138 = arith.constant dense<0> : vector<8xi32>
    %550 = vector.multi_reduction <add>, %549, %cst_138 [1] : vector<8x256xi32> to vector<8xi32>
    %551 = vector.shape_cast %550 : vector<8xi32> to vector<8x1xi32>
    %552 = vector.broadcast %c207_i32 : i32 to vector<8x1xi32>
    %553 = arith.cmpi sge, %551, %552 : vector<8x1xi32>
    %554 = vector.broadcast %546 : vector<8x1xi32> to vector<8x256xi32>
    %555 = arith.cmpi sle, %6, %554 : vector<8x256xi32>
    %556 = arith.extui %555 : vector<8x256xi1> to vector<8x256xi32>
    %cst_139 = arith.constant dense<0> : vector<8xi32>
    %557 = vector.multi_reduction <add>, %556, %cst_139 [1] : vector<8x256xi32> to vector<8xi32>
    %558 = vector.shape_cast %557 : vector<8xi32> to vector<8x1xi32>
    %559 = vector.broadcast %c212_i32 : i32 to vector<8x1xi32>
    %560 = arith.cmpi sge, %558, %559 : vector<8x1xi32>
    %561 = arith.select %553, %537, %521 : vector<8x1xi1>, vector<8x1xi32>
    %c1_i32_140 = arith.constant 1 : i32
    %562 = vector.broadcast %c1_i32_140 : i32 to vector<8x1xi32>
    %563 = arith.addi %537, %562 : vector<8x1xi32>
    %564 = arith.select %553, %524, %563 : vector<8x1xi1>, vector<8x1xi32>
    %565 = arith.select %560, %546, %525 : vector<8x1xi1>, vector<8x1xi32>
    %c1_i32_141 = arith.constant 1 : i32
    %566 = vector.broadcast %c1_i32_141 : i32 to vector<8x1xi32>
    %567 = arith.addi %546, %566 : vector<8x1xi32>
    %568 = arith.select %560, %528, %567 : vector<8x1xi1>, vector<8x1xi32>
    %c14_i32 = arith.constant 14 : i32
    %c1_i32_142 = arith.constant 1 : i32
    %569 = vector.broadcast %c1_i32_142 : i32 to vector<8x1xi32>
    %570 = arith.shrsi %564, %569 : vector<8x1xi32>
    %c1_i32_143 = arith.constant 1 : i32
    %571 = vector.broadcast %c1_i32_143 : i32 to vector<8x1xi32>
    %572 = arith.shrsi %561, %571 : vector<8x1xi32>
    %573 = arith.addi %570, %572 : vector<8x1xi32>
    %574 = arith.andi %564, %561 : vector<8x1xi32>
    %c1_i32_144 = arith.constant 1 : i32
    %575 = vector.broadcast %c1_i32_144 : i32 to vector<8x1xi32>
    %576 = arith.andi %574, %575 : vector<8x1xi32>
    %577 = arith.addi %573, %576 : vector<8x1xi32>
    %c1_i32_145 = arith.constant 1 : i32
    %578 = vector.broadcast %c1_i32_145 : i32 to vector<8x1xi32>
    %579 = arith.shrsi %568, %578 : vector<8x1xi32>
    %c1_i32_146 = arith.constant 1 : i32
    %580 = vector.broadcast %c1_i32_146 : i32 to vector<8x1xi32>
    %581 = arith.shrsi %565, %580 : vector<8x1xi32>
    %582 = arith.addi %579, %581 : vector<8x1xi32>
    %583 = arith.andi %568, %565 : vector<8x1xi32>
    %c1_i32_147 = arith.constant 1 : i32
    %584 = vector.broadcast %c1_i32_147 : i32 to vector<8x1xi32>
    %585 = arith.andi %583, %584 : vector<8x1xi32>
    %586 = arith.addi %582, %585 : vector<8x1xi32>
    %587 = vector.broadcast %577 : vector<8x1xi32> to vector<8x256xi32>
    %588 = arith.cmpi sle, %6, %587 : vector<8x256xi32>
    %589 = arith.extui %588 : vector<8x256xi1> to vector<8x256xi32>
    %cst_148 = arith.constant dense<0> : vector<8xi32>
    %590 = vector.multi_reduction <add>, %589, %cst_148 [1] : vector<8x256xi32> to vector<8xi32>
    %591 = vector.shape_cast %590 : vector<8xi32> to vector<8x1xi32>
    %592 = vector.broadcast %c207_i32 : i32 to vector<8x1xi32>
    %593 = arith.cmpi sge, %591, %592 : vector<8x1xi32>
    %594 = vector.broadcast %586 : vector<8x1xi32> to vector<8x256xi32>
    %595 = arith.cmpi sle, %6, %594 : vector<8x256xi32>
    %596 = arith.extui %595 : vector<8x256xi1> to vector<8x256xi32>
    %cst_149 = arith.constant dense<0> : vector<8xi32>
    %597 = vector.multi_reduction <add>, %596, %cst_149 [1] : vector<8x256xi32> to vector<8xi32>
    %598 = vector.shape_cast %597 : vector<8xi32> to vector<8x1xi32>
    %599 = vector.broadcast %c212_i32 : i32 to vector<8x1xi32>
    %600 = arith.cmpi sge, %598, %599 : vector<8x1xi32>
    %601 = arith.select %593, %577, %561 : vector<8x1xi1>, vector<8x1xi32>
    %c1_i32_150 = arith.constant 1 : i32
    %602 = vector.broadcast %c1_i32_150 : i32 to vector<8x1xi32>
    %603 = arith.addi %577, %602 : vector<8x1xi32>
    %604 = arith.select %593, %564, %603 : vector<8x1xi1>, vector<8x1xi32>
    %605 = arith.select %600, %586, %565 : vector<8x1xi1>, vector<8x1xi32>
    %c1_i32_151 = arith.constant 1 : i32
    %606 = vector.broadcast %c1_i32_151 : i32 to vector<8x1xi32>
    %607 = arith.addi %586, %606 : vector<8x1xi32>
    %608 = arith.select %600, %568, %607 : vector<8x1xi1>, vector<8x1xi32>
    %c15_i32 = arith.constant 15 : i32
    %c1_i32_152 = arith.constant 1 : i32
    %609 = vector.broadcast %c1_i32_152 : i32 to vector<8x1xi32>
    %610 = arith.shrsi %604, %609 : vector<8x1xi32>
    %c1_i32_153 = arith.constant 1 : i32
    %611 = vector.broadcast %c1_i32_153 : i32 to vector<8x1xi32>
    %612 = arith.shrsi %601, %611 : vector<8x1xi32>
    %613 = arith.addi %610, %612 : vector<8x1xi32>
    %614 = arith.andi %604, %601 : vector<8x1xi32>
    %c1_i32_154 = arith.constant 1 : i32
    %615 = vector.broadcast %c1_i32_154 : i32 to vector<8x1xi32>
    %616 = arith.andi %614, %615 : vector<8x1xi32>
    %617 = arith.addi %613, %616 : vector<8x1xi32>
    %c1_i32_155 = arith.constant 1 : i32
    %618 = vector.broadcast %c1_i32_155 : i32 to vector<8x1xi32>
    %619 = arith.shrsi %608, %618 : vector<8x1xi32>
    %c1_i32_156 = arith.constant 1 : i32
    %620 = vector.broadcast %c1_i32_156 : i32 to vector<8x1xi32>
    %621 = arith.shrsi %605, %620 : vector<8x1xi32>
    %622 = arith.addi %619, %621 : vector<8x1xi32>
    %623 = arith.andi %608, %605 : vector<8x1xi32>
    %c1_i32_157 = arith.constant 1 : i32
    %624 = vector.broadcast %c1_i32_157 : i32 to vector<8x1xi32>
    %625 = arith.andi %623, %624 : vector<8x1xi32>
    %626 = arith.addi %622, %625 : vector<8x1xi32>
    %627 = vector.broadcast %617 : vector<8x1xi32> to vector<8x256xi32>
    %628 = arith.cmpi sle, %6, %627 : vector<8x256xi32>
    %629 = arith.extui %628 : vector<8x256xi1> to vector<8x256xi32>
    %cst_158 = arith.constant dense<0> : vector<8xi32>
    %630 = vector.multi_reduction <add>, %629, %cst_158 [1] : vector<8x256xi32> to vector<8xi32>
    %631 = vector.shape_cast %630 : vector<8xi32> to vector<8x1xi32>
    %632 = vector.broadcast %c207_i32 : i32 to vector<8x1xi32>
    %633 = arith.cmpi sge, %631, %632 : vector<8x1xi32>
    %634 = vector.broadcast %626 : vector<8x1xi32> to vector<8x256xi32>
    %635 = arith.cmpi sle, %6, %634 : vector<8x256xi32>
    %636 = arith.extui %635 : vector<8x256xi1> to vector<8x256xi32>
    %cst_159 = arith.constant dense<0> : vector<8xi32>
    %637 = vector.multi_reduction <add>, %636, %cst_159 [1] : vector<8x256xi32> to vector<8xi32>
    %638 = vector.shape_cast %637 : vector<8xi32> to vector<8x1xi32>
    %639 = vector.broadcast %c212_i32 : i32 to vector<8x1xi32>
    %640 = arith.cmpi sge, %638, %639 : vector<8x1xi32>
    %641 = arith.select %633, %617, %601 : vector<8x1xi1>, vector<8x1xi32>
    %c1_i32_160 = arith.constant 1 : i32
    %642 = vector.broadcast %c1_i32_160 : i32 to vector<8x1xi32>
    %643 = arith.addi %617, %642 : vector<8x1xi32>
    %644 = arith.select %633, %604, %643 : vector<8x1xi1>, vector<8x1xi32>
    %645 = arith.select %640, %626, %605 : vector<8x1xi1>, vector<8x1xi32>
    %c1_i32_161 = arith.constant 1 : i32
    %646 = vector.broadcast %c1_i32_161 : i32 to vector<8x1xi32>
    %647 = arith.addi %626, %646 : vector<8x1xi32>
    %648 = arith.select %640, %608, %647 : vector<8x1xi1>, vector<8x1xi32>
    %c16_i32 = arith.constant 16 : i32
    %c1_i32_162 = arith.constant 1 : i32
    %649 = vector.broadcast %c1_i32_162 : i32 to vector<8x1xi32>
    %650 = arith.shrsi %644, %649 : vector<8x1xi32>
    %c1_i32_163 = arith.constant 1 : i32
    %651 = vector.broadcast %c1_i32_163 : i32 to vector<8x1xi32>
    %652 = arith.shrsi %641, %651 : vector<8x1xi32>
    %653 = arith.addi %650, %652 : vector<8x1xi32>
    %654 = arith.andi %644, %641 : vector<8x1xi32>
    %c1_i32_164 = arith.constant 1 : i32
    %655 = vector.broadcast %c1_i32_164 : i32 to vector<8x1xi32>
    %656 = arith.andi %654, %655 : vector<8x1xi32>
    %657 = arith.addi %653, %656 : vector<8x1xi32>
    %c1_i32_165 = arith.constant 1 : i32
    %658 = vector.broadcast %c1_i32_165 : i32 to vector<8x1xi32>
    %659 = arith.shrsi %648, %658 : vector<8x1xi32>
    %c1_i32_166 = arith.constant 1 : i32
    %660 = vector.broadcast %c1_i32_166 : i32 to vector<8x1xi32>
    %661 = arith.shrsi %645, %660 : vector<8x1xi32>
    %662 = arith.addi %659, %661 : vector<8x1xi32>
    %663 = arith.andi %648, %645 : vector<8x1xi32>
    %c1_i32_167 = arith.constant 1 : i32
    %664 = vector.broadcast %c1_i32_167 : i32 to vector<8x1xi32>
    %665 = arith.andi %663, %664 : vector<8x1xi32>
    %666 = arith.addi %662, %665 : vector<8x1xi32>
    %667 = vector.broadcast %657 : vector<8x1xi32> to vector<8x256xi32>
    %668 = arith.cmpi sle, %6, %667 : vector<8x256xi32>
    %669 = arith.extui %668 : vector<8x256xi1> to vector<8x256xi32>
    %cst_168 = arith.constant dense<0> : vector<8xi32>
    %670 = vector.multi_reduction <add>, %669, %cst_168 [1] : vector<8x256xi32> to vector<8xi32>
    %671 = vector.shape_cast %670 : vector<8xi32> to vector<8x1xi32>
    %672 = vector.broadcast %c207_i32 : i32 to vector<8x1xi32>
    %673 = arith.cmpi sge, %671, %672 : vector<8x1xi32>
    %674 = vector.broadcast %666 : vector<8x1xi32> to vector<8x256xi32>
    %675 = arith.cmpi sle, %6, %674 : vector<8x256xi32>
    %676 = arith.extui %675 : vector<8x256xi1> to vector<8x256xi32>
    %cst_169 = arith.constant dense<0> : vector<8xi32>
    %677 = vector.multi_reduction <add>, %676, %cst_169 [1] : vector<8x256xi32> to vector<8xi32>
    %678 = vector.shape_cast %677 : vector<8xi32> to vector<8x1xi32>
    %679 = vector.broadcast %c212_i32 : i32 to vector<8x1xi32>
    %680 = arith.cmpi sge, %678, %679 : vector<8x1xi32>
    %681 = arith.select %673, %657, %641 : vector<8x1xi1>, vector<8x1xi32>
    %c1_i32_170 = arith.constant 1 : i32
    %682 = vector.broadcast %c1_i32_170 : i32 to vector<8x1xi32>
    %683 = arith.addi %657, %682 : vector<8x1xi32>
    %684 = arith.select %673, %644, %683 : vector<8x1xi1>, vector<8x1xi32>
    %685 = arith.select %680, %666, %645 : vector<8x1xi1>, vector<8x1xi32>
    %c1_i32_171 = arith.constant 1 : i32
    %686 = vector.broadcast %c1_i32_171 : i32 to vector<8x1xi32>
    %687 = arith.addi %666, %686 : vector<8x1xi32>
    %688 = arith.select %680, %648, %687 : vector<8x1xi1>, vector<8x1xi32>
    %c17_i32 = arith.constant 17 : i32
    %c1_i32_172 = arith.constant 1 : i32
    %689 = vector.broadcast %c1_i32_172 : i32 to vector<8x1xi32>
    %690 = arith.shrsi %684, %689 : vector<8x1xi32>
    %c1_i32_173 = arith.constant 1 : i32
    %691 = vector.broadcast %c1_i32_173 : i32 to vector<8x1xi32>
    %692 = arith.shrsi %681, %691 : vector<8x1xi32>
    %693 = arith.addi %690, %692 : vector<8x1xi32>
    %694 = arith.andi %684, %681 : vector<8x1xi32>
    %c1_i32_174 = arith.constant 1 : i32
    %695 = vector.broadcast %c1_i32_174 : i32 to vector<8x1xi32>
    %696 = arith.andi %694, %695 : vector<8x1xi32>
    %697 = arith.addi %693, %696 : vector<8x1xi32>
    %c1_i32_175 = arith.constant 1 : i32
    %698 = vector.broadcast %c1_i32_175 : i32 to vector<8x1xi32>
    %699 = arith.shrsi %688, %698 : vector<8x1xi32>
    %c1_i32_176 = arith.constant 1 : i32
    %700 = vector.broadcast %c1_i32_176 : i32 to vector<8x1xi32>
    %701 = arith.shrsi %685, %700 : vector<8x1xi32>
    %702 = arith.addi %699, %701 : vector<8x1xi32>
    %703 = arith.andi %688, %685 : vector<8x1xi32>
    %c1_i32_177 = arith.constant 1 : i32
    %704 = vector.broadcast %c1_i32_177 : i32 to vector<8x1xi32>
    %705 = arith.andi %703, %704 : vector<8x1xi32>
    %706 = arith.addi %702, %705 : vector<8x1xi32>
    %707 = vector.broadcast %697 : vector<8x1xi32> to vector<8x256xi32>
    %708 = arith.cmpi sle, %6, %707 : vector<8x256xi32>
    %709 = arith.extui %708 : vector<8x256xi1> to vector<8x256xi32>
    %cst_178 = arith.constant dense<0> : vector<8xi32>
    %710 = vector.multi_reduction <add>, %709, %cst_178 [1] : vector<8x256xi32> to vector<8xi32>
    %711 = vector.shape_cast %710 : vector<8xi32> to vector<8x1xi32>
    %712 = vector.broadcast %c207_i32 : i32 to vector<8x1xi32>
    %713 = arith.cmpi sge, %711, %712 : vector<8x1xi32>
    %714 = vector.broadcast %706 : vector<8x1xi32> to vector<8x256xi32>
    %715 = arith.cmpi sle, %6, %714 : vector<8x256xi32>
    %716 = arith.extui %715 : vector<8x256xi1> to vector<8x256xi32>
    %cst_179 = arith.constant dense<0> : vector<8xi32>
    %717 = vector.multi_reduction <add>, %716, %cst_179 [1] : vector<8x256xi32> to vector<8xi32>
    %718 = vector.shape_cast %717 : vector<8xi32> to vector<8x1xi32>
    %719 = vector.broadcast %c212_i32 : i32 to vector<8x1xi32>
    %720 = arith.cmpi sge, %718, %719 : vector<8x1xi32>
    %721 = arith.select %713, %697, %681 : vector<8x1xi1>, vector<8x1xi32>
    %c1_i32_180 = arith.constant 1 : i32
    %722 = vector.broadcast %c1_i32_180 : i32 to vector<8x1xi32>
    %723 = arith.addi %697, %722 : vector<8x1xi32>
    %724 = arith.select %713, %684, %723 : vector<8x1xi1>, vector<8x1xi32>
    %725 = arith.select %720, %706, %685 : vector<8x1xi1>, vector<8x1xi32>
    %c1_i32_181 = arith.constant 1 : i32
    %726 = vector.broadcast %c1_i32_181 : i32 to vector<8x1xi32>
    %727 = arith.addi %706, %726 : vector<8x1xi32>
    %728 = arith.select %720, %688, %727 : vector<8x1xi1>, vector<8x1xi32>
    %c18_i32 = arith.constant 18 : i32
    %c1_i32_182 = arith.constant 1 : i32
    %729 = vector.broadcast %c1_i32_182 : i32 to vector<8x1xi32>
    %730 = arith.shrsi %724, %729 : vector<8x1xi32>
    %c1_i32_183 = arith.constant 1 : i32
    %731 = vector.broadcast %c1_i32_183 : i32 to vector<8x1xi32>
    %732 = arith.shrsi %721, %731 : vector<8x1xi32>
    %733 = arith.addi %730, %732 : vector<8x1xi32>
    %734 = arith.andi %724, %721 : vector<8x1xi32>
    %c1_i32_184 = arith.constant 1 : i32
    %735 = vector.broadcast %c1_i32_184 : i32 to vector<8x1xi32>
    %736 = arith.andi %734, %735 : vector<8x1xi32>
    %737 = arith.addi %733, %736 : vector<8x1xi32>
    %c1_i32_185 = arith.constant 1 : i32
    %738 = vector.broadcast %c1_i32_185 : i32 to vector<8x1xi32>
    %739 = arith.shrsi %728, %738 : vector<8x1xi32>
    %c1_i32_186 = arith.constant 1 : i32
    %740 = vector.broadcast %c1_i32_186 : i32 to vector<8x1xi32>
    %741 = arith.shrsi %725, %740 : vector<8x1xi32>
    %742 = arith.addi %739, %741 : vector<8x1xi32>
    %743 = arith.andi %728, %725 : vector<8x1xi32>
    %c1_i32_187 = arith.constant 1 : i32
    %744 = vector.broadcast %c1_i32_187 : i32 to vector<8x1xi32>
    %745 = arith.andi %743, %744 : vector<8x1xi32>
    %746 = arith.addi %742, %745 : vector<8x1xi32>
    %747 = vector.broadcast %737 : vector<8x1xi32> to vector<8x256xi32>
    %748 = arith.cmpi sle, %6, %747 : vector<8x256xi32>
    %749 = arith.extui %748 : vector<8x256xi1> to vector<8x256xi32>
    %cst_188 = arith.constant dense<0> : vector<8xi32>
    %750 = vector.multi_reduction <add>, %749, %cst_188 [1] : vector<8x256xi32> to vector<8xi32>
    %751 = vector.shape_cast %750 : vector<8xi32> to vector<8x1xi32>
    %752 = vector.broadcast %c207_i32 : i32 to vector<8x1xi32>
    %753 = arith.cmpi sge, %751, %752 : vector<8x1xi32>
    %754 = vector.broadcast %746 : vector<8x1xi32> to vector<8x256xi32>
    %755 = arith.cmpi sle, %6, %754 : vector<8x256xi32>
    %756 = arith.extui %755 : vector<8x256xi1> to vector<8x256xi32>
    %cst_189 = arith.constant dense<0> : vector<8xi32>
    %757 = vector.multi_reduction <add>, %756, %cst_189 [1] : vector<8x256xi32> to vector<8xi32>
    %758 = vector.shape_cast %757 : vector<8xi32> to vector<8x1xi32>
    %759 = vector.broadcast %c212_i32 : i32 to vector<8x1xi32>
    %760 = arith.cmpi sge, %758, %759 : vector<8x1xi32>
    %761 = arith.select %753, %737, %721 : vector<8x1xi1>, vector<8x1xi32>
    %c1_i32_190 = arith.constant 1 : i32
    %762 = vector.broadcast %c1_i32_190 : i32 to vector<8x1xi32>
    %763 = arith.addi %737, %762 : vector<8x1xi32>
    %764 = arith.select %753, %724, %763 : vector<8x1xi1>, vector<8x1xi32>
    %765 = arith.select %760, %746, %725 : vector<8x1xi1>, vector<8x1xi32>
    %c1_i32_191 = arith.constant 1 : i32
    %766 = vector.broadcast %c1_i32_191 : i32 to vector<8x1xi32>
    %767 = arith.addi %746, %766 : vector<8x1xi32>
    %768 = arith.select %760, %728, %767 : vector<8x1xi1>, vector<8x1xi32>
    %c19_i32 = arith.constant 19 : i32
    %c1_i32_192 = arith.constant 1 : i32
    %769 = vector.broadcast %c1_i32_192 : i32 to vector<8x1xi32>
    %770 = arith.shrsi %764, %769 : vector<8x1xi32>
    %c1_i32_193 = arith.constant 1 : i32
    %771 = vector.broadcast %c1_i32_193 : i32 to vector<8x1xi32>
    %772 = arith.shrsi %761, %771 : vector<8x1xi32>
    %773 = arith.addi %770, %772 : vector<8x1xi32>
    %774 = arith.andi %764, %761 : vector<8x1xi32>
    %c1_i32_194 = arith.constant 1 : i32
    %775 = vector.broadcast %c1_i32_194 : i32 to vector<8x1xi32>
    %776 = arith.andi %774, %775 : vector<8x1xi32>
    %777 = arith.addi %773, %776 : vector<8x1xi32>
    %c1_i32_195 = arith.constant 1 : i32
    %778 = vector.broadcast %c1_i32_195 : i32 to vector<8x1xi32>
    %779 = arith.shrsi %768, %778 : vector<8x1xi32>
    %c1_i32_196 = arith.constant 1 : i32
    %780 = vector.broadcast %c1_i32_196 : i32 to vector<8x1xi32>
    %781 = arith.shrsi %765, %780 : vector<8x1xi32>
    %782 = arith.addi %779, %781 : vector<8x1xi32>
    %783 = arith.andi %768, %765 : vector<8x1xi32>
    %c1_i32_197 = arith.constant 1 : i32
    %784 = vector.broadcast %c1_i32_197 : i32 to vector<8x1xi32>
    %785 = arith.andi %783, %784 : vector<8x1xi32>
    %786 = arith.addi %782, %785 : vector<8x1xi32>
    %787 = vector.broadcast %777 : vector<8x1xi32> to vector<8x256xi32>
    %788 = arith.cmpi sle, %6, %787 : vector<8x256xi32>
    %789 = arith.extui %788 : vector<8x256xi1> to vector<8x256xi32>
    %cst_198 = arith.constant dense<0> : vector<8xi32>
    %790 = vector.multi_reduction <add>, %789, %cst_198 [1] : vector<8x256xi32> to vector<8xi32>
    %791 = vector.shape_cast %790 : vector<8xi32> to vector<8x1xi32>
    %792 = vector.broadcast %c207_i32 : i32 to vector<8x1xi32>
    %793 = arith.cmpi sge, %791, %792 : vector<8x1xi32>
    %794 = vector.broadcast %786 : vector<8x1xi32> to vector<8x256xi32>
    %795 = arith.cmpi sle, %6, %794 : vector<8x256xi32>
    %796 = arith.extui %795 : vector<8x256xi1> to vector<8x256xi32>
    %cst_199 = arith.constant dense<0> : vector<8xi32>
    %797 = vector.multi_reduction <add>, %796, %cst_199 [1] : vector<8x256xi32> to vector<8xi32>
    %798 = vector.shape_cast %797 : vector<8xi32> to vector<8x1xi32>
    %799 = vector.broadcast %c212_i32 : i32 to vector<8x1xi32>
    %800 = arith.cmpi sge, %798, %799 : vector<8x1xi32>
    %801 = arith.select %793, %777, %761 : vector<8x1xi1>, vector<8x1xi32>
    %c1_i32_200 = arith.constant 1 : i32
    %802 = vector.broadcast %c1_i32_200 : i32 to vector<8x1xi32>
    %803 = arith.addi %777, %802 : vector<8x1xi32>
    %804 = arith.select %793, %764, %803 : vector<8x1xi1>, vector<8x1xi32>
    %805 = arith.select %800, %786, %765 : vector<8x1xi1>, vector<8x1xi32>
    %c1_i32_201 = arith.constant 1 : i32
    %806 = vector.broadcast %c1_i32_201 : i32 to vector<8x1xi32>
    %807 = arith.addi %786, %806 : vector<8x1xi32>
    %808 = arith.select %800, %768, %807 : vector<8x1xi1>, vector<8x1xi32>
    %c20_i32 = arith.constant 20 : i32
    %c1_i32_202 = arith.constant 1 : i32
    %809 = vector.broadcast %c1_i32_202 : i32 to vector<8x1xi32>
    %810 = arith.shrsi %804, %809 : vector<8x1xi32>
    %c1_i32_203 = arith.constant 1 : i32
    %811 = vector.broadcast %c1_i32_203 : i32 to vector<8x1xi32>
    %812 = arith.shrsi %801, %811 : vector<8x1xi32>
    %813 = arith.addi %810, %812 : vector<8x1xi32>
    %814 = arith.andi %804, %801 : vector<8x1xi32>
    %c1_i32_204 = arith.constant 1 : i32
    %815 = vector.broadcast %c1_i32_204 : i32 to vector<8x1xi32>
    %816 = arith.andi %814, %815 : vector<8x1xi32>
    %817 = arith.addi %813, %816 : vector<8x1xi32>
    %c1_i32_205 = arith.constant 1 : i32
    %818 = vector.broadcast %c1_i32_205 : i32 to vector<8x1xi32>
    %819 = arith.shrsi %808, %818 : vector<8x1xi32>
    %c1_i32_206 = arith.constant 1 : i32
    %820 = vector.broadcast %c1_i32_206 : i32 to vector<8x1xi32>
    %821 = arith.shrsi %805, %820 : vector<8x1xi32>
    %822 = arith.addi %819, %821 : vector<8x1xi32>
    %823 = arith.andi %808, %805 : vector<8x1xi32>
    %c1_i32_207 = arith.constant 1 : i32
    %824 = vector.broadcast %c1_i32_207 : i32 to vector<8x1xi32>
    %825 = arith.andi %823, %824 : vector<8x1xi32>
    %826 = arith.addi %822, %825 : vector<8x1xi32>
    %827 = vector.broadcast %817 : vector<8x1xi32> to vector<8x256xi32>
    %828 = arith.cmpi sle, %6, %827 : vector<8x256xi32>
    %829 = arith.extui %828 : vector<8x256xi1> to vector<8x256xi32>
    %cst_208 = arith.constant dense<0> : vector<8xi32>
    %830 = vector.multi_reduction <add>, %829, %cst_208 [1] : vector<8x256xi32> to vector<8xi32>
    %831 = vector.shape_cast %830 : vector<8xi32> to vector<8x1xi32>
    %832 = vector.broadcast %c207_i32 : i32 to vector<8x1xi32>
    %833 = arith.cmpi sge, %831, %832 : vector<8x1xi32>
    %834 = vector.broadcast %826 : vector<8x1xi32> to vector<8x256xi32>
    %835 = arith.cmpi sle, %6, %834 : vector<8x256xi32>
    %836 = arith.extui %835 : vector<8x256xi1> to vector<8x256xi32>
    %cst_209 = arith.constant dense<0> : vector<8xi32>
    %837 = vector.multi_reduction <add>, %836, %cst_209 [1] : vector<8x256xi32> to vector<8xi32>
    %838 = vector.shape_cast %837 : vector<8xi32> to vector<8x1xi32>
    %839 = vector.broadcast %c212_i32 : i32 to vector<8x1xi32>
    %840 = arith.cmpi sge, %838, %839 : vector<8x1xi32>
    %841 = arith.select %833, %817, %801 : vector<8x1xi1>, vector<8x1xi32>
    %c1_i32_210 = arith.constant 1 : i32
    %842 = vector.broadcast %c1_i32_210 : i32 to vector<8x1xi32>
    %843 = arith.addi %817, %842 : vector<8x1xi32>
    %844 = arith.select %833, %804, %843 : vector<8x1xi1>, vector<8x1xi32>
    %845 = arith.select %840, %826, %805 : vector<8x1xi1>, vector<8x1xi32>
    %c1_i32_211 = arith.constant 1 : i32
    %846 = vector.broadcast %c1_i32_211 : i32 to vector<8x1xi32>
    %847 = arith.addi %826, %846 : vector<8x1xi32>
    %848 = arith.select %840, %808, %847 : vector<8x1xi1>, vector<8x1xi32>
    %c21_i32 = arith.constant 21 : i32
    %c1_i32_212 = arith.constant 1 : i32
    %849 = vector.broadcast %c1_i32_212 : i32 to vector<8x1xi32>
    %850 = arith.shrsi %844, %849 : vector<8x1xi32>
    %c1_i32_213 = arith.constant 1 : i32
    %851 = vector.broadcast %c1_i32_213 : i32 to vector<8x1xi32>
    %852 = arith.shrsi %841, %851 : vector<8x1xi32>
    %853 = arith.addi %850, %852 : vector<8x1xi32>
    %854 = arith.andi %844, %841 : vector<8x1xi32>
    %c1_i32_214 = arith.constant 1 : i32
    %855 = vector.broadcast %c1_i32_214 : i32 to vector<8x1xi32>
    %856 = arith.andi %854, %855 : vector<8x1xi32>
    %857 = arith.addi %853, %856 : vector<8x1xi32>
    %c1_i32_215 = arith.constant 1 : i32
    %858 = vector.broadcast %c1_i32_215 : i32 to vector<8x1xi32>
    %859 = arith.shrsi %848, %858 : vector<8x1xi32>
    %c1_i32_216 = arith.constant 1 : i32
    %860 = vector.broadcast %c1_i32_216 : i32 to vector<8x1xi32>
    %861 = arith.shrsi %845, %860 : vector<8x1xi32>
    %862 = arith.addi %859, %861 : vector<8x1xi32>
    %863 = arith.andi %848, %845 : vector<8x1xi32>
    %c1_i32_217 = arith.constant 1 : i32
    %864 = vector.broadcast %c1_i32_217 : i32 to vector<8x1xi32>
    %865 = arith.andi %863, %864 : vector<8x1xi32>
    %866 = arith.addi %862, %865 : vector<8x1xi32>
    %867 = vector.broadcast %857 : vector<8x1xi32> to vector<8x256xi32>
    %868 = arith.cmpi sle, %6, %867 : vector<8x256xi32>
    %869 = arith.extui %868 : vector<8x256xi1> to vector<8x256xi32>
    %cst_218 = arith.constant dense<0> : vector<8xi32>
    %870 = vector.multi_reduction <add>, %869, %cst_218 [1] : vector<8x256xi32> to vector<8xi32>
    %871 = vector.shape_cast %870 : vector<8xi32> to vector<8x1xi32>
    %872 = vector.broadcast %c207_i32 : i32 to vector<8x1xi32>
    %873 = arith.cmpi sge, %871, %872 : vector<8x1xi32>
    %874 = vector.broadcast %866 : vector<8x1xi32> to vector<8x256xi32>
    %875 = arith.cmpi sle, %6, %874 : vector<8x256xi32>
    %876 = arith.extui %875 : vector<8x256xi1> to vector<8x256xi32>
    %cst_219 = arith.constant dense<0> : vector<8xi32>
    %877 = vector.multi_reduction <add>, %876, %cst_219 [1] : vector<8x256xi32> to vector<8xi32>
    %878 = vector.shape_cast %877 : vector<8xi32> to vector<8x1xi32>
    %879 = vector.broadcast %c212_i32 : i32 to vector<8x1xi32>
    %880 = arith.cmpi sge, %878, %879 : vector<8x1xi32>
    %881 = arith.select %873, %857, %841 : vector<8x1xi1>, vector<8x1xi32>
    %c1_i32_220 = arith.constant 1 : i32
    %882 = vector.broadcast %c1_i32_220 : i32 to vector<8x1xi32>
    %883 = arith.addi %857, %882 : vector<8x1xi32>
    %884 = arith.select %873, %844, %883 : vector<8x1xi1>, vector<8x1xi32>
    %885 = arith.select %880, %866, %845 : vector<8x1xi1>, vector<8x1xi32>
    %c1_i32_221 = arith.constant 1 : i32
    %886 = vector.broadcast %c1_i32_221 : i32 to vector<8x1xi32>
    %887 = arith.addi %866, %886 : vector<8x1xi32>
    %888 = arith.select %880, %848, %887 : vector<8x1xi1>, vector<8x1xi32>
    %c22_i32 = arith.constant 22 : i32
    %c1_i32_222 = arith.constant 1 : i32
    %889 = vector.broadcast %c1_i32_222 : i32 to vector<8x1xi32>
    %890 = arith.shrsi %884, %889 : vector<8x1xi32>
    %c1_i32_223 = arith.constant 1 : i32
    %891 = vector.broadcast %c1_i32_223 : i32 to vector<8x1xi32>
    %892 = arith.shrsi %881, %891 : vector<8x1xi32>
    %893 = arith.addi %890, %892 : vector<8x1xi32>
    %894 = arith.andi %884, %881 : vector<8x1xi32>
    %c1_i32_224 = arith.constant 1 : i32
    %895 = vector.broadcast %c1_i32_224 : i32 to vector<8x1xi32>
    %896 = arith.andi %894, %895 : vector<8x1xi32>
    %897 = arith.addi %893, %896 : vector<8x1xi32>
    %c1_i32_225 = arith.constant 1 : i32
    %898 = vector.broadcast %c1_i32_225 : i32 to vector<8x1xi32>
    %899 = arith.shrsi %888, %898 : vector<8x1xi32>
    %c1_i32_226 = arith.constant 1 : i32
    %900 = vector.broadcast %c1_i32_226 : i32 to vector<8x1xi32>
    %901 = arith.shrsi %885, %900 : vector<8x1xi32>
    %902 = arith.addi %899, %901 : vector<8x1xi32>
    %903 = arith.andi %888, %885 : vector<8x1xi32>
    %c1_i32_227 = arith.constant 1 : i32
    %904 = vector.broadcast %c1_i32_227 : i32 to vector<8x1xi32>
    %905 = arith.andi %903, %904 : vector<8x1xi32>
    %906 = arith.addi %902, %905 : vector<8x1xi32>
    %907 = vector.broadcast %897 : vector<8x1xi32> to vector<8x256xi32>
    %908 = arith.cmpi sle, %6, %907 : vector<8x256xi32>
    %909 = arith.extui %908 : vector<8x256xi1> to vector<8x256xi32>
    %cst_228 = arith.constant dense<0> : vector<8xi32>
    %910 = vector.multi_reduction <add>, %909, %cst_228 [1] : vector<8x256xi32> to vector<8xi32>
    %911 = vector.shape_cast %910 : vector<8xi32> to vector<8x1xi32>
    %912 = vector.broadcast %c207_i32 : i32 to vector<8x1xi32>
    %913 = arith.cmpi sge, %911, %912 : vector<8x1xi32>
    %914 = vector.broadcast %906 : vector<8x1xi32> to vector<8x256xi32>
    %915 = arith.cmpi sle, %6, %914 : vector<8x256xi32>
    %916 = arith.extui %915 : vector<8x256xi1> to vector<8x256xi32>
    %cst_229 = arith.constant dense<0> : vector<8xi32>
    %917 = vector.multi_reduction <add>, %916, %cst_229 [1] : vector<8x256xi32> to vector<8xi32>
    %918 = vector.shape_cast %917 : vector<8xi32> to vector<8x1xi32>
    %919 = vector.broadcast %c212_i32 : i32 to vector<8x1xi32>
    %920 = arith.cmpi sge, %918, %919 : vector<8x1xi32>
    %921 = arith.select %913, %897, %881 : vector<8x1xi1>, vector<8x1xi32>
    %c1_i32_230 = arith.constant 1 : i32
    %922 = vector.broadcast %c1_i32_230 : i32 to vector<8x1xi32>
    %923 = arith.addi %897, %922 : vector<8x1xi32>
    %924 = arith.select %913, %884, %923 : vector<8x1xi1>, vector<8x1xi32>
    %925 = arith.select %920, %906, %885 : vector<8x1xi1>, vector<8x1xi32>
    %c1_i32_231 = arith.constant 1 : i32
    %926 = vector.broadcast %c1_i32_231 : i32 to vector<8x1xi32>
    %927 = arith.addi %906, %926 : vector<8x1xi32>
    %928 = arith.select %920, %888, %927 : vector<8x1xi1>, vector<8x1xi32>
    %c23_i32 = arith.constant 23 : i32
    %c1_i32_232 = arith.constant 1 : i32
    %929 = vector.broadcast %c1_i32_232 : i32 to vector<8x1xi32>
    %930 = arith.shrsi %924, %929 : vector<8x1xi32>
    %c1_i32_233 = arith.constant 1 : i32
    %931 = vector.broadcast %c1_i32_233 : i32 to vector<8x1xi32>
    %932 = arith.shrsi %921, %931 : vector<8x1xi32>
    %933 = arith.addi %930, %932 : vector<8x1xi32>
    %934 = arith.andi %924, %921 : vector<8x1xi32>
    %c1_i32_234 = arith.constant 1 : i32
    %935 = vector.broadcast %c1_i32_234 : i32 to vector<8x1xi32>
    %936 = arith.andi %934, %935 : vector<8x1xi32>
    %937 = arith.addi %933, %936 : vector<8x1xi32>
    %c1_i32_235 = arith.constant 1 : i32
    %938 = vector.broadcast %c1_i32_235 : i32 to vector<8x1xi32>
    %939 = arith.shrsi %928, %938 : vector<8x1xi32>
    %c1_i32_236 = arith.constant 1 : i32
    %940 = vector.broadcast %c1_i32_236 : i32 to vector<8x1xi32>
    %941 = arith.shrsi %925, %940 : vector<8x1xi32>
    %942 = arith.addi %939, %941 : vector<8x1xi32>
    %943 = arith.andi %928, %925 : vector<8x1xi32>
    %c1_i32_237 = arith.constant 1 : i32
    %944 = vector.broadcast %c1_i32_237 : i32 to vector<8x1xi32>
    %945 = arith.andi %943, %944 : vector<8x1xi32>
    %946 = arith.addi %942, %945 : vector<8x1xi32>
    %947 = vector.broadcast %937 : vector<8x1xi32> to vector<8x256xi32>
    %948 = arith.cmpi sle, %6, %947 : vector<8x256xi32>
    %949 = arith.extui %948 : vector<8x256xi1> to vector<8x256xi32>
    %cst_238 = arith.constant dense<0> : vector<8xi32>
    %950 = vector.multi_reduction <add>, %949, %cst_238 [1] : vector<8x256xi32> to vector<8xi32>
    %951 = vector.shape_cast %950 : vector<8xi32> to vector<8x1xi32>
    %952 = vector.broadcast %c207_i32 : i32 to vector<8x1xi32>
    %953 = arith.cmpi sge, %951, %952 : vector<8x1xi32>
    %954 = vector.broadcast %946 : vector<8x1xi32> to vector<8x256xi32>
    %955 = arith.cmpi sle, %6, %954 : vector<8x256xi32>
    %956 = arith.extui %955 : vector<8x256xi1> to vector<8x256xi32>
    %cst_239 = arith.constant dense<0> : vector<8xi32>
    %957 = vector.multi_reduction <add>, %956, %cst_239 [1] : vector<8x256xi32> to vector<8xi32>
    %958 = vector.shape_cast %957 : vector<8xi32> to vector<8x1xi32>
    %959 = vector.broadcast %c212_i32 : i32 to vector<8x1xi32>
    %960 = arith.cmpi sge, %958, %959 : vector<8x1xi32>
    %961 = arith.select %953, %937, %921 : vector<8x1xi1>, vector<8x1xi32>
    %c1_i32_240 = arith.constant 1 : i32
    %962 = vector.broadcast %c1_i32_240 : i32 to vector<8x1xi32>
    %963 = arith.addi %937, %962 : vector<8x1xi32>
    %964 = arith.select %953, %924, %963 : vector<8x1xi1>, vector<8x1xi32>
    %965 = arith.select %960, %946, %925 : vector<8x1xi1>, vector<8x1xi32>
    %c1_i32_241 = arith.constant 1 : i32
    %966 = vector.broadcast %c1_i32_241 : i32 to vector<8x1xi32>
    %967 = arith.addi %946, %966 : vector<8x1xi32>
    %968 = arith.select %960, %928, %967 : vector<8x1xi1>, vector<8x1xi32>
    %c24_i32 = arith.constant 24 : i32
    %c1_i32_242 = arith.constant 1 : i32
    %969 = vector.broadcast %c1_i32_242 : i32 to vector<8x1xi32>
    %970 = arith.shrsi %964, %969 : vector<8x1xi32>
    %c1_i32_243 = arith.constant 1 : i32
    %971 = vector.broadcast %c1_i32_243 : i32 to vector<8x1xi32>
    %972 = arith.shrsi %961, %971 : vector<8x1xi32>
    %973 = arith.addi %970, %972 : vector<8x1xi32>
    %974 = arith.andi %964, %961 : vector<8x1xi32>
    %c1_i32_244 = arith.constant 1 : i32
    %975 = vector.broadcast %c1_i32_244 : i32 to vector<8x1xi32>
    %976 = arith.andi %974, %975 : vector<8x1xi32>
    %977 = arith.addi %973, %976 : vector<8x1xi32>
    %c1_i32_245 = arith.constant 1 : i32
    %978 = vector.broadcast %c1_i32_245 : i32 to vector<8x1xi32>
    %979 = arith.shrsi %968, %978 : vector<8x1xi32>
    %c1_i32_246 = arith.constant 1 : i32
    %980 = vector.broadcast %c1_i32_246 : i32 to vector<8x1xi32>
    %981 = arith.shrsi %965, %980 : vector<8x1xi32>
    %982 = arith.addi %979, %981 : vector<8x1xi32>
    %983 = arith.andi %968, %965 : vector<8x1xi32>
    %c1_i32_247 = arith.constant 1 : i32
    %984 = vector.broadcast %c1_i32_247 : i32 to vector<8x1xi32>
    %985 = arith.andi %983, %984 : vector<8x1xi32>
    %986 = arith.addi %982, %985 : vector<8x1xi32>
    %987 = vector.broadcast %977 : vector<8x1xi32> to vector<8x256xi32>
    %988 = arith.cmpi sle, %6, %987 : vector<8x256xi32>
    %989 = arith.extui %988 : vector<8x256xi1> to vector<8x256xi32>
    %cst_248 = arith.constant dense<0> : vector<8xi32>
    %990 = vector.multi_reduction <add>, %989, %cst_248 [1] : vector<8x256xi32> to vector<8xi32>
    %991 = vector.shape_cast %990 : vector<8xi32> to vector<8x1xi32>
    %992 = vector.broadcast %c207_i32 : i32 to vector<8x1xi32>
    %993 = arith.cmpi sge, %991, %992 : vector<8x1xi32>
    %994 = vector.broadcast %986 : vector<8x1xi32> to vector<8x256xi32>
    %995 = arith.cmpi sle, %6, %994 : vector<8x256xi32>
    %996 = arith.extui %995 : vector<8x256xi1> to vector<8x256xi32>
    %cst_249 = arith.constant dense<0> : vector<8xi32>
    %997 = vector.multi_reduction <add>, %996, %cst_249 [1] : vector<8x256xi32> to vector<8xi32>
    %998 = vector.shape_cast %997 : vector<8xi32> to vector<8x1xi32>
    %999 = vector.broadcast %c212_i32 : i32 to vector<8x1xi32>
    %1000 = arith.cmpi sge, %998, %999 : vector<8x1xi32>
    %1001 = arith.select %993, %977, %961 : vector<8x1xi1>, vector<8x1xi32>
    %c1_i32_250 = arith.constant 1 : i32
    %1002 = vector.broadcast %c1_i32_250 : i32 to vector<8x1xi32>
    %1003 = arith.addi %977, %1002 : vector<8x1xi32>
    %1004 = arith.select %993, %964, %1003 : vector<8x1xi1>, vector<8x1xi32>
    %1005 = arith.select %1000, %986, %965 : vector<8x1xi1>, vector<8x1xi32>
    %c1_i32_251 = arith.constant 1 : i32
    %1006 = vector.broadcast %c1_i32_251 : i32 to vector<8x1xi32>
    %1007 = arith.addi %986, %1006 : vector<8x1xi32>
    %1008 = arith.select %1000, %968, %1007 : vector<8x1xi1>, vector<8x1xi32>
    %c25_i32 = arith.constant 25 : i32
    %c1_i32_252 = arith.constant 1 : i32
    %1009 = vector.broadcast %c1_i32_252 : i32 to vector<8x1xi32>
    %1010 = arith.shrsi %1004, %1009 : vector<8x1xi32>
    %c1_i32_253 = arith.constant 1 : i32
    %1011 = vector.broadcast %c1_i32_253 : i32 to vector<8x1xi32>
    %1012 = arith.shrsi %1001, %1011 : vector<8x1xi32>
    %1013 = arith.addi %1010, %1012 : vector<8x1xi32>
    %1014 = arith.andi %1004, %1001 : vector<8x1xi32>
    %c1_i32_254 = arith.constant 1 : i32
    %1015 = vector.broadcast %c1_i32_254 : i32 to vector<8x1xi32>
    %1016 = arith.andi %1014, %1015 : vector<8x1xi32>
    %1017 = arith.addi %1013, %1016 : vector<8x1xi32>
    %c1_i32_255 = arith.constant 1 : i32
    %1018 = vector.broadcast %c1_i32_255 : i32 to vector<8x1xi32>
    %1019 = arith.shrsi %1008, %1018 : vector<8x1xi32>
    %c1_i32_256 = arith.constant 1 : i32
    %1020 = vector.broadcast %c1_i32_256 : i32 to vector<8x1xi32>
    %1021 = arith.shrsi %1005, %1020 : vector<8x1xi32>
    %1022 = arith.addi %1019, %1021 : vector<8x1xi32>
    %1023 = arith.andi %1008, %1005 : vector<8x1xi32>
    %c1_i32_257 = arith.constant 1 : i32
    %1024 = vector.broadcast %c1_i32_257 : i32 to vector<8x1xi32>
    %1025 = arith.andi %1023, %1024 : vector<8x1xi32>
    %1026 = arith.addi %1022, %1025 : vector<8x1xi32>
    %1027 = vector.broadcast %1017 : vector<8x1xi32> to vector<8x256xi32>
    %1028 = arith.cmpi sle, %6, %1027 : vector<8x256xi32>
    %1029 = arith.extui %1028 : vector<8x256xi1> to vector<8x256xi32>
    %cst_258 = arith.constant dense<0> : vector<8xi32>
    %1030 = vector.multi_reduction <add>, %1029, %cst_258 [1] : vector<8x256xi32> to vector<8xi32>
    %1031 = vector.shape_cast %1030 : vector<8xi32> to vector<8x1xi32>
    %1032 = vector.broadcast %c207_i32 : i32 to vector<8x1xi32>
    %1033 = arith.cmpi sge, %1031, %1032 : vector<8x1xi32>
    %1034 = vector.broadcast %1026 : vector<8x1xi32> to vector<8x256xi32>
    %1035 = arith.cmpi sle, %6, %1034 : vector<8x256xi32>
    %1036 = arith.extui %1035 : vector<8x256xi1> to vector<8x256xi32>
    %cst_259 = arith.constant dense<0> : vector<8xi32>
    %1037 = vector.multi_reduction <add>, %1036, %cst_259 [1] : vector<8x256xi32> to vector<8xi32>
    %1038 = vector.shape_cast %1037 : vector<8xi32> to vector<8x1xi32>
    %1039 = vector.broadcast %c212_i32 : i32 to vector<8x1xi32>
    %1040 = arith.cmpi sge, %1038, %1039 : vector<8x1xi32>
    %1041 = arith.select %1033, %1017, %1001 : vector<8x1xi1>, vector<8x1xi32>
    %c1_i32_260 = arith.constant 1 : i32
    %1042 = vector.broadcast %c1_i32_260 : i32 to vector<8x1xi32>
    %1043 = arith.addi %1017, %1042 : vector<8x1xi32>
    %1044 = arith.select %1033, %1004, %1043 : vector<8x1xi1>, vector<8x1xi32>
    %1045 = arith.select %1040, %1026, %1005 : vector<8x1xi1>, vector<8x1xi32>
    %c1_i32_261 = arith.constant 1 : i32
    %1046 = vector.broadcast %c1_i32_261 : i32 to vector<8x1xi32>
    %1047 = arith.addi %1026, %1046 : vector<8x1xi32>
    %1048 = arith.select %1040, %1008, %1047 : vector<8x1xi1>, vector<8x1xi32>
    %c26_i32 = arith.constant 26 : i32
    %c1_i32_262 = arith.constant 1 : i32
    %1049 = vector.broadcast %c1_i32_262 : i32 to vector<8x1xi32>
    %1050 = arith.shrsi %1044, %1049 : vector<8x1xi32>
    %c1_i32_263 = arith.constant 1 : i32
    %1051 = vector.broadcast %c1_i32_263 : i32 to vector<8x1xi32>
    %1052 = arith.shrsi %1041, %1051 : vector<8x1xi32>
    %1053 = arith.addi %1050, %1052 : vector<8x1xi32>
    %1054 = arith.andi %1044, %1041 : vector<8x1xi32>
    %c1_i32_264 = arith.constant 1 : i32
    %1055 = vector.broadcast %c1_i32_264 : i32 to vector<8x1xi32>
    %1056 = arith.andi %1054, %1055 : vector<8x1xi32>
    %1057 = arith.addi %1053, %1056 : vector<8x1xi32>
    %c1_i32_265 = arith.constant 1 : i32
    %1058 = vector.broadcast %c1_i32_265 : i32 to vector<8x1xi32>
    %1059 = arith.shrsi %1048, %1058 : vector<8x1xi32>
    %c1_i32_266 = arith.constant 1 : i32
    %1060 = vector.broadcast %c1_i32_266 : i32 to vector<8x1xi32>
    %1061 = arith.shrsi %1045, %1060 : vector<8x1xi32>
    %1062 = arith.addi %1059, %1061 : vector<8x1xi32>
    %1063 = arith.andi %1048, %1045 : vector<8x1xi32>
    %c1_i32_267 = arith.constant 1 : i32
    %1064 = vector.broadcast %c1_i32_267 : i32 to vector<8x1xi32>
    %1065 = arith.andi %1063, %1064 : vector<8x1xi32>
    %1066 = arith.addi %1062, %1065 : vector<8x1xi32>
    %1067 = vector.broadcast %1057 : vector<8x1xi32> to vector<8x256xi32>
    %1068 = arith.cmpi sle, %6, %1067 : vector<8x256xi32>
    %1069 = arith.extui %1068 : vector<8x256xi1> to vector<8x256xi32>
    %cst_268 = arith.constant dense<0> : vector<8xi32>
    %1070 = vector.multi_reduction <add>, %1069, %cst_268 [1] : vector<8x256xi32> to vector<8xi32>
    %1071 = vector.shape_cast %1070 : vector<8xi32> to vector<8x1xi32>
    %1072 = vector.broadcast %c207_i32 : i32 to vector<8x1xi32>
    %1073 = arith.cmpi sge, %1071, %1072 : vector<8x1xi32>
    %1074 = vector.broadcast %1066 : vector<8x1xi32> to vector<8x256xi32>
    %1075 = arith.cmpi sle, %6, %1074 : vector<8x256xi32>
    %1076 = arith.extui %1075 : vector<8x256xi1> to vector<8x256xi32>
    %cst_269 = arith.constant dense<0> : vector<8xi32>
    %1077 = vector.multi_reduction <add>, %1076, %cst_269 [1] : vector<8x256xi32> to vector<8xi32>
    %1078 = vector.shape_cast %1077 : vector<8xi32> to vector<8x1xi32>
    %1079 = vector.broadcast %c212_i32 : i32 to vector<8x1xi32>
    %1080 = arith.cmpi sge, %1078, %1079 : vector<8x1xi32>
    %1081 = arith.select %1073, %1057, %1041 : vector<8x1xi1>, vector<8x1xi32>
    %c1_i32_270 = arith.constant 1 : i32
    %1082 = vector.broadcast %c1_i32_270 : i32 to vector<8x1xi32>
    %1083 = arith.addi %1057, %1082 : vector<8x1xi32>
    %1084 = arith.select %1073, %1044, %1083 : vector<8x1xi1>, vector<8x1xi32>
    %1085 = arith.select %1080, %1066, %1045 : vector<8x1xi1>, vector<8x1xi32>
    %c1_i32_271 = arith.constant 1 : i32
    %1086 = vector.broadcast %c1_i32_271 : i32 to vector<8x1xi32>
    %1087 = arith.addi %1066, %1086 : vector<8x1xi32>
    %1088 = arith.select %1080, %1048, %1087 : vector<8x1xi1>, vector<8x1xi32>
    %c27_i32 = arith.constant 27 : i32
    %c1_i32_272 = arith.constant 1 : i32
    %1089 = vector.broadcast %c1_i32_272 : i32 to vector<8x1xi32>
    %1090 = arith.shrsi %1084, %1089 : vector<8x1xi32>
    %c1_i32_273 = arith.constant 1 : i32
    %1091 = vector.broadcast %c1_i32_273 : i32 to vector<8x1xi32>
    %1092 = arith.shrsi %1081, %1091 : vector<8x1xi32>
    %1093 = arith.addi %1090, %1092 : vector<8x1xi32>
    %1094 = arith.andi %1084, %1081 : vector<8x1xi32>
    %c1_i32_274 = arith.constant 1 : i32
    %1095 = vector.broadcast %c1_i32_274 : i32 to vector<8x1xi32>
    %1096 = arith.andi %1094, %1095 : vector<8x1xi32>
    %1097 = arith.addi %1093, %1096 : vector<8x1xi32>
    %c1_i32_275 = arith.constant 1 : i32
    %1098 = vector.broadcast %c1_i32_275 : i32 to vector<8x1xi32>
    %1099 = arith.shrsi %1088, %1098 : vector<8x1xi32>
    %c1_i32_276 = arith.constant 1 : i32
    %1100 = vector.broadcast %c1_i32_276 : i32 to vector<8x1xi32>
    %1101 = arith.shrsi %1085, %1100 : vector<8x1xi32>
    %1102 = arith.addi %1099, %1101 : vector<8x1xi32>
    %1103 = arith.andi %1088, %1085 : vector<8x1xi32>
    %c1_i32_277 = arith.constant 1 : i32
    %1104 = vector.broadcast %c1_i32_277 : i32 to vector<8x1xi32>
    %1105 = arith.andi %1103, %1104 : vector<8x1xi32>
    %1106 = arith.addi %1102, %1105 : vector<8x1xi32>
    %1107 = vector.broadcast %1097 : vector<8x1xi32> to vector<8x256xi32>
    %1108 = arith.cmpi sle, %6, %1107 : vector<8x256xi32>
    %1109 = arith.extui %1108 : vector<8x256xi1> to vector<8x256xi32>
    %cst_278 = arith.constant dense<0> : vector<8xi32>
    %1110 = vector.multi_reduction <add>, %1109, %cst_278 [1] : vector<8x256xi32> to vector<8xi32>
    %1111 = vector.shape_cast %1110 : vector<8xi32> to vector<8x1xi32>
    %1112 = vector.broadcast %c207_i32 : i32 to vector<8x1xi32>
    %1113 = arith.cmpi sge, %1111, %1112 : vector<8x1xi32>
    %1114 = vector.broadcast %1106 : vector<8x1xi32> to vector<8x256xi32>
    %1115 = arith.cmpi sle, %6, %1114 : vector<8x256xi32>
    %1116 = arith.extui %1115 : vector<8x256xi1> to vector<8x256xi32>
    %cst_279 = arith.constant dense<0> : vector<8xi32>
    %1117 = vector.multi_reduction <add>, %1116, %cst_279 [1] : vector<8x256xi32> to vector<8xi32>
    %1118 = vector.shape_cast %1117 : vector<8xi32> to vector<8x1xi32>
    %1119 = vector.broadcast %c212_i32 : i32 to vector<8x1xi32>
    %1120 = arith.cmpi sge, %1118, %1119 : vector<8x1xi32>
    %1121 = arith.select %1113, %1097, %1081 : vector<8x1xi1>, vector<8x1xi32>
    %c1_i32_280 = arith.constant 1 : i32
    %1122 = vector.broadcast %c1_i32_280 : i32 to vector<8x1xi32>
    %1123 = arith.addi %1097, %1122 : vector<8x1xi32>
    %1124 = arith.select %1113, %1084, %1123 : vector<8x1xi1>, vector<8x1xi32>
    %1125 = arith.select %1120, %1106, %1085 : vector<8x1xi1>, vector<8x1xi32>
    %c1_i32_281 = arith.constant 1 : i32
    %1126 = vector.broadcast %c1_i32_281 : i32 to vector<8x1xi32>
    %1127 = arith.addi %1106, %1126 : vector<8x1xi32>
    %1128 = arith.select %1120, %1088, %1127 : vector<8x1xi1>, vector<8x1xi32>
    %c28_i32 = arith.constant 28 : i32
    %c1_i32_282 = arith.constant 1 : i32
    %1129 = vector.broadcast %c1_i32_282 : i32 to vector<8x1xi32>
    %1130 = arith.shrsi %1124, %1129 : vector<8x1xi32>
    %c1_i32_283 = arith.constant 1 : i32
    %1131 = vector.broadcast %c1_i32_283 : i32 to vector<8x1xi32>
    %1132 = arith.shrsi %1121, %1131 : vector<8x1xi32>
    %1133 = arith.addi %1130, %1132 : vector<8x1xi32>
    %1134 = arith.andi %1124, %1121 : vector<8x1xi32>
    %c1_i32_284 = arith.constant 1 : i32
    %1135 = vector.broadcast %c1_i32_284 : i32 to vector<8x1xi32>
    %1136 = arith.andi %1134, %1135 : vector<8x1xi32>
    %1137 = arith.addi %1133, %1136 : vector<8x1xi32>
    %c1_i32_285 = arith.constant 1 : i32
    %1138 = vector.broadcast %c1_i32_285 : i32 to vector<8x1xi32>
    %1139 = arith.shrsi %1128, %1138 : vector<8x1xi32>
    %c1_i32_286 = arith.constant 1 : i32
    %1140 = vector.broadcast %c1_i32_286 : i32 to vector<8x1xi32>
    %1141 = arith.shrsi %1125, %1140 : vector<8x1xi32>
    %1142 = arith.addi %1139, %1141 : vector<8x1xi32>
    %1143 = arith.andi %1128, %1125 : vector<8x1xi32>
    %c1_i32_287 = arith.constant 1 : i32
    %1144 = vector.broadcast %c1_i32_287 : i32 to vector<8x1xi32>
    %1145 = arith.andi %1143, %1144 : vector<8x1xi32>
    %1146 = arith.addi %1142, %1145 : vector<8x1xi32>
    %1147 = vector.broadcast %1137 : vector<8x1xi32> to vector<8x256xi32>
    %1148 = arith.cmpi sle, %6, %1147 : vector<8x256xi32>
    %1149 = arith.extui %1148 : vector<8x256xi1> to vector<8x256xi32>
    %cst_288 = arith.constant dense<0> : vector<8xi32>
    %1150 = vector.multi_reduction <add>, %1149, %cst_288 [1] : vector<8x256xi32> to vector<8xi32>
    %1151 = vector.shape_cast %1150 : vector<8xi32> to vector<8x1xi32>
    %1152 = vector.broadcast %c207_i32 : i32 to vector<8x1xi32>
    %1153 = arith.cmpi sge, %1151, %1152 : vector<8x1xi32>
    %1154 = vector.broadcast %1146 : vector<8x1xi32> to vector<8x256xi32>
    %1155 = arith.cmpi sle, %6, %1154 : vector<8x256xi32>
    %1156 = arith.extui %1155 : vector<8x256xi1> to vector<8x256xi32>
    %cst_289 = arith.constant dense<0> : vector<8xi32>
    %1157 = vector.multi_reduction <add>, %1156, %cst_289 [1] : vector<8x256xi32> to vector<8xi32>
    %1158 = vector.shape_cast %1157 : vector<8xi32> to vector<8x1xi32>
    %1159 = vector.broadcast %c212_i32 : i32 to vector<8x1xi32>
    %1160 = arith.cmpi sge, %1158, %1159 : vector<8x1xi32>
    %1161 = arith.select %1153, %1137, %1121 : vector<8x1xi1>, vector<8x1xi32>
    %c1_i32_290 = arith.constant 1 : i32
    %1162 = vector.broadcast %c1_i32_290 : i32 to vector<8x1xi32>
    %1163 = arith.addi %1137, %1162 : vector<8x1xi32>
    %1164 = arith.select %1153, %1124, %1163 : vector<8x1xi1>, vector<8x1xi32>
    %1165 = arith.select %1160, %1146, %1125 : vector<8x1xi1>, vector<8x1xi32>
    %c1_i32_291 = arith.constant 1 : i32
    %1166 = vector.broadcast %c1_i32_291 : i32 to vector<8x1xi32>
    %1167 = arith.addi %1146, %1166 : vector<8x1xi32>
    %1168 = arith.select %1160, %1128, %1167 : vector<8x1xi1>, vector<8x1xi32>
    %c29_i32 = arith.constant 29 : i32
    %c1_i32_292 = arith.constant 1 : i32
    %1169 = vector.broadcast %c1_i32_292 : i32 to vector<8x1xi32>
    %1170 = arith.shrsi %1164, %1169 : vector<8x1xi32>
    %c1_i32_293 = arith.constant 1 : i32
    %1171 = vector.broadcast %c1_i32_293 : i32 to vector<8x1xi32>
    %1172 = arith.shrsi %1161, %1171 : vector<8x1xi32>
    %1173 = arith.addi %1170, %1172 : vector<8x1xi32>
    %1174 = arith.andi %1164, %1161 : vector<8x1xi32>
    %c1_i32_294 = arith.constant 1 : i32
    %1175 = vector.broadcast %c1_i32_294 : i32 to vector<8x1xi32>
    %1176 = arith.andi %1174, %1175 : vector<8x1xi32>
    %1177 = arith.addi %1173, %1176 : vector<8x1xi32>
    %c1_i32_295 = arith.constant 1 : i32
    %1178 = vector.broadcast %c1_i32_295 : i32 to vector<8x1xi32>
    %1179 = arith.shrsi %1168, %1178 : vector<8x1xi32>
    %c1_i32_296 = arith.constant 1 : i32
    %1180 = vector.broadcast %c1_i32_296 : i32 to vector<8x1xi32>
    %1181 = arith.shrsi %1165, %1180 : vector<8x1xi32>
    %1182 = arith.addi %1179, %1181 : vector<8x1xi32>
    %1183 = arith.andi %1168, %1165 : vector<8x1xi32>
    %c1_i32_297 = arith.constant 1 : i32
    %1184 = vector.broadcast %c1_i32_297 : i32 to vector<8x1xi32>
    %1185 = arith.andi %1183, %1184 : vector<8x1xi32>
    %1186 = arith.addi %1182, %1185 : vector<8x1xi32>
    %1187 = vector.broadcast %1177 : vector<8x1xi32> to vector<8x256xi32>
    %1188 = arith.cmpi sle, %6, %1187 : vector<8x256xi32>
    %1189 = arith.extui %1188 : vector<8x256xi1> to vector<8x256xi32>
    %cst_298 = arith.constant dense<0> : vector<8xi32>
    %1190 = vector.multi_reduction <add>, %1189, %cst_298 [1] : vector<8x256xi32> to vector<8xi32>
    %1191 = vector.shape_cast %1190 : vector<8xi32> to vector<8x1xi32>
    %1192 = vector.broadcast %c207_i32 : i32 to vector<8x1xi32>
    %1193 = arith.cmpi sge, %1191, %1192 : vector<8x1xi32>
    %1194 = vector.broadcast %1186 : vector<8x1xi32> to vector<8x256xi32>
    %1195 = arith.cmpi sle, %6, %1194 : vector<8x256xi32>
    %1196 = arith.extui %1195 : vector<8x256xi1> to vector<8x256xi32>
    %cst_299 = arith.constant dense<0> : vector<8xi32>
    %1197 = vector.multi_reduction <add>, %1196, %cst_299 [1] : vector<8x256xi32> to vector<8xi32>
    %1198 = vector.shape_cast %1197 : vector<8xi32> to vector<8x1xi32>
    %1199 = vector.broadcast %c212_i32 : i32 to vector<8x1xi32>
    %1200 = arith.cmpi sge, %1198, %1199 : vector<8x1xi32>
    %1201 = arith.select %1193, %1177, %1161 : vector<8x1xi1>, vector<8x1xi32>
    %c1_i32_300 = arith.constant 1 : i32
    %1202 = vector.broadcast %c1_i32_300 : i32 to vector<8x1xi32>
    %1203 = arith.addi %1177, %1202 : vector<8x1xi32>
    %1204 = arith.select %1193, %1164, %1203 : vector<8x1xi1>, vector<8x1xi32>
    %1205 = arith.select %1200, %1186, %1165 : vector<8x1xi1>, vector<8x1xi32>
    %c1_i32_301 = arith.constant 1 : i32
    %1206 = vector.broadcast %c1_i32_301 : i32 to vector<8x1xi32>
    %1207 = arith.addi %1186, %1206 : vector<8x1xi32>
    %1208 = arith.select %1200, %1168, %1207 : vector<8x1xi1>, vector<8x1xi32>
    %c30_i32 = arith.constant 30 : i32
    %c1_i32_302 = arith.constant 1 : i32
    %1209 = vector.broadcast %c1_i32_302 : i32 to vector<8x1xi32>
    %1210 = arith.shrsi %1204, %1209 : vector<8x1xi32>
    %c1_i32_303 = arith.constant 1 : i32
    %1211 = vector.broadcast %c1_i32_303 : i32 to vector<8x1xi32>
    %1212 = arith.shrsi %1201, %1211 : vector<8x1xi32>
    %1213 = arith.addi %1210, %1212 : vector<8x1xi32>
    %1214 = arith.andi %1204, %1201 : vector<8x1xi32>
    %c1_i32_304 = arith.constant 1 : i32
    %1215 = vector.broadcast %c1_i32_304 : i32 to vector<8x1xi32>
    %1216 = arith.andi %1214, %1215 : vector<8x1xi32>
    %1217 = arith.addi %1213, %1216 : vector<8x1xi32>
    %c1_i32_305 = arith.constant 1 : i32
    %1218 = vector.broadcast %c1_i32_305 : i32 to vector<8x1xi32>
    %1219 = arith.shrsi %1208, %1218 : vector<8x1xi32>
    %c1_i32_306 = arith.constant 1 : i32
    %1220 = vector.broadcast %c1_i32_306 : i32 to vector<8x1xi32>
    %1221 = arith.shrsi %1205, %1220 : vector<8x1xi32>
    %1222 = arith.addi %1219, %1221 : vector<8x1xi32>
    %1223 = arith.andi %1208, %1205 : vector<8x1xi32>
    %c1_i32_307 = arith.constant 1 : i32
    %1224 = vector.broadcast %c1_i32_307 : i32 to vector<8x1xi32>
    %1225 = arith.andi %1223, %1224 : vector<8x1xi32>
    %1226 = arith.addi %1222, %1225 : vector<8x1xi32>
    %1227 = vector.broadcast %1217 : vector<8x1xi32> to vector<8x256xi32>
    %1228 = arith.cmpi sle, %6, %1227 : vector<8x256xi32>
    %1229 = arith.extui %1228 : vector<8x256xi1> to vector<8x256xi32>
    %cst_308 = arith.constant dense<0> : vector<8xi32>
    %1230 = vector.multi_reduction <add>, %1229, %cst_308 [1] : vector<8x256xi32> to vector<8xi32>
    %1231 = vector.shape_cast %1230 : vector<8xi32> to vector<8x1xi32>
    %1232 = vector.broadcast %c207_i32 : i32 to vector<8x1xi32>
    %1233 = arith.cmpi sge, %1231, %1232 : vector<8x1xi32>
    %1234 = vector.broadcast %1226 : vector<8x1xi32> to vector<8x256xi32>
    %1235 = arith.cmpi sle, %6, %1234 : vector<8x256xi32>
    %1236 = arith.extui %1235 : vector<8x256xi1> to vector<8x256xi32>
    %cst_309 = arith.constant dense<0> : vector<8xi32>
    %1237 = vector.multi_reduction <add>, %1236, %cst_309 [1] : vector<8x256xi32> to vector<8xi32>
    %1238 = vector.shape_cast %1237 : vector<8xi32> to vector<8x1xi32>
    %1239 = vector.broadcast %c212_i32 : i32 to vector<8x1xi32>
    %1240 = arith.cmpi sge, %1238, %1239 : vector<8x1xi32>
    %1241 = arith.select %1233, %1217, %1201 : vector<8x1xi1>, vector<8x1xi32>
    %c1_i32_310 = arith.constant 1 : i32
    %1242 = vector.broadcast %c1_i32_310 : i32 to vector<8x1xi32>
    %1243 = arith.addi %1217, %1242 : vector<8x1xi32>
    %1244 = arith.select %1233, %1204, %1243 : vector<8x1xi1>, vector<8x1xi32>
    %1245 = arith.select %1240, %1226, %1205 : vector<8x1xi1>, vector<8x1xi32>
    %c1_i32_311 = arith.constant 1 : i32
    %1246 = vector.broadcast %c1_i32_311 : i32 to vector<8x1xi32>
    %1247 = arith.addi %1226, %1246 : vector<8x1xi32>
    %1248 = arith.select %1240, %1208, %1247 : vector<8x1xi1>, vector<8x1xi32>
    %c31_i32 = arith.constant 31 : i32
    %c1_i32_312 = arith.constant 1 : i32
    %1249 = vector.broadcast %c1_i32_312 : i32 to vector<8x1xi32>
    %1250 = arith.shrsi %1244, %1249 : vector<8x1xi32>
    %c1_i32_313 = arith.constant 1 : i32
    %1251 = vector.broadcast %c1_i32_313 : i32 to vector<8x1xi32>
    %1252 = arith.shrsi %1241, %1251 : vector<8x1xi32>
    %1253 = arith.addi %1250, %1252 : vector<8x1xi32>
    %1254 = arith.andi %1244, %1241 : vector<8x1xi32>
    %c1_i32_314 = arith.constant 1 : i32
    %1255 = vector.broadcast %c1_i32_314 : i32 to vector<8x1xi32>
    %1256 = arith.andi %1254, %1255 : vector<8x1xi32>
    %1257 = arith.addi %1253, %1256 : vector<8x1xi32>
    %c1_i32_315 = arith.constant 1 : i32
    %1258 = vector.broadcast %c1_i32_315 : i32 to vector<8x1xi32>
    %1259 = arith.shrsi %1248, %1258 : vector<8x1xi32>
    %c1_i32_316 = arith.constant 1 : i32
    %1260 = vector.broadcast %c1_i32_316 : i32 to vector<8x1xi32>
    %1261 = arith.shrsi %1245, %1260 : vector<8x1xi32>
    %1262 = arith.addi %1259, %1261 : vector<8x1xi32>
    %1263 = arith.andi %1248, %1245 : vector<8x1xi32>
    %c1_i32_317 = arith.constant 1 : i32
    %1264 = vector.broadcast %c1_i32_317 : i32 to vector<8x1xi32>
    %1265 = arith.andi %1263, %1264 : vector<8x1xi32>
    %1266 = arith.addi %1262, %1265 : vector<8x1xi32>
    %1267 = vector.broadcast %1257 : vector<8x1xi32> to vector<8x256xi32>
    %1268 = arith.cmpi sle, %6, %1267 : vector<8x256xi32>
    %1269 = arith.extui %1268 : vector<8x256xi1> to vector<8x256xi32>
    %cst_318 = arith.constant dense<0> : vector<8xi32>
    %1270 = vector.multi_reduction <add>, %1269, %cst_318 [1] : vector<8x256xi32> to vector<8xi32>
    %1271 = vector.shape_cast %1270 : vector<8xi32> to vector<8x1xi32>
    %1272 = vector.broadcast %c207_i32 : i32 to vector<8x1xi32>
    %1273 = arith.cmpi sge, %1271, %1272 : vector<8x1xi32>
    %1274 = vector.broadcast %1266 : vector<8x1xi32> to vector<8x256xi32>
    %1275 = arith.cmpi sle, %6, %1274 : vector<8x256xi32>
    %1276 = arith.extui %1275 : vector<8x256xi1> to vector<8x256xi32>
    %cst_319 = arith.constant dense<0> : vector<8xi32>
    %1277 = vector.multi_reduction <add>, %1276, %cst_319 [1] : vector<8x256xi32> to vector<8xi32>
    %1278 = vector.shape_cast %1277 : vector<8xi32> to vector<8x1xi32>
    %1279 = vector.broadcast %c212_i32 : i32 to vector<8x1xi32>
    %1280 = arith.cmpi sge, %1278, %1279 : vector<8x1xi32>
    %1281 = arith.select %1273, %1257, %1241 : vector<8x1xi1>, vector<8x1xi32>
    %c1_i32_320 = arith.constant 1 : i32
    %1282 = vector.broadcast %c1_i32_320 : i32 to vector<8x1xi32>
    %1283 = arith.addi %1257, %1282 : vector<8x1xi32>
    %1284 = arith.select %1273, %1244, %1283 : vector<8x1xi1>, vector<8x1xi32>
    %1285 = arith.select %1280, %1266, %1245 : vector<8x1xi1>, vector<8x1xi32>
    %c1_i32_321 = arith.constant 1 : i32
    %1286 = vector.broadcast %c1_i32_321 : i32 to vector<8x1xi32>
    %1287 = arith.addi %1266, %1286 : vector<8x1xi32>
    %1288 = arith.select %1280, %1248, %1287 : vector<8x1xi1>, vector<8x1xi32>
    %c0_i32_322 = arith.constant 0 : i32
    %1289 = vector.broadcast %c0_i32_322 : i32 to vector<8x1xi32>
    %1290 = arith.cmpi sge, %1284, %1289 : vector<8x1xi32>
    %c2147483647_i32_323 = arith.constant 2147483647 : i32
    %1291 = vector.broadcast %c2147483647_i32_323 : i32 to vector<8x1xi32>
    %1292 = arith.xori %1284, %1291 : vector<8x1xi32>
    %1293 = arith.select %1290, %1284, %1292 : vector<8x1xi1>, vector<8x1xi32>
    %1294 = tpu.bitcast %1293 : vector<8x1xi32> -> vector<8x1xf32>
    %c0_i32_324 = arith.constant 0 : i32
    %1295 = vector.broadcast %c0_i32_324 : i32 to vector<8x1xi32>
    %1296 = arith.cmpi sge, %1288, %1295 : vector<8x1xi32>
    %c2147483647_i32_325 = arith.constant 2147483647 : i32
    %1297 = vector.broadcast %c2147483647_i32_325 : i32 to vector<8x1xi32>
    %1298 = arith.xori %1288, %1297 : vector<8x1xi32>
    %1299 = arith.select %1296, %1288, %1298 : vector<8x1xi1>, vector<8x1xi32>
    %1300 = tpu.bitcast %1299 : vector<8x1xi32> -> vector<8x1xf32>
    %1301 = vector.broadcast %1294 : vector<8x1xf32> to vector<8x256xf32>
    %1302 = arith.subf %0, %1301 : vector<8x256xf32>
    %cst_326 = arith.constant 0.000000e+00 : f32
    %1303 = vector.broadcast %cst_326 : f32 to vector<8x256xf32>
    %1304 = arith.maximumf %1302, %1303 : vector<8x256xf32>
    %1305 = vector.broadcast %1300 : vector<8x1xf32> to vector<8x256xf32>
    %1306 = arith.subf %0, %1305 : vector<8x256xf32>
    %cst_327 = arith.constant 0.000000e+00 : f32
    %1307 = vector.broadcast %cst_327 : f32 to vector<8x256xf32>
    %1308 = arith.maximumf %1306, %1307 : vector<8x256xf32>
    %1309 = arith.subf %1308, %1304 : vector<8x256xf32>
    %cst_328 = arith.constant 0.817574441 : f32
    %1310 = vector.broadcast %cst_328 : f32 to vector<8x256xf32>
    %1311 = arith.mulf %1309, %1310 : vector<8x256xf32>
    %1312 = arith.addf %1304, %1311 : vector<8x256xf32>
    %c0_329 = arith.constant 0 : index
    %c0_330 = arith.constant 0 : index
    %1313 = vector.load %arg2[%c0_329, %c0_330] : memref<8x256xf32, #tpu.memory_space<vmem>>, vector<8x256xf32>
    tpu.vector_store %arg2[%c0_329, %c0_330], %1312 {strides = array<i32>} : memref<8x256xf32, #tpu.memory_space<vmem>>, vector<8x256xf32>,
    return
  }
  func.func @transform_0(%arg0: i32) -> (i32, i32) {
    %c0_i32 = arith.constant 0 : i32
    %c0_i32_0 = arith.constant 0 : i32
    return %arg0, %c0_i32 : i32, i32
  }
  func.func @transform_1(%arg0: i32) -> (i32, i32) {
    %c0_i32 = arith.constant 0 : i32
    %c0_i32_0 = arith.constant 0 : i32
    return %arg0, %c0_i32 : i32, i32
  }
}

</mosaic_0001>

<bundles_post_ra>
// kernel: tpu_custom_call.1
= control target key start
LH: loop header
LB: loop body
LE: loop exit
PB: predicated region body
PF: predicated region fallthrough
CT: control target
= control target key end

     0   :  { %6 = vsyncpa [#allocation3], 0  ;;  %s2093_s0 = inlined_call_operand.hbm [shape: f32[8,256], index: 0, kind: input, shape index: {}]   ;;  %s2094_s1 = inlined_call_operand.hbm [shape: f32[8,256], index: 1, kind: output, shape index: {}]  }
   0x1   :  { %7 = vsyncpa [#allocation4], 0  ;;  %s1815_s6 = smov [#allocation2]  }
   0x2   :  { %s14_s7 = sshll.u32 %s1815_s6, 4  ;;  %s15_s7 = int_to_ptr.vmem [resolvable:$true] %s14_s7 }
   0x3   :  { %s1779_s8 = scalar_lea.vmem %s15_s7, 256  ;;  %p1784_p1 = scmp.lt.s32.totalorder %s15_s7, %s15_s7 }
   0x4   :  { %p1780_p0 = scmp.ne.s32.totalorder %s15_s7, %s1779_s8  ;;  %p1785_p2 = scmp.lt.s32.totalorder %s1779_s8, %s1779_s8 }
   0x6   :  { %p1786_p3 = por %p1785_p2, %p1784_p1 }
   0x8   :  { %p1787_p4 = pnand %p1786_p3, %p1780_p0 }
   0xa   :  { %1790 = shalt.err (!%p1787_p4)
}
   0xb   :  { %17 = dma.hbm_to_vmem [thread:$0]  %s2093_s0, 256, %s15_s7, [#allocation3]  }
   0xc   :  { %1811 = dma.done.wait [#allocation3], 256  }
   0xd   :  { %1812 = vsyncadd [#allocation3], 4294967040  ;;  %v21_v0 = vld [vmem:[#allocation2] sm:$0xff]  ;;  %v22_v1 = vld [vmem:[#allocation2 + $0x8] sm:$0xff]  ;;  %v1816_v6 = vmov 0   ;;  %s1818_s0 = smov [#allocation5]  }
   0xe   :  { %vm25_vm0 = vcmp.ge.s32.totalorder %v21_v0, 0  ;;  %vm26_vm1 = vcmp.ge.s32.totalorder %v22_v1, 0  ;;  %v27_v2 = vxor.u32 2147483647, %v21_v0  ;;  %v28_v3 = vxor.u32 2147483647, %v22_v1 }
   0xf   :  { %v1817_v20 = vmov 2147483647   ;;  %s1756_s11 = sshll.u32 %s1818_s0, 4  ;;  %s1757_s11 = int_to_ptr.vmem [resolvable:$true] %s1756_s11 }
  0x10   :  { %v1832_v4 = vsel %vm25_vm0, %v21_v0, %v27_v2  ;;  %v1834_v5 = vsel %vm26_vm1, %v22_v1, %v28_v3  ;;  %s1791_s12 = scalar_lea.vmem %s1757_s11, 256  ;;  %p1796_p6 = scmp.lt.s32.totalorder %s1757_s11, %s1757_s11 }
  0x11   :  { %vm31_vm2 = vcmp.le.s32.totalorder %v1832_v4, 4294967295  ;;  %vm32_vm3 = vcmp.le.s32.totalorder %v1834_v5, 4294967295  ;;  %p1792_p5 = scmp.ne.s32.totalorder %s1757_s11, %s1791_s12  ;;  %p1797_p7 = scmp.lt.s32.totalorder %s1791_s12, %s1791_s12 }
  0x12   :  { %v33_v7 = vsel %vm31_vm2, 1, %v1816_v6  ;;  %v34_v8 = vsel %vm32_vm3, 1, %v1816_v6 }
  0x13   :  { %v35_v9 = vadd.s32 %v34_v8, %v33_v7  ;;  %p1798_p8 = por %p1797_p7, %p1796_p6 }
  0x15   :  { %v37_v10 = vshrl.u32 %v35_v9, 16  ;;  %v36_v11 = vand.u32 65535, %v35_v9  ;;  %p1799_p9 = pnand %p1798_p8, %p1792_p5 }
  0x17   :  { %v39_v12 = vcvt.s32.f32 %v37_v10  ;;  %v38_v13 = vcvt.s32.f32 %v36_v11 }
  0x19   :  { %42 = vadd.xlane.f32.xlu0 %v39_v12 }
  0x1d   :  { %40 = vadd.xlane.f32.xlu0 %v38_v13 }
  0xa2   :  { %v43_v14 = vpop.xlane.xlu0 %42 }
  0xa3   :  { %v45_v15 = vcvt.f32.s32 %v43_v14 }
  0xa5   :  { %v46_v17 = vshll.u32 %v45_v15, 16 }
  0xa6   :  { %v41_v16 = vpop.xlane.xlu0 %40 }
  0xa7   :  { %v44_v18 = vcvt.f32.s32 %v41_v16 }
  0xa9   :  { %v47_v19 = vadd.s32 %v46_v17, %v44_v18 }
  0xab   :  { %vm48_vm4 = vcmp.ge.s32.totalorder %v47_v19, 207  ;;  %vm49_vm5 = vcmp.ge.s32.totalorder %v47_v19, 212 }
  0xac   :  { %v50_v21 = vsel %vm48_vm4, 4294967295, %v1817_v20  ;;  %v51_v22 = vsel %vm48_vm4, 2147483648, %v1816_v6  ;;  %v52_v23 = vsel %vm49_vm5, 4294967295, %v1817_v20  ;;  %v53_v24 = vsel %vm49_vm5, 2147483648, %v1816_v6 }
  0xad   :  { %v54_v25 = vshra.s32 %v51_v22, 1  ;;  %v55_v26 = vshra.s32 %v50_v21, 1  ;;  %v57_v27 = vand.u32 %v51_v22, %v50_v21  ;;  %v60_v28 = vshra.s32 %v53_v24, 1 }
  0xae   :  { %v61_v29 = vshra.s32 %v52_v23, 1  ;;  %v63_v30 = vand.u32 %v53_v24, %v52_v23 }
  0xaf   :  { %v56_v31 = vadd.s32 %v55_v26, %v54_v25  ;;  %v58_v32 = vand.u32 1, %v57_v27 }
  0xb0   :  { %v62_v33 = vadd.s32 %v61_v29, %v60_v28  ;;  %v64_v34 = vand.u32 1, %v63_v30 }
  0xb1   :  { %v59_v35 = vadd.s32 %v58_v32, %v56_v31 }
  0xb2   :  { %v65_v36 = vadd.s32 %v64_v34, %v62_v33 }
  0xb3   :  { %vm66_vm6 = vcmp.le.s32.totalorder %v1832_v4, %v59_v35  ;;  %vm67_vm7 = vcmp.le.s32.totalorder %v1834_v5, %v59_v35  ;;  %v103_v59 = vadd.s32 1, %v59_v35 }
  0xb4   :  { %v68_v37 = vsel %vm66_vm6, 1, %v1816_v6  ;;  %v69_v38 = vsel %vm67_vm7, 1, %v1816_v6  ;;  %vm84_vm8 = vcmp.le.s32.totalorder %v1832_v4, %v65_v36  ;;  %vm85_vm9 = vcmp.le.s32.totalorder %v1834_v5, %v65_v36 }
  0xb5   :  { %v70_v39 = vadd.s32 %v69_v38, %v68_v37  ;;  %v86_v40 = vsel %vm84_vm8, 1, %v1816_v6  ;;  %v87_v41 = vsel %vm85_vm9, 1, %v1816_v6  ;;  %v106_v10 = vadd.s32 1, %v65_v36 }
  0xb6   :  { %v88_v42 = vadd.s32 %v87_v41, %v86_v40 }
  0xb7   :  { %v72_v43 = vshrl.u32 %v70_v39, 16  ;;  %v71_v44 = vand.u32 65535, %v70_v39 }
  0xb8   :  { %v90_v47 = vshrl.u32 %v88_v42, 16  ;;  %v89_v49 = vand.u32 65535, %v88_v42 }
  0xb9   :  { %v74_v45 = vcvt.s32.f32 %v72_v43  ;;  %v73_v46 = vcvt.s32.f32 %v71_v44 }
  0xba   :  { %v92_v48 = vcvt.s32.f32 %v90_v47  ;;  %v91_v50 = vcvt.s32.f32 %v89_v49 }
  0xbb   :  { %77 = vadd.xlane.f32.xlu1 %v74_v45  ;;  %75 = vadd.xlane.f32.xlu0 %v73_v46 }
  0xbf   :  { %95 = vadd.xlane.f32.xlu1 %v92_v48 }
  0xc3   :  { %93 = vadd.xlane.f32.xlu1 %v91_v50 }
 0x144   :  { %v78_v51 = vpop.xlane.xlu1 %77  ;;  %v76_v52 = vpop.xlane.xlu0 %75 }
 0x145   :  { %v80_v53 = vcvt.f32.s32 %v78_v51  ;;  %v79_v55 = vcvt.f32.s32 %v76_v52 }
 0x147   :  { %v81_v54 = vshll.u32 %v80_v53, 16 }
 0x148   :  { %v96_v56 = vpop.xlane.xlu1 %95 }
 0x149   :  { %v82_v57 = vadd.s32 %v81_v54, %v79_v55  ;;  %v98_v58 = vcvt.f32.s32 %v96_v56 }
 0x14b   :  { %vm83_vm10 = vcmp.ge.s32.totalorder %v82_v57, 207  ;;  %v99_v62 = vshll.u32 %v98_v58, 16 }
 0x14c   :  { %v102_v60 = vsel %vm83_vm10, %v59_v35, %v50_v21  ;;  %v104_v61 = vsel %vm83_vm10, %v51_v22, %v103_v59  ;;  %v94_v63 = vpop.xlane.xlu1 %93 }
 0x14d   :  { %v108_v0 = vshra.s32 %v104_v61, 1  ;;  %v109_v1 = vshra.s32 %v102_v60, 1  ;;  %v111_v2 = vand.u32 %v104_v61, %v102_v60  ;;  %v97_v3 = vcvt.f32.s32 %v94_v63 }
 0x14f   :  { %v110_v7 = vadd.s32 %v109_v1, %v108_v0  ;;  %v112_v8 = vand.u32 1, %v111_v2  ;;  %v100_v9 = vadd.s32 %v99_v62, %v97_v3 }
 0x151   :  { %v113_v11 = vadd.s32 %v112_v8, %v110_v7  ;;  %vm101_vm11 = vcmp.ge.s32.totalorder %v100_v9, 212 }
 0x152   :  { %v105_v12 = vsel %vm101_vm11, %v65_v36, %v52_v23  ;;  %v107_v13 = vsel %vm101_vm11, %v53_v24, %v106_v10 }
 0x153   :  { %v114_v14 = vshra.s32 %v107_v13, 1  ;;  %v115_v15 = vshra.s32 %v105_v12, 1  ;;  %v117_v16 = vand.u32 %v107_v13, %v105_v12  ;;  %vm120_vm12 = vcmp.le.s32.totalorder %v1832_v4, %v113_v11 }
 0x154   :  { %vm121_vm13 = vcmp.le.s32.totalorder %v1834_v5, %v113_v11  ;;  %v122_v17 = vsel %vm120_vm12, 1, %v1816_v6  ;;  %v157_v42 = vadd.s32 1, %v113_v11 }
 0x155   :  { %v116_v18 = vadd.s32 %v115_v15, %v114_v14  ;;  %v118_v19 = vand.u32 1, %v117_v16  ;;  %v123_v20 = vsel %vm121_vm13, 1, %v1816_v6 }
 0x156   :  { %v124_v21 = vadd.s32 %v123_v20, %v122_v17 }
 0x157   :  { %v119_v22 = vadd.s32 %v118_v19, %v116_v18 }
 0x158   :  { %v126_v25 = vshrl.u32 %v124_v21, 16  ;;  %v125_v24 = vand.u32 65535, %v124_v21 }
 0x159   :  { %vm138_vm14 = vcmp.le.s32.totalorder %v1832_v4, %v119_v22  ;;  %vm139_vm15 = vcmp.le.s32.totalorder %v1834_v5, %v119_v22  ;;  %v160_v54 = vadd.s32 1, %v119_v22 }
 0x15a   :  { %v128_v23 = vcvt.s32.f32 %v126_v25  ;;  %v140_v26 = vsel %vm138_vm14, 1, %v1816_v6  ;;  %v141_v27 = vsel %vm139_vm15, 1, %v1816_v6  ;;  %v127_v30 = vcvt.s32.f32 %v125_v24 }
 0x15b   :  { %v142_v28 = vadd.s32 %v141_v27, %v140_v26 }
 0x15c   :  { %131 = vadd.xlane.f32.xlu0 %v128_v23 }
 0x15d   :  { %v144_v29 = vshrl.u32 %v142_v28, 16  ;;  %v143_v32 = vand.u32 65535, %v142_v28 }
 0x15f   :  { %v146_v31 = vcvt.s32.f32 %v144_v29  ;;  %v145_v33 = vcvt.s32.f32 %v143_v32 }
 0x160   :  { %129 = vadd.xlane.f32.xlu0 %v127_v30 }
 0x161   :  { %149 = vadd.xlane.f32.xlu1 %v146_v31 }
 0x165   :  { %147 = vadd.xlane.f32.xlu1 %v145_v33 }
 0x1e5   :  { %v132_v34 = vpop.xlane.xlu0 %131 }
 0x1e6   :  { %v134_v35 = vcvt.f32.s32 %v132_v34 }
 0x1e8   :  { %v135_v37 = vshll.u32 %v134_v35, 16 }
 0x1e9   :  { %v130_v36 = vpop.xlane.xlu0 %129 }
 0x1ea   :  { %v133_v38 = vcvt.f32.s32 %v130_v36  ;;  %v150_v39 = vpop.xlane.xlu1 %149 }
 0x1eb   :  { %v152_v40 = vcvt.f32.s32 %v150_v39 }
 0x1ec   :  { %v136_v41 = vadd.s32 %v135_v37, %v133_v38 }
 0x1ed   :  { %v153_v46 = vshll.u32 %v152_v40, 16 }
 0x1ee   :  { %vm137_vm0 = vcmp.ge.s32.totalorder %v136_v41, 207  ;;  %v148_v43 = vpop.xlane.xlu1 %147 }
 0x1ef   :  { %v156_v44 = vsel %vm137_vm0, %v113_v11, %v102_v60  ;;  %v158_v45 = vsel %vm137_vm0, %v104_v61, %v157_v42  ;;  %v151_v47 = vcvt.f32.s32 %v148_v43 }
 0x1f0   :  { %v162_v48 = vshra.s32 %v158_v45, 1  ;;  %v163_v49 = vshra.s32 %v156_v44, 1  ;;  %v165_v50 = vand.u32 %v158_v45, %v156_v44 }
 0x1f1   :  { %v154_v51 = vadd.s32 %v153_v46, %v151_v47 }
 0x1f2   :  { %v164_v52 = vadd.s32 %v163_v49, %v162_v48  ;;  %v166_v53 = vand.u32 1, %v165_v50 }
 0x1f3   :  { %vm155_vm1 = vcmp.ge.s32.totalorder %v154_v51, 212 }
 0x1f4   :  { %v167_v55 = vadd.s32 %v166_v53, %v164_v52  ;;  %v159_v56 = vsel %vm155_vm1, %v119_v22, %v105_v12  ;;  %v161_v57 = vsel %vm155_vm1, %v107_v13, %v160_v54 }
 0x1f5   :  { %v168_v58 = vshra.s32 %v161_v57, 1  ;;  %v169_v59 = vshra.s32 %v159_v56, 1  ;;  %v171_v62 = vand.u32 %v161_v57, %v159_v56 }
 0x1f6   :  { %vm174_vm2 = vcmp.le.s32.totalorder %v1832_v4, %v167_v55  ;;  %vm175_vm3 = vcmp.le.s32.totalorder %v1834_v5, %v167_v55  ;;  %v211_v24 = vadd.s32 1, %v167_v55 }
 0x1f7   :  { %v170_v60 = vadd.s32 %v169_v59, %v168_v58  ;;  %v172_v61 = vand.u32 1, %v171_v62  ;;  %v176_v63 = vsel %vm174_vm2, 1, %v1816_v6  ;;  %v177_v0 = vsel %vm175_vm3, 1, %v1816_v6 }
 0x1f8   :  { %v178_v1 = vadd.s32 %v177_v0, %v176_v63 }
 0x1f9   :  { %v173_v2 = vadd.s32 %v172_v61, %v170_v60 }
 0x1fa   :  { %v180_v3 = vshrl.u32 %v178_v1, 16  ;;  %v179_v8 = vand.u32 65535, %v178_v1 }
 0x1fb   :  { %vm192_vm4 = vcmp.le.s32.totalorder %v1832_v4, %v173_v2  ;;  %vm193_vm5 = vcmp.le.s32.totalorder %v1834_v5, %v173_v2  ;;  %v214_v37 = vadd.s32 1, %v173_v2 }
 0x1fc   :  { %v182_v7 = vcvt.s32.f32 %v180_v3  ;;  %v194_v9 = vsel %vm192_vm4, 1, %v1816_v6  ;;  %v195_v10 = vsel %vm193_vm5, 1, %v1816_v6  ;;  %v181_v13 = vcvt.s32.f32 %v179_v8 }
 0x1fd   :  { %v196_v11 = vadd.s32 %v195_v10, %v194_v9 }
 0x1fe   :  { %185 = vadd.xlane.f32.xlu0 %v182_v7 }
 0x1ff   :  { %v198_v12 = vshrl.u32 %v196_v11, 16  ;;  %v197_v15 = vand.u32 65535, %v196_v11 }
 0x201   :  { %v200_v14 = vcvt.s32.f32 %v198_v12  ;;  %v199_v16 = vcvt.s32.f32 %v197_v15 }
 0x202   :  { %183 = vadd.xlane.f32.xlu0 %v181_v13 }
 0x203   :  { %203 = vadd.xlane.f32.xlu1 %v200_v14 }
 0x207   :  { %201 = vadd.xlane.f32.xlu1 %v199_v16 }
 0x287   :  { %v186_v17 = vpop.xlane.xlu0 %185 }
 0x288   :  { %v188_v18 = vcvt.f32.s32 %v186_v17 }
 0x28a   :  { %v189_v20 = vshll.u32 %v188_v18, 16 }
 0x28b   :  { %v184_v19 = vpop.xlane.xlu0 %183 }
 0x28c   :  { %v187_v21 = vcvt.f32.s32 %v184_v19  ;;  %v204_v22 = vpop.xlane.xlu1 %203 }
 0x28d   :  { %v206_v25 = vcvt.f32.s32 %v204_v22 }
 0x28e   :  { %v190_v23 = vadd.s32 %v189_v20, %v187_v21 }
 0x28f   :  { %v207_v29 = vshll.u32 %v206_v25, 16 }
 0x290   :  { %vm191_vm6 = vcmp.ge.s32.totalorder %v190_v23, 207  ;;  %v202_v26 = vpop.xlane.xlu1 %201 }
 0x291   :  { %v210_v27 = vsel %vm191_vm6, %v167_v55, %v156_v44  ;;  %v212_v28 = vsel %vm191_vm6, %v158_v45, %v211_v24  ;;  %v205_v30 = vcvt.f32.s32 %v202_v26 }
 0x292   :  { %v216_v31 = vshra.s32 %v212_v28, 1  ;;  %v217_v32 = vshra.s32 %v210_v27, 1  ;;  %v219_v33 = vand.u32 %v212_v28, %v210_v27 }
 0x293   :  { %v208_v34 = vadd.s32 %v207_v29, %v205_v30 }
 0x294   :  { %v218_v35 = vadd.s32 %v217_v32, %v216_v31  ;;  %v220_v36 = vand.u32 1, %v219_v33 }
 0x295   :  { %vm209_vm7 = vcmp.ge.s32.totalorder %v208_v34, 212 }
 0x296   :  { %v221_v38 = vadd.s32 %v220_v36, %v218_v35  ;;  %v213_v39 = vsel %vm209_vm7, %v173_v2, %v159_v56  ;;  %v215_v40 = vsel %vm209_vm7, %v161_v57, %v214_v37 }
 0x297   :  { %v222_v41 = vshra.s32 %v215_v40, 1  ;;  %v223_v42 = vshra.s32 %v213_v39, 1  ;;  %v225_v43 = vand.u32 %v215_v40, %v213_v39 }
 0x298   :  { %vm228_vm8 = vcmp.le.s32.totalorder %v1832_v4, %v221_v38  ;;  %vm229_vm9 = vcmp.le.s32.totalorder %v1834_v5, %v221_v38  ;;  %v265_v8 = vadd.s32 1, %v221_v38 }
 0x299   :  { %v224_v44 = vadd.s32 %v223_v42, %v222_v41  ;;  %v226_v45 = vand.u32 1, %v225_v43  ;;  %v230_v46 = vsel %vm228_vm8, 1, %v1816_v6  ;;  %v231_v47 = vsel %vm229_vm9, 1, %v1816_v6 }
 0x29a   :  { %v232_v48 = vadd.s32 %v231_v47, %v230_v46 }
 0x29b   :  { %v227_v49 = vadd.s32 %v226_v45, %v224_v44 }
 0x29c   :  { %v234_v50 = vshrl.u32 %v232_v48, 16  ;;  %v233_v52 = vand.u32 65535, %v232_v48 }
 0x29d   :  { %vm246_vm10 = vcmp.le.s32.totalorder %v1832_v4, %v227_v49  ;;  %vm247_vm11 = vcmp.le.s32.totalorder %v1834_v5, %v227_v49  ;;  %v268_v20 = vadd.s32 1, %v227_v49 }
 0x29e   :  { %v236_v51 = vcvt.s32.f32 %v234_v50  ;;  %v248_v53 = vsel %vm246_vm10, 1, %v1816_v6  ;;  %v249_v54 = vsel %vm247_vm11, 1, %v1816_v6  ;;  %v235_v57 = vcvt.s32.f32 %v233_v52 }
 0x29f   :  { %v250_v55 = vadd.s32 %v249_v54, %v248_v53 }
 0x2a0   :  { %239 = vadd.xlane.f32.xlu0 %v236_v51 }
 0x2a1   :  { %v252_v56 = vshrl.u32 %v250_v55, 16  ;;  %v251_v59 = vand.u32 65535, %v250_v55 }
 0x2a3   :  { %v254_v58 = vcvt.s32.f32 %v252_v56  ;;  %v253_v62 = vcvt.s32.f32 %v251_v59 }
 0x2a4   :  { %237 = vadd.xlane.f32.xlu0 %v235_v57 }
 0x2a5   :  { %257 = vadd.xlane.f32.xlu1 %v254_v58 }
 0x2a9   :  { %255 = vadd.xlane.f32.xlu1 %v253_v62 }
 0x329   :  { %v240_v60 = vpop.xlane.xlu0 %239 }
 0x32a   :  { %v242_v61 = vcvt.f32.s32 %v240_v60 }
 0x32c   :  { %v243_v0 = vshll.u32 %v242_v61, 16 }
 0x32d   :  { %v238_v63 = vpop.xlane.xlu0 %237 }
 0x32e   :  { %v241_v1 = vcvt.f32.s32 %v238_v63  ;;  %v258_v2 = vpop.xlane.xlu1 %257 }
 0x32f   :  { %v260_v3 = vcvt.f32.s32 %v258_v2 }
 0x330   :  { %v244_v7 = vadd.s32 %v243_v0, %v241_v1 }
 0x331   :  { %v261_v12 = vshll.u32 %v260_v3, 16 }
 0x332   :  { %vm245_vm12 = vcmp.ge.s32.totalorder %v244_v7, 207  ;;  %v256_v9 = vpop.xlane.xlu1 %255 }
 0x333   :  { %v264_v10 = vsel %vm245_vm12, %v221_v38, %v210_v27  ;;  %v266_v11 = vsel %vm245_vm12, %v212_v28, %v265_v8  ;;  %v259_v13 = vcvt.f32.s32 %v256_v9 }
 0x334   :  { %v270_v14 = vshra.s32 %v266_v11, 1  ;;  %v271_v15 = vshra.s32 %v264_v10, 1  ;;  %v273_v16 = vand.u32 %v266_v11, %v264_v10 }
 0x335   :  { %v262_v17 = vadd.s32 %v261_v12, %v259_v13 }
 0x336   :  { %v272_v18 = vadd.s32 %v271_v15, %v270_v14  ;;  %v274_v19 = vand.u32 1, %v273_v16 }
 0x337   :  { %vm263_vm13 = vcmp.ge.s32.totalorder %v262_v17, 212 }
 0x338   :  { %v275_v21 = vadd.s32 %v274_v19, %v272_v18  ;;  %v267_v22 = vsel %vm263_vm13, %v227_v49, %v213_v39  ;;  %v269_v25 = vsel %vm263_vm13, %v215_v40, %v268_v20 }
 0x339   :  { %v276_v23 = vshra.s32 %v269_v25, 1  ;;  %v277_v24 = vshra.s32 %v267_v22, 1  ;;  %v279_v26 = vand.u32 %v269_v25, %v267_v22 }
 0x33a   :  { %vm282_vm14 = vcmp.le.s32.totalorder %v1832_v4, %v275_v21  ;;  %vm283_vm15 = vcmp.le.s32.totalorder %v1834_v5, %v275_v21  ;;  %v319_v52 = vadd.s32 1, %v275_v21 }
 0x33b   :  { %v278_v27 = vadd.s32 %v277_v24, %v276_v23  ;;  %v280_v28 = vand.u32 1, %v279_v26  ;;  %v284_v29 = vsel %vm282_vm14, 1, %v1816_v6  ;;  %v285_v30 = vsel %vm283_vm15, 1, %v1816_v6 }
 0x33c   :  { %v286_v31 = vadd.s32 %v285_v30, %v284_v29 }
 0x33d   :  { %v281_v32 = vadd.s32 %v280_v28, %v278_v27 }
 0x33e   :  { %v288_v33 = vshrl.u32 %v286_v31, 16  ;;  %v287_v35 = vand.u32 65535, %v286_v31 }
 0x33f   :  { %vm300_vm0 = vcmp.le.s32.totalorder %v1832_v4, %v281_v32  ;;  %vm301_vm1 = vcmp.le.s32.totalorder %v1834_v5, %v281_v32  ;;  %v322_v0 = vadd.s32 1, %v281_v32 }
 0x340   :  { %v290_v34 = vcvt.s32.f32 %v288_v33  ;;  %v302_v36 = vsel %vm300_vm0, 1, %v1816_v6  ;;  %v303_v37 = vsel %vm301_vm1, 1, %v1816_v6  ;;  %v289_v40 = vcvt.s32.f32 %v287_v35 }
 0x341   :  { %v304_v38 = vadd.s32 %v303_v37, %v302_v36 }
 0x342   :  { %293 = vadd.xlane.f32.xlu0 %v290_v34 }
 0x343   :  { %v306_v39 = vshrl.u32 %v304_v38, 16  ;;  %v305_v42 = vand.u32 65535, %v304_v38 }
 0x345   :  { %v308_v41 = vcvt.s32.f32 %v306_v39  ;;  %v307_v43 = vcvt.s32.f32 %v305_v42 }
 0x346   :  { %291 = vadd.xlane.f32.xlu0 %v289_v40 }
 0x347   :  { %311 = vadd.xlane.f32.xlu1 %v308_v41 }
 0x34b   :  { %309 = vadd.xlane.f32.xlu1 %v307_v43 }
 0x3cb   :  { %v294_v44 = vpop.xlane.xlu0 %293 }
 0x3cc   :  { %v296_v45 = vcvt.f32.s32 %v294_v44 }
 0x3ce   :  { %v297_v47 = vshll.u32 %v296_v45, 16 }
 0x3cf   :  { %v292_v46 = vpop.xlane.xlu0 %291 }
 0x3d0   :  { %v295_v48 = vcvt.f32.s32 %v292_v46  ;;  %v312_v49 = vpop.xlane.xlu1 %311 }
 0x3d1   :  { %v314_v50 = vcvt.f32.s32 %v312_v49 }
 0x3d2   :  { %v298_v51 = vadd.s32 %v297_v47, %v295_v48 }
 0x3d3   :  { %v315_v56 = vshll.u32 %v314_v50, 16 }
 0x3d4   :  { %vm299_vm2 = vcmp.ge.s32.totalorder %v298_v51, 207  ;;  %v310_v53 = vpop.xlane.xlu1 %309 }
 0x3d5   :  { %v318_v54 = vsel %vm299_vm2, %v275_v21, %v264_v10  ;;  %v320_v55 = vsel %vm299_vm2, %v266_v11, %v319_v52  ;;  %v313_v57 = vcvt.f32.s32 %v310_v53 }
 0x3d6   :  { %v324_v58 = vshra.s32 %v320_v55, 1  ;;  %v325_v59 = vshra.s32 %v318_v54, 1  ;;  %v327_v62 = vand.u32 %v320_v55, %v318_v54 }
 0x3d7   :  { %v316_v60 = vadd.s32 %v315_v56, %v313_v57 }
 0x3d8   :  { %v326_v61 = vadd.s32 %v325_v59, %v324_v58  ;;  %v328_v63 = vand.u32 1, %v327_v62 }
 0x3d9   :  { %vm317_vm3 = vcmp.ge.s32.totalorder %v316_v60, 212 }
 0x3da   :  { %v329_v1 = vadd.s32 %v328_v63, %v326_v61  ;;  %v321_v2 = vsel %vm317_vm3, %v281_v32, %v267_v22  ;;  %v323_v3 = vsel %vm317_vm3, %v269_v25, %v322_v0 }
 0x3db   :  { %v330_v7 = vshra.s32 %v323_v3, 1  ;;  %v331_v8 = vshra.s32 %v321_v2, 1  ;;  %v333_v9 = vand.u32 %v323_v3, %v321_v2 }
 0x3dc   :  { %vm336_vm4 = vcmp.le.s32.totalorder %v1832_v4, %v329_v1  ;;  %vm337_vm5 = vcmp.le.s32.totalorder %v1834_v5, %v329_v1  ;;  %v373_v35 = vadd.s32 1, %v329_v1 }
 0x3dd   :  { %v332_v10 = vadd.s32 %v331_v8, %v330_v7  ;;  %v334_v11 = vand.u32 1, %v333_v9  ;;  %v338_v12 = vsel %vm336_vm4, 1, %v1816_v6  ;;  %v339_v13 = vsel %vm337_vm5, 1, %v1816_v6 }
 0x3de   :  { %v340_v14 = vadd.s32 %v339_v13, %v338_v12 }
 0x3df   :  { %v335_v15 = vadd.s32 %v334_v11, %v332_v10 }
 0x3e0   :  { %v342_v16 = vshrl.u32 %v340_v14, 16  ;;  %v341_v18 = vand.u32 65535, %v340_v14 }
 0x3e1   :  { %vm354_vm6 = vcmp.le.s32.totalorder %v1832_v4, %v335_v15  ;;  %vm355_vm7 = vcmp.le.s32.totalorder %v1834_v5, %v335_v15  ;;  %v376_v47 = vadd.s32 1, %v335_v15 }
 0x3e2   :  { %v344_v17 = vcvt.s32.f32 %v342_v16  ;;  %v356_v19 = vsel %vm354_vm6, 1, %v1816_v6  ;;  %v357_v20 = vsel %vm355_vm7, 1, %v1816_v6  ;;  %v343_v25 = vcvt.s32.f32 %v341_v18 }
 0x3e3   :  { %v358_v21 = vadd.s32 %v357_v20, %v356_v19 }
 0x3e4   :  { %347 = vadd.xlane.f32.xlu0 %v344_v17 }
 0x3e5   :  { %v360_v22 = vshrl.u32 %v358_v21, 16  ;;  %v359_v24 = vand.u32 65535, %v358_v21 }
 0x3e7   :  { %v362_v23 = vcvt.s32.f32 %v360_v22  ;;  %v361_v26 = vcvt.s32.f32 %v359_v24 }
 0x3e8   :  { %345 = vadd.xlane.f32.xlu0 %v343_v25 }
 0x3e9   :  { %365 = vadd.xlane.f32.xlu1 %v362_v23 }
 0x3ed   :  { %363 = vadd.xlane.f32.xlu1 %v361_v26 }
 0x46d   :  { %v348_v27 = vpop.xlane.xlu0 %347 }
 0x46e   :  { %v350_v28 = vcvt.f32.s32 %v348_v27 }
 0x470   :  { %v351_v30 = vshll.u32 %v350_v28, 16 }
 0x471   :  { %v346_v29 = vpop.xlane.xlu0 %345 }
 0x472   :  { %v349_v31 = vcvt.f32.s32 %v346_v29  ;;  %v366_v32 = vpop.xlane.xlu1 %365 }
 0x473   :  { %v368_v33 = vcvt.f32.s32 %v366_v32 }
 0x474   :  { %v352_v34 = vadd.s32 %v351_v30, %v349_v31 }
 0x475   :  { %v369_v39 = vshll.u32 %v368_v33, 16 }
 0x476   :  { %vm353_vm8 = vcmp.ge.s32.totalorder %v352_v34, 207  ;;  %v364_v36 = vpop.xlane.xlu1 %363 }
 0x477   :  { %v372_v37 = vsel %vm353_vm8, %v329_v1, %v318_v54  ;;  %v374_v38 = vsel %vm353_vm8, %v320_v55, %v373_v35  ;;  %v367_v40 = vcvt.f32.s32 %v364_v36 }
 0x478   :  { %v378_v41 = vshra.s32 %v374_v38, 1  ;;  %v379_v42 = vshra.s32 %v372_v37, 1  ;;  %v381_v43 = vand.u32 %v374_v38, %v372_v37 }
 0x479   :  { %v370_v44 = vadd.s32 %v369_v39, %v367_v40 }
 0x47a   :  { %v380_v45 = vadd.s32 %v379_v42, %v378_v41  ;;  %v382_v46 = vand.u32 1, %v381_v43 }
 0x47b   :  { %vm371_vm9 = vcmp.ge.s32.totalorder %v370_v44, 212 }
 0x47c   :  { %v383_v48 = vadd.s32 %v382_v46, %v380_v45  ;;  %v375_v49 = vsel %vm371_vm9, %v335_v15, %v321_v2  ;;  %v377_v50 = vsel %vm371_vm9, %v323_v3, %v376_v47 }
 0x47d   :  { %v384_v51 = vshra.s32 %v377_v50, 1  ;;  %v385_v52 = vshra.s32 %v375_v49, 1  ;;  %v387_v53 = vand.u32 %v377_v50, %v375_v49 }
 0x47e   :  { %vm390_vm10 = vcmp.le.s32.totalorder %v1832_v4, %v383_v48  ;;  %vm391_vm11 = vcmp.le.s32.totalorder %v1834_v5, %v383_v48  ;;  %v427_v18 = vadd.s32 1, %v383_v48 }
 0x47f   :  { %v386_v54 = vadd.s32 %v385_v52, %v384_v51  ;;  %v388_v55 = vand.u32 1, %v387_v53  ;;  %v392_v56 = vsel %vm390_vm10, 1, %v1816_v6  ;;  %v393_v57 = vsel %vm391_vm11, 1, %v1816_v6 }
 0x480   :  { %v394_v58 = vadd.s32 %v393_v57, %v392_v56 }
 0x481   :  { %v389_v59 = vadd.s32 %v388_v55, %v386_v54 }
 0x482   :  { %v396_v62 = vshrl.u32 %v394_v58, 16  ;;  %v395_v61 = vand.u32 65535, %v394_v58 }
 0x483   :  { %vm408_vm12 = vcmp.le.s32.totalorder %v1832_v4, %v389_v59  ;;  %vm409_vm13 = vcmp.le.s32.totalorder %v1834_v5, %v389_v59  ;;  %v430_v30 = vadd.s32 1, %v389_v59 }
 0x484   :  { %v398_v60 = vcvt.s32.f32 %v396_v62  ;;  %v410_v63 = vsel %vm408_vm12, 1, %v1816_v6  ;;  %v411_v0 = vsel %vm409_vm13, 1, %v1816_v6  ;;  %v397_v3 = vcvt.s32.f32 %v395_v61 }
 0x485   :  { %v412_v1 = vadd.s32 %v411_v0, %v410_v63 }
 0x486   :  { %401 = vadd.xlane.f32.xlu0 %v398_v60 }
 0x487   :  { %v414_v2 = vshrl.u32 %v412_v1, 16  ;;  %v413_v8 = vand.u32 65535, %v412_v1 }
 0x489   :  { %v416_v7 = vcvt.s32.f32 %v414_v2  ;;  %v415_v9 = vcvt.s32.f32 %v413_v8 }
 0x48a   :  { %399 = vadd.xlane.f32.xlu0 %v397_v3 }
 0x48b   :  { %419 = vadd.xlane.f32.xlu1 %v416_v7 }
 0x48f   :  { %417 = vadd.xlane.f32.xlu1 %v415_v9 }
 0x50f   :  { %v402_v10 = vpop.xlane.xlu0 %401 }
 0x510   :  { %v404_v11 = vcvt.f32.s32 %v402_v10 }
 0x512   :  { %v405_v13 = vshll.u32 %v404_v11, 16 }
 0x513   :  { %v400_v12 = vpop.xlane.xlu0 %399 }
 0x514   :  { %v403_v14 = vcvt.f32.s32 %v400_v12  ;;  %v420_v15 = vpop.xlane.xlu1 %419 }
 0x515   :  { %v422_v16 = vcvt.f32.s32 %v420_v15 }
 0x516   :  { %v406_v17 = vadd.s32 %v405_v13, %v403_v14 }
 0x517   :  { %v423_v22 = vshll.u32 %v422_v16, 16 }
 0x518   :  { %vm407_vm14 = vcmp.ge.s32.totalorder %v406_v17, 207  ;;  %v418_v19 = vpop.xlane.xlu1 %417 }
 0x519   :  { %v426_v20 = vsel %vm407_vm14, %v383_v48, %v372_v37  ;;  %v428_v21 = vsel %vm407_vm14, %v374_v38, %v427_v18  ;;  %v421_v25 = vcvt.f32.s32 %v418_v19 }
 0x51a   :  { %v432_v23 = vshra.s32 %v428_v21, 1  ;;  %v433_v24 = vshra.s32 %v426_v20, 1  ;;  %v435_v26 = vand.u32 %v428_v21, %v426_v20 }
 0x51b   :  { %v424_v27 = vadd.s32 %v423_v22, %v421_v25 }
 0x51c   :  { %v434_v28 = vadd.s32 %v433_v24, %v432_v23  ;;  %v436_v29 = vand.u32 1, %v435_v26 }
 0x51d   :  { %vm425_vm15 = vcmp.ge.s32.totalorder %v424_v27, 212 }
 0x51e   :  { %v437_v31 = vadd.s32 %v436_v29, %v434_v28  ;;  %v429_v32 = vsel %vm425_vm15, %v389_v59, %v375_v49  ;;  %v431_v33 = vsel %vm425_vm15, %v377_v50, %v430_v30 }
 0x51f   :  { %v438_v34 = vshra.s32 %v431_v33, 1  ;;  %v439_v35 = vshra.s32 %v429_v32, 1  ;;  %v441_v36 = vand.u32 %v431_v33, %v429_v32 }
 0x520   :  { %vm444_vm0 = vcmp.le.s32.totalorder %v1832_v4, %v437_v31  ;;  %vm445_vm1 = vcmp.le.s32.totalorder %v1834_v5, %v437_v31  ;;  %v481_v61 = vadd.s32 1, %v437_v31 }
 0x521   :  { %v440_v37 = vadd.s32 %v439_v35, %v438_v34  ;;  %v442_v38 = vand.u32 1, %v441_v36  ;;  %v446_v39 = vsel %vm444_vm0, 1, %v1816_v6  ;;  %v447_v40 = vsel %vm445_vm1, 1, %v1816_v6 }
 0x522   :  { %v448_v41 = vadd.s32 %v447_v40, %v446_v39 }
 0x523   :  { %v443_v42 = vadd.s32 %v442_v38, %v440_v37 }
 0x524   :  { %v450_v43 = vshrl.u32 %v448_v41, 16  ;;  %v449_v45 = vand.u32 65535, %v448_v41 }
 0x525   :  { %vm462_vm2 = vcmp.le.s32.totalorder %v1832_v4, %v443_v42  ;;  %vm463_vm3 = vcmp.le.s32.totalorder %v1834_v5, %v443_v42  ;;  %v484_v13 = vadd.s32 1, %v443_v42 }
 0x526   :  { %v452_v44 = vcvt.s32.f32 %v450_v43  ;;  %v464_v46 = vsel %vm462_vm2, 1, %v1816_v6  ;;  %v465_v47 = vsel %vm463_vm3, 1, %v1816_v6  ;;  %v451_v50 = vcvt.s32.f32 %v449_v45 }
 0x527   :  { %v466_v48 = vadd.s32 %v465_v47, %v464_v46 }
 0x528   :  { %455 = vadd.xlane.f32.xlu0 %v452_v44 }
 0x529   :  { %v468_v49 = vshrl.u32 %v466_v48, 16  ;;  %v467_v52 = vand.u32 65535, %v466_v48 }
 0x52b   :  { %v470_v51 = vcvt.s32.f32 %v468_v49  ;;  %v469_v53 = vcvt.s32.f32 %v467_v52 }
 0x52c   :  { %453 = vadd.xlane.f32.xlu0 %v451_v50 }
 0x52d   :  { %473 = vadd.xlane.f32.xlu1 %v470_v51 }
 0x531   :  { %471 = vadd.xlane.f32.xlu1 %v469_v53 }
 0x5b1   :  { %v456_v54 = vpop.xlane.xlu0 %455 }
 0x5b2   :  { %v458_v55 = vcvt.f32.s32 %v456_v54 }
 0x5b4   :  { %v459_v57 = vshll.u32 %v458_v55, 16 }
 0x5b5   :  { %v454_v56 = vpop.xlane.xlu0 %453 }
 0x5b6   :  { %v457_v58 = vcvt.f32.s32 %v454_v56  ;;  %v474_v59 = vpop.xlane.xlu1 %473 }
 0x5b7   :  { %v476_v62 = vcvt.f32.s32 %v474_v59 }
 0x5b8   :  { %v460_v60 = vadd.s32 %v459_v57, %v457_v58 }
 0x5b9   :  { %v477_v2 = vshll.u32 %v476_v62, 16 }
 0x5ba   :  { %vm461_vm4 = vcmp.ge.s32.totalorder %v460_v60, 207  ;;  %v472_v63 = vpop.xlane.xlu1 %471 }
 0x5bb   :  { %v480_v0 = vsel %vm461_vm4, %v437_v31, %v426_v20  ;;  %v482_v1 = vsel %vm461_vm4, %v428_v21, %v481_v61  ;;  %v475_v3 = vcvt.f32.s32 %v472_v63 }
 0x5bc   :  { %v486_v7 = vshra.s32 %v482_v1, 1  ;;  %v487_v8 = vshra.s32 %v480_v0, 1  ;;  %v489_v9 = vand.u32 %v482_v1, %v480_v0 }
 0x5bd   :  { %v478_v10 = vadd.s32 %v477_v2, %v475_v3 }
 0x5be   :  { %v488_v11 = vadd.s32 %v487_v8, %v486_v7  ;;  %v490_v12 = vand.u32 1, %v489_v9 }
 0x5bf   :  { %vm479_vm5 = vcmp.ge.s32.totalorder %v478_v10, 212 }
 0x5c0   :  { %v491_v14 = vadd.s32 %v490_v12, %v488_v11  ;;  %v483_v15 = vsel %vm479_vm5, %v443_v42, %v429_v32  ;;  %v485_v16 = vsel %vm479_vm5, %v431_v33, %v484_v13 }
 0x5c1   :  { %v492_v17 = vshra.s32 %v485_v16, 1  ;;  %v493_v18 = vshra.s32 %v483_v15, 1  ;;  %v495_v19 = vand.u32 %v485_v16, %v483_v15 }
 0x5c2   :  { %vm498_vm6 = vcmp.le.s32.totalorder %v1832_v4, %v491_v14  ;;  %vm499_vm7 = vcmp.le.s32.totalorder %v1834_v5, %v491_v14  ;;  %v535_v45 = vadd.s32 1, %v491_v14 }
 0x5c3   :  { %v494_v20 = vadd.s32 %v493_v18, %v492_v17  ;;  %v496_v21 = vand.u32 1, %v495_v19  ;;  %v500_v22 = vsel %vm498_vm6, 1, %v1816_v6  ;;  %v501_v25 = vsel %vm499_vm7, 1, %v1816_v6 }
 0x5c4   :  { %v502_v23 = vadd.s32 %v501_v25, %v500_v22 }
 0x5c5   :  { %v497_v24 = vadd.s32 %v496_v21, %v494_v20 }
 0x5c6   :  { %v504_v26 = vshrl.u32 %v502_v23, 16  ;;  %v503_v28 = vand.u32 65535, %v502_v23 }
 0x5c7   :  { %vm516_vm8 = vcmp.le.s32.totalorder %v1832_v4, %v497_v24  ;;  %vm517_vm9 = vcmp.le.s32.totalorder %v1834_v5, %v497_v24  ;;  %v538_v57 = vadd.s32 1, %v497_v24 }
 0x5c8   :  { %v506_v27 = vcvt.s32.f32 %v504_v26  ;;  %v518_v29 = vsel %vm516_vm8, 1, %v1816_v6  ;;  %v519_v30 = vsel %vm517_vm9, 1, %v1816_v6  ;;  %v505_v33 = vcvt.s32.f32 %v503_v28 }
 0x5c9   :  { %v520_v31 = vadd.s32 %v519_v30, %v518_v29 }
 0x5ca   :  { %509 = vadd.xlane.f32.xlu0 %v506_v27 }
 0x5cb   :  { %v522_v32 = vshrl.u32 %v520_v31, 16  ;;  %v521_v35 = vand.u32 65535, %v520_v31 }
 0x5cd   :  { %v524_v34 = vcvt.s32.f32 %v522_v32  ;;  %v523_v36 = vcvt.s32.f32 %v521_v35 }
 0x5ce   :  { %507 = vadd.xlane.f32.xlu0 %v505_v33 }
 0x5cf   :  { %527 = vadd.xlane.f32.xlu1 %v524_v34 }
 0x5d3   :  { %525 = vadd.xlane.f32.xlu1 %v523_v36 }
 0x653   :  { %v510_v37 = vpop.xlane.xlu0 %509 }
 0x654   :  { %v512_v38 = vcvt.f32.s32 %v510_v37 }
 0x656   :  { %v513_v40 = vshll.u32 %v512_v38, 16 }
 0x657   :  { %v508_v39 = vpop.xlane.xlu0 %507 }
 0x658   :  { %v511_v41 = vcvt.f32.s32 %v508_v39  ;;  %v528_v42 = vpop.xlane.xlu1 %527 }
 0x659   :  { %v530_v43 = vcvt.f32.s32 %v528_v42 }
 0x65a   :  { %v514_v44 = vadd.s32 %v513_v40, %v511_v41 }
 0x65b   :  { %v531_v49 = vshll.u32 %v530_v43, 16 }
 0x65c   :  { %vm515_vm10 = vcmp.ge.s32.totalorder %v514_v44, 207  ;;  %v526_v46 = vpop.xlane.xlu1 %525 }
 0x65d   :  { %v534_v47 = vsel %vm515_vm10, %v491_v14, %v480_v0  ;;  %v536_v48 = vsel %vm515_vm10, %v482_v1, %v535_v45  ;;  %v529_v50 = vcvt.f32.s32 %v526_v46 }
 0x65e   :  { %v540_v51 = vshra.s32 %v536_v48, 1  ;;  %v541_v52 = vshra.s32 %v534_v47, 1  ;;  %v543_v53 = vand.u32 %v536_v48, %v534_v47 }
 0x65f   :  { %v532_v54 = vadd.s32 %v531_v49, %v529_v50 }
 0x660   :  { %v542_v55 = vadd.s32 %v541_v52, %v540_v51  ;;  %v544_v56 = vand.u32 1, %v543_v53 }
 0x661   :  { %vm533_vm11 = vcmp.ge.s32.totalorder %v532_v54, 212 }
 0x662   :  { %v545_v58 = vadd.s32 %v544_v56, %v542_v55  ;;  %v537_v59 = vsel %vm533_vm11, %v497_v24, %v483_v15  ;;  %v539_v62 = vsel %vm533_vm11, %v485_v16, %v538_v57 }
 0x663   :  { %v546_v60 = vshra.s32 %v539_v62, 1  ;;  %v547_v61 = vshra.s32 %v537_v59, 1  ;;  %v549_v63 = vand.u32 %v539_v62, %v537_v59 }
 0x664   :  { %vm552_vm12 = vcmp.le.s32.totalorder %v1832_v4, %v545_v58  ;;  %vm553_vm13 = vcmp.le.s32.totalorder %v1834_v5, %v545_v58  ;;  %v589_v28 = vadd.s32 1, %v545_v58 }
 0x665   :  { %v548_v0 = vadd.s32 %v547_v61, %v546_v60  ;;  %v550_v1 = vand.u32 1, %v549_v63  ;;  %v554_v2 = vsel %vm552_vm12, 1, %v1816_v6  ;;  %v555_v3 = vsel %vm553_vm13, 1, %v1816_v6 }
 0x666   :  { %v556_v7 = vadd.s32 %v555_v3, %v554_v2 }
 0x667   :  { %v551_v8 = vadd.s32 %v550_v1, %v548_v0 }
 0x668   :  { %v558_v9 = vshrl.u32 %v556_v7, 16  ;;  %v557_v11 = vand.u32 65535, %v556_v7 }
 0x669   :  { %vm570_vm14 = vcmp.le.s32.totalorder %v1832_v4, %v551_v8  ;;  %vm571_vm15 = vcmp.le.s32.totalorder %v1834_v5, %v551_v8  ;;  %v592_v40 = vadd.s32 1, %v551_v8 }
 0x66a   :  { %v560_v10 = vcvt.s32.f32 %v558_v9  ;;  %v572_v12 = vsel %vm570_vm14, 1, %v1816_v6  ;;  %v573_v13 = vsel %vm571_vm15, 1, %v1816_v6  ;;  %v559_v16 = vcvt.s32.f32 %v557_v11 }
 0x66b   :  { %v574_v14 = vadd.s32 %v573_v13, %v572_v12 }
 0x66c   :  { %563 = vadd.xlane.f32.xlu0 %v560_v10 }
 0x66d   :  { %v576_v15 = vshrl.u32 %v574_v14, 16  ;;  %v575_v18 = vand.u32 65535, %v574_v14 }
 0x66f   :  { %v578_v17 = vcvt.s32.f32 %v576_v15  ;;  %v577_v19 = vcvt.s32.f32 %v575_v18 }
 0x670   :  { %561 = vadd.xlane.f32.xlu0 %v559_v16 }
 0x671   :  { %581 = vadd.xlane.f32.xlu1 %v578_v17 }
 0x675   :  { %579 = vadd.xlane.f32.xlu1 %v577_v19 }
 0x6f5   :  { %v564_v20 = vpop.xlane.xlu0 %563 }
 0x6f6   :  { %v566_v21 = vcvt.f32.s32 %v564_v20 }
 0x6f8   :  { %v567_v25 = vshll.u32 %v566_v21, 16 }
 0x6f9   :  { %v562_v22 = vpop.xlane.xlu0 %561 }
 0x6fa   :  { %v565_v23 = vcvt.f32.s32 %v562_v22  ;;  %v582_v24 = vpop.xlane.xlu1 %581 }
 0x6fb   :  { %v584_v26 = vcvt.f32.s32 %v582_v24 }
 0x6fc   :  { %v568_v27 = vadd.s32 %v567_v25, %v565_v23 }
 0x6fd   :  { %v585_v32 = vshll.u32 %v584_v26, 16 }
 0x6fe   :  { %vm569_vm0 = vcmp.ge.s32.totalorder %v568_v27, 207  ;;  %v580_v29 = vpop.xlane.xlu1 %579 }
 0x6ff   :  { %v588_v30 = vsel %vm569_vm0, %v545_v58, %v534_v47  ;;  %v590_v31 = vsel %vm569_vm0, %v536_v48, %v589_v28  ;;  %v583_v33 = vcvt.f32.s32 %v580_v29 }
 0x700   :  { %v594_v34 = vshra.s32 %v590_v31, 1  ;;  %v595_v35 = vshra.s32 %v588_v30, 1  ;;  %v597_v36 = vand.u32 %v590_v31, %v588_v30 }
 0x701   :  { %v586_v37 = vadd.s32 %v585_v32, %v583_v33 }
 0x702   :  { %v596_v38 = vadd.s32 %v595_v35, %v594_v34  ;;  %v598_v39 = vand.u32 1, %v597_v36 }
 0x703   :  { %vm587_vm1 = vcmp.ge.s32.totalorder %v586_v37, 212 }
 0x704   :  { %v599_v41 = vadd.s32 %v598_v39, %v596_v38  ;;  %v591_v42 = vsel %vm587_vm1, %v551_v8, %v537_v59  ;;  %v593_v43 = vsel %vm587_vm1, %v539_v62, %v592_v40 }
 0x705   :  { %v600_v44 = vshra.s32 %v593_v43, 1  ;;  %v601_v45 = vshra.s32 %v591_v42, 1  ;;  %v603_v46 = vand.u32 %v593_v43, %v591_v42 }
 0x706   :  { %vm606_vm2 = vcmp.le.s32.totalorder %v1832_v4, %v599_v41  ;;  %vm607_vm3 = vcmp.le.s32.totalorder %v1834_v5, %v599_v41  ;;  %v643_v11 = vadd.s32 1, %v599_v41 }
 0x707   :  { %v602_v47 = vadd.s32 %v601_v45, %v600_v44  ;;  %v604_v48 = vand.u32 1, %v603_v46  ;;  %v608_v49 = vsel %vm606_vm2, 1, %v1816_v6  ;;  %v609_v50 = vsel %vm607_vm3, 1, %v1816_v6 }
 0x708   :  { %v610_v51 = vadd.s32 %v609_v50, %v608_v49 }
 0x709   :  { %v605_v52 = vadd.s32 %v604_v48, %v602_v47 }
 0x70a   :  { %v612_v53 = vshrl.u32 %v610_v51, 16  ;;  %v611_v55 = vand.u32 65535, %v610_v51 }
 0x70b   :  { %vm624_vm4 = vcmp.le.s32.totalorder %v1832_v4, %v605_v52  ;;  %vm625_vm5 = vcmp.le.s32.totalorder %v1834_v5, %v605_v52  ;;  %v646_v25 = vadd.s32 1, %v605_v52 }
 0x70c   :  { %v614_v54 = vcvt.s32.f32 %v612_v53  ;;  %v626_v56 = vsel %vm624_vm4, 1, %v1816_v6  ;;  %v627_v57 = vsel %vm625_vm5, 1, %v1816_v6  ;;  %v613_v62 = vcvt.s32.f32 %v611_v55 }
 0x70d   :  { %v628_v58 = vadd.s32 %v627_v57, %v626_v56 }
 0x70e   :  { %617 = vadd.xlane.f32.xlu0 %v614_v54 }
 0x70f   :  { %v630_v59 = vshrl.u32 %v628_v58, 16  ;;  %v629_v61 = vand.u32 65535, %v628_v58 }
 0x711   :  { %v632_v60 = vcvt.s32.f32 %v630_v59  ;;  %v631_v63 = vcvt.s32.f32 %v629_v61 }
 0x712   :  { %615 = vadd.xlane.f32.xlu0 %v613_v62 }
 0x713   :  { %635 = vadd.xlane.f32.xlu1 %v632_v60 }
 0x717   :  { %633 = vadd.xlane.f32.xlu1 %v631_v63 }
 0x797   :  { %v618_v0 = vpop.xlane.xlu0 %617 }
 0x798   :  { %v620_v1 = vcvt.f32.s32 %v618_v0 }
 0x79a   :  { %v621_v3 = vshll.u32 %v620_v1, 16 }
 0x79b   :  { %v616_v2 = vpop.xlane.xlu0 %615 }
 0x79c   :  { %v619_v7 = vcvt.f32.s32 %v616_v2  ;;  %v636_v8 = vpop.xlane.xlu1 %635 }
 0x79d   :  { %v638_v9 = vcvt.f32.s32 %v636_v8 }
 0x79e   :  { %v622_v10 = vadd.s32 %v621_v3, %v619_v7 }
 0x79f   :  { %v639_v15 = vshll.u32 %v638_v9, 16 }
 0x7a0   :  { %vm623_vm6 = vcmp.ge.s32.totalorder %v622_v10, 207  ;;  %v634_v12 = vpop.xlane.xlu1 %633 }
 0x7a1   :  { %v642_v13 = vsel %vm623_vm6, %v599_v41, %v588_v30  ;;  %v644_v14 = vsel %vm623_vm6, %v590_v31, %v643_v11  ;;  %v637_v16 = vcvt.f32.s32 %v634_v12 }
 0x7a2   :  { %v648_v17 = vshra.s32 %v644_v14, 1  ;;  %v649_v18 = vshra.s32 %v642_v13, 1  ;;  %v651_v19 = vand.u32 %v644_v14, %v642_v13 }
 0x7a3   :  { %v640_v20 = vadd.s32 %v639_v15, %v637_v16 }
 0x7a4   :  { %v650_v21 = vadd.s32 %v649_v18, %v648_v17  ;;  %v652_v22 = vand.u32 1, %v651_v19 }
 0x7a5   :  { %vm641_vm7 = vcmp.ge.s32.totalorder %v640_v20, 212 }
 0x7a6   :  { %v653_v23 = vadd.s32 %v652_v22, %v650_v21  ;;  %v645_v24 = vsel %vm641_vm7, %v605_v52, %v591_v42  ;;  %v647_v26 = vsel %vm641_vm7, %v593_v43, %v646_v25 }
 0x7a7   :  { %v654_v27 = vshra.s32 %v647_v26, 1  ;;  %v655_v28 = vshra.s32 %v645_v24, 1  ;;  %v657_v29 = vand.u32 %v647_v26, %v645_v24 }
 0x7a8   :  { %vm660_vm8 = vcmp.le.s32.totalorder %v1832_v4, %v653_v23  ;;  %vm661_vm9 = vcmp.le.s32.totalorder %v1834_v5, %v653_v23  ;;  %v697_v55 = vadd.s32 1, %v653_v23 }
 0x7a9   :  { %v656_v30 = vadd.s32 %v655_v28, %v654_v27  ;;  %v658_v31 = vand.u32 1, %v657_v29  ;;  %v662_v32 = vsel %vm660_vm8, 1, %v1816_v6  ;;  %v663_v33 = vsel %vm661_vm9, 1, %v1816_v6 }
 0x7aa   :  { %v664_v34 = vadd.s32 %v663_v33, %v662_v32 }
 0x7ab   :  { %v659_v35 = vadd.s32 %v658_v31, %v656_v30 }
 0x7ac   :  { %v666_v36 = vshrl.u32 %v664_v34, 16  ;;  %v665_v38 = vand.u32 65535, %v664_v34 }
 0x7ad   :  { %vm678_vm10 = vcmp.le.s32.totalorder %v1832_v4, %v659_v35  ;;  %vm679_vm11 = vcmp.le.s32.totalorder %v1834_v5, %v659_v35  ;;  %v700_v3 = vadd.s32 1, %v659_v35 }
 0x7ae   :  { %v668_v37 = vcvt.s32.f32 %v666_v36  ;;  %v680_v39 = vsel %vm678_vm10, 1, %v1816_v6  ;;  %v681_v40 = vsel %vm679_vm11, 1, %v1816_v6  ;;  %v667_v43 = vcvt.s32.f32 %v665_v38 }
 0x7af   :  { %v682_v41 = vadd.s32 %v681_v40, %v680_v39 }
 0x7b0   :  { %671 = vadd.xlane.f32.xlu0 %v668_v37 }
 0x7b1   :  { %v684_v42 = vshrl.u32 %v682_v41, 16  ;;  %v683_v45 = vand.u32 65535, %v682_v41 }
 0x7b3   :  { %v686_v44 = vcvt.s32.f32 %v684_v42  ;;  %v685_v46 = vcvt.s32.f32 %v683_v45 }
 0x7b4   :  { %669 = vadd.xlane.f32.xlu0 %v667_v43 }
 0x7b5   :  { %689 = vadd.xlane.f32.xlu1 %v686_v44 }
 0x7b9   :  { %687 = vadd.xlane.f32.xlu1 %v685_v46 }
 0x839   :  { %v672_v47 = vpop.xlane.xlu0 %671 }
 0x83a   :  { %v674_v48 = vcvt.f32.s32 %v672_v47 }
 0x83c   :  { %v675_v50 = vshll.u32 %v674_v48, 16 }
 0x83d   :  { %v670_v49 = vpop.xlane.xlu0 %669 }
 0x83e   :  { %v673_v51 = vcvt.f32.s32 %v670_v49  ;;  %v690_v52 = vpop.xlane.xlu1 %689 }
 0x83f   :  { %v692_v53 = vcvt.f32.s32 %v690_v52 }
 0x840   :  { %v676_v54 = vadd.s32 %v675_v50, %v673_v51 }
 0x841   :  { %v693_v59 = vshll.u32 %v692_v53, 16 }
 0x842   :  { %vm677_vm12 = vcmp.ge.s32.totalorder %v676_v54, 207  ;;  %v688_v56 = vpop.xlane.xlu1 %687 }
 0x843   :  { %v696_v57 = vsel %vm677_vm12, %v653_v23, %v642_v13  ;;  %v698_v58 = vsel %vm677_vm12, %v644_v14, %v697_v55  ;;  %v691_v62 = vcvt.f32.s32 %v688_v56 }
 0x844   :  { %v702_v60 = vshra.s32 %v698_v58, 1  ;;  %v703_v61 = vshra.s32 %v696_v57, 1  ;;  %v705_v63 = vand.u32 %v698_v58, %v696_v57 }
 0x845   :  { %v694_v0 = vadd.s32 %v693_v59, %v691_v62 }
 0x846   :  { %v704_v1 = vadd.s32 %v703_v61, %v702_v60  ;;  %v706_v2 = vand.u32 1, %v705_v63 }
 0x847   :  { %vm695_vm13 = vcmp.ge.s32.totalorder %v694_v0, 212 }
 0x848   :  { %v707_v7 = vadd.s32 %v706_v2, %v704_v1  ;;  %v699_v8 = vsel %vm695_vm13, %v659_v35, %v645_v24  ;;  %v701_v9 = vsel %vm695_vm13, %v647_v26, %v700_v3 }
 0x849   :  { %v708_v10 = vshra.s32 %v701_v9, 1  ;;  %v709_v11 = vshra.s32 %v699_v8, 1  ;;  %v711_v12 = vand.u32 %v701_v9, %v699_v8 }
 0x84a   :  { %vm714_vm14 = vcmp.le.s32.totalorder %v1832_v4, %v707_v7  ;;  %vm715_vm15 = vcmp.le.s32.totalorder %v1834_v5, %v707_v7  ;;  %v751_v38 = vadd.s32 1, %v707_v7 }
 0x84b   :  { %v710_v13 = vadd.s32 %v709_v11, %v708_v10  ;;  %v712_v14 = vand.u32 1, %v711_v12  ;;  %v716_v15 = vsel %vm714_vm14, 1, %v1816_v6  ;;  %v717_v16 = vsel %vm715_vm15, 1, %v1816_v6 }
 0x84c   :  { %v718_v17 = vadd.s32 %v717_v16, %v716_v15 }
 0x84d   :  { %v713_v18 = vadd.s32 %v712_v14, %v710_v13 }
 0x84e   :  { %v720_v19 = vshrl.u32 %v718_v17, 16  ;;  %v719_v21 = vand.u32 65535, %v718_v17 }
 0x84f   :  { %vm732_vm0 = vcmp.le.s32.totalorder %v1832_v4, %v713_v18  ;;  %vm733_vm1 = vcmp.le.s32.totalorder %v1834_v5, %v713_v18  ;;  %v754_v50 = vadd.s32 1, %v713_v18 }
 0x850   :  { %v722_v20 = vcvt.s32.f32 %v720_v19  ;;  %v734_v22 = vsel %vm732_vm0, 1, %v1816_v6  ;;  %v735_v25 = vsel %vm733_vm1, 1, %v1816_v6  ;;  %v721_v26 = vcvt.s32.f32 %v719_v21 }
 0x851   :  { %v736_v23 = vadd.s32 %v735_v25, %v734_v22 }
 0x852   :  { %725 = vadd.xlane.f32.xlu0 %v722_v20 }
 0x853   :  { %v738_v24 = vshrl.u32 %v736_v23, 16  ;;  %v737_v28 = vand.u32 65535, %v736_v23 }
 0x855   :  { %v740_v27 = vcvt.s32.f32 %v738_v24  ;;  %v739_v29 = vcvt.s32.f32 %v737_v28 }
 0x856   :  { %723 = vadd.xlane.f32.xlu0 %v721_v26 }
 0x857   :  { %743 = vadd.xlane.f32.xlu1 %v740_v27 }
 0x85b   :  { %741 = vadd.xlane.f32.xlu1 %v739_v29 }
 0x8db   :  { %v726_v30 = vpop.xlane.xlu0 %725 }
 0x8dc   :  { %v728_v31 = vcvt.f32.s32 %v726_v30 }
 0x8de   :  { %v729_v33 = vshll.u32 %v728_v31, 16 }
 0x8df   :  { %v724_v32 = vpop.xlane.xlu0 %723 }
 0x8e0   :  { %v727_v34 = vcvt.f32.s32 %v724_v32  ;;  %v744_v35 = vpop.xlane.xlu1 %743 }
 0x8e1   :  { %v746_v36 = vcvt.f32.s32 %v744_v35 }
 0x8e2   :  { %v730_v37 = vadd.s32 %v729_v33, %v727_v34 }
 0x8e3   :  { %v747_v42 = vshll.u32 %v746_v36, 16 }
 0x8e4   :  { %vm731_vm2 = vcmp.ge.s32.totalorder %v730_v37, 207  ;;  %v742_v39 = vpop.xlane.xlu1 %741 }
 0x8e5   :  { %v750_v40 = vsel %vm731_vm2, %v707_v7, %v696_v57  ;;  %v752_v41 = vsel %vm731_vm2, %v698_v58, %v751_v38  ;;  %v745_v43 = vcvt.f32.s32 %v742_v39 }
 0x8e6   :  { %v756_v44 = vshra.s32 %v752_v41, 1  ;;  %v757_v45 = vshra.s32 %v750_v40, 1  ;;  %v759_v46 = vand.u32 %v752_v41, %v750_v40 }
 0x8e7   :  { %v748_v47 = vadd.s32 %v747_v42, %v745_v43 }
 0x8e8   :  { %v758_v48 = vadd.s32 %v757_v45, %v756_v44  ;;  %v760_v49 = vand.u32 1, %v759_v46 }
 0x8e9   :  { %vm749_vm3 = vcmp.ge.s32.totalorder %v748_v47, 212 }
 0x8ea   :  { %v761_v51 = vadd.s32 %v760_v49, %v758_v48  ;;  %v753_v52 = vsel %vm749_vm3, %v713_v18, %v699_v8  ;;  %v755_v53 = vsel %vm749_vm3, %v701_v9, %v754_v50 }
 0x8eb   :  { %v762_v54 = vshra.s32 %v755_v53, 1  ;;  %v763_v55 = vshra.s32 %v753_v52, 1  ;;  %v765_v56 = vand.u32 %v755_v53, %v753_v52 }
 0x8ec   :  { %vm768_vm4 = vcmp.le.s32.totalorder %v1832_v4, %v761_v51  ;;  %vm769_vm5 = vcmp.le.s32.totalorder %v1834_v5, %v761_v51  ;;  %v805_v21 = vadd.s32 1, %v761_v51 }
 0x8ed   :  { %v764_v57 = vadd.s32 %v763_v55, %v762_v54  ;;  %v766_v58 = vand.u32 1, %v765_v56  ;;  %v770_v59 = vsel %vm768_vm4, 1, %v1816_v6  ;;  %v771_v62 = vsel %vm769_vm5, 1, %v1816_v6 }
 0x8ee   :  { %v772_v60 = vadd.s32 %v771_v62, %v770_v59 }
 0x8ef   :  { %v767_v61 = vadd.s32 %v766_v58, %v764_v57 }
 0x8f0   :  { %v774_v63 = vshrl.u32 %v772_v60, 16  ;;  %v773_v1 = vand.u32 65535, %v772_v60 }
 0x8f1   :  { %vm786_vm6 = vcmp.le.s32.totalorder %v1832_v4, %v767_v61  ;;  %vm787_vm7 = vcmp.le.s32.totalorder %v1834_v5, %v767_v61  ;;  %v808_v33 = vadd.s32 1, %v767_v61 }
 0x8f2   :  { %v776_v0 = vcvt.s32.f32 %v774_v63  ;;  %v788_v2 = vsel %vm786_vm6, 1, %v1816_v6  ;;  %v789_v3 = vsel %vm787_vm7, 1, %v1816_v6  ;;  %v775_v9 = vcvt.s32.f32 %v773_v1 }
 0x8f3   :  { %v790_v7 = vadd.s32 %v789_v3, %v788_v2 }
 0x8f4   :  { %779 = vadd.xlane.f32.xlu0 %v776_v0 }
 0x8f5   :  { %v792_v8 = vshrl.u32 %v790_v7, 16  ;;  %v791_v11 = vand.u32 65535, %v790_v7 }
 0x8f7   :  { %v794_v10 = vcvt.s32.f32 %v792_v8  ;;  %v793_v12 = vcvt.s32.f32 %v791_v11 }
 0x8f8   :  { %777 = vadd.xlane.f32.xlu0 %v775_v9 }
 0x8f9   :  { %797 = vadd.xlane.f32.xlu1 %v794_v10 }
 0x8fd   :  { %795 = vadd.xlane.f32.xlu1 %v793_v12 }
 0x97d   :  { %v780_v13 = vpop.xlane.xlu0 %779 }
 0x97e   :  { %v782_v14 = vcvt.f32.s32 %v780_v13 }
 0x980   :  { %v783_v16 = vshll.u32 %v782_v14, 16 }
 0x981   :  { %v778_v15 = vpop.xlane.xlu0 %777 }
 0x982   :  { %v781_v17 = vcvt.f32.s32 %v778_v15  ;;  %v798_v18 = vpop.xlane.xlu1 %797 }
 0x983   :  { %v800_v19 = vcvt.f32.s32 %v798_v18 }
 0x984   :  { %v784_v20 = vadd.s32 %v783_v16, %v781_v17 }
 0x985   :  { %v801_v24 = vshll.u32 %v800_v19, 16 }
 0x986   :  { %vm785_vm8 = vcmp.ge.s32.totalorder %v784_v20, 207  ;;  %v796_v22 = vpop.xlane.xlu1 %795 }
 0x987   :  { %v804_v25 = vsel %vm785_vm8, %v761_v51, %v750_v40  ;;  %v806_v23 = vsel %vm785_vm8, %v752_v41, %v805_v21  ;;  %v799_v26 = vcvt.f32.s32 %v796_v22 }
 0x988   :  { %v810_v27 = vshra.s32 %v806_v23, 1  ;;  %v811_v28 = vshra.s32 %v804_v25, 1  ;;  %v813_v29 = vand.u32 %v806_v23, %v804_v25 }
 0x989   :  { %v802_v30 = vadd.s32 %v801_v24, %v799_v26 }
 0x98a   :  { %v812_v31 = vadd.s32 %v811_v28, %v810_v27  ;;  %v814_v32 = vand.u32 1, %v813_v29 }
 0x98b   :  { %vm803_vm9 = vcmp.ge.s32.totalorder %v802_v30, 212 }
 0x98c   :  { %v815_v34 = vadd.s32 %v814_v32, %v812_v31  ;;  %v807_v35 = vsel %vm803_vm9, %v767_v61, %v753_v52  ;;  %v809_v36 = vsel %vm803_vm9, %v755_v53, %v808_v33 }
 0x98d   :  { %v816_v37 = vshra.s32 %v809_v36, 1  ;;  %v817_v38 = vshra.s32 %v807_v35, 1  ;;  %v819_v39 = vand.u32 %v809_v36, %v807_v35 }
 0x98e   :  { %vm822_vm10 = vcmp.le.s32.totalorder %v1832_v4, %v815_v34  ;;  %vm823_vm11 = vcmp.le.s32.totalorder %v1834_v5, %v815_v34  ;;  %v859_v1 = vadd.s32 1, %v815_v34 }
 0x98f   :  { %v818_v40 = vadd.s32 %v817_v38, %v816_v37  ;;  %v820_v41 = vand.u32 1, %v819_v39  ;;  %v824_v42 = vsel %vm822_vm10, 1, %v1816_v6  ;;  %v825_v43 = vsel %vm823_vm11, 1, %v1816_v6 }
 0x990   :  { %v826_v44 = vadd.s32 %v825_v43, %v824_v42 }
 0x991   :  { %v821_v45 = vadd.s32 %v820_v41, %v818_v40 }
 0x992   :  { %v828_v46 = vshrl.u32 %v826_v44, 16  ;;  %v827_v48 = vand.u32 65535, %v826_v44 }
 0x993   :  { %vm840_vm12 = vcmp.le.s32.totalorder %v1832_v4, %v821_v45  ;;  %vm841_vm13 = vcmp.le.s32.totalorder %v1834_v5, %v821_v45  ;;  %v862_v16 = vadd.s32 1, %v821_v45 }
 0x994   :  { %v830_v47 = vcvt.s32.f32 %v828_v46  ;;  %v842_v49 = vsel %vm840_vm12, 1, %v1816_v6  ;;  %v843_v50 = vsel %vm841_vm13, 1, %v1816_v6  ;;  %v829_v53 = vcvt.s32.f32 %v827_v48 }
 0x995   :  { %v844_v51 = vadd.s32 %v843_v50, %v842_v49 }
 0x996   :  { %833 = vadd.xlane.f32.xlu0 %v830_v47 }
 0x997   :  { %v846_v52 = vshrl.u32 %v844_v51, 16  ;;  %v845_v55 = vand.u32 65535, %v844_v51 }
 0x999   :  { %v848_v54 = vcvt.s32.f32 %v846_v52  ;;  %v847_v56 = vcvt.s32.f32 %v845_v55 }
 0x99a   :  { %831 = vadd.xlane.f32.xlu0 %v829_v53 }
 0x99b   :  { %851 = vadd.xlane.f32.xlu1 %v848_v54 }
 0x99f   :  { %849 = vadd.xlane.f32.xlu1 %v847_v56 }
 0xa1f   :  { %v834_v57 = vpop.xlane.xlu0 %833 }
 0xa20   :  { %v836_v58 = vcvt.f32.s32 %v834_v57 }
 0xa22   :  { %v837_v62 = vshll.u32 %v836_v58, 16 }
 0xa23   :  { %v832_v59 = vpop.xlane.xlu0 %831 }
 0xa24   :  { %v835_v60 = vcvt.f32.s32 %v832_v59  ;;  %v852_v61 = vpop.xlane.xlu1 %851 }
 0xa25   :  { %v854_v63 = vcvt.f32.s32 %v852_v61 }
 0xa26   :  { %v838_v0 = vadd.s32 %v837_v62, %v835_v60 }
 0xa27   :  { %v855_v8 = vshll.u32 %v854_v63, 16 }
 0xa28   :  { %vm839_vm14 = vcmp.ge.s32.totalorder %v838_v0, 207  ;;  %v850_v2 = vpop.xlane.xlu1 %849 }
 0xa29   :  { %v858_v3 = vsel %vm839_vm14, %v815_v34, %v804_v25  ;;  %v860_v7 = vsel %vm839_vm14, %v806_v23, %v859_v1  ;;  %v853_v9 = vcvt.f32.s32 %v850_v2 }
 0xa2a   :  { %v864_v10 = vshra.s32 %v860_v7, 1  ;;  %v865_v11 = vshra.s32 %v858_v3, 1  ;;  %v867_v12 = vand.u32 %v860_v7, %v858_v3 }
 0xa2b   :  { %v856_v13 = vadd.s32 %v855_v8, %v853_v9 }
 0xa2c   :  { %v866_v14 = vadd.s32 %v865_v11, %v864_v10  ;;  %v868_v15 = vand.u32 1, %v867_v12 }
 0xa2d   :  { %vm857_vm15 = vcmp.ge.s32.totalorder %v856_v13, 212 }
 0xa2e   :  { %v869_v17 = vadd.s32 %v868_v15, %v866_v14  ;;  %v861_v18 = vsel %vm857_vm15, %v821_v45, %v807_v35  ;;  %v863_v19 = vsel %vm857_vm15, %v809_v36, %v862_v16 }
 0xa2f   :  { %v870_v20 = vshra.s32 %v863_v19, 1  ;;  %v871_v21 = vshra.s32 %v861_v18, 1  ;;  %v873_v22 = vand.u32 %v863_v19, %v861_v18 }
 0xa30   :  { %vm876_vm0 = vcmp.le.s32.totalorder %v1832_v4, %v869_v17  ;;  %vm877_vm1 = vcmp.le.s32.totalorder %v1834_v5, %v869_v17  ;;  %v913_v48 = vadd.s32 1, %v869_v17 }
 0xa31   :  { %v872_v25 = vadd.s32 %v871_v21, %v870_v20  ;;  %v874_v23 = vand.u32 1, %v873_v22  ;;  %v878_v24 = vsel %vm876_vm0, 1, %v1816_v6  ;;  %v879_v26 = vsel %vm877_vm1, 1, %v1816_v6 }
 0xa32   :  { %v880_v27 = vadd.s32 %v879_v26, %v878_v24 }
 0xa33   :  { %v875_v28 = vadd.s32 %v874_v23, %v872_v25 }
 0xa34   :  { %v882_v29 = vshrl.u32 %v880_v27, 16  ;;  %v881_v31 = vand.u32 65535, %v880_v27 }
 0xa35   :  { %vm894_vm2 = vcmp.le.s32.totalorder %v1832_v4, %v875_v28  ;;  %vm895_vm3 = vcmp.le.s32.totalorder %v1834_v5, %v875_v28  ;;  %v916_v62 = vadd.s32 1, %v875_v28 }
 0xa36   :  { %v884_v30 = vcvt.s32.f32 %v882_v29  ;;  %v896_v32 = vsel %vm894_vm2, 1, %v1816_v6  ;;  %v897_v33 = vsel %vm895_vm3, 1, %v1816_v6  ;;  %v883_v36 = vcvt.s32.f32 %v881_v31 }
 0xa37   :  { %v898_v34 = vadd.s32 %v897_v33, %v896_v32 }
 0xa38   :  { %887 = vadd.xlane.f32.xlu0 %v884_v30 }
 0xa39   :  { %v900_v35 = vshrl.u32 %v898_v34, 16  ;;  %v899_v38 = vand.u32 65535, %v898_v34 }
 0xa3b   :  { %v902_v37 = vcvt.s32.f32 %v900_v35  ;;  %v901_v39 = vcvt.s32.f32 %v899_v38 }
 0xa3c   :  { %885 = vadd.xlane.f32.xlu0 %v883_v36 }
 0xa3d   :  { %905 = vadd.xlane.f32.xlu1 %v902_v37 }
 0xa41   :  { %903 = vadd.xlane.f32.xlu1 %v901_v39 }
 0xac1   :  { %v888_v40 = vpop.xlane.xlu0 %887 }
 0xac2   :  { %v890_v41 = vcvt.f32.s32 %v888_v40 }
 0xac4   :  { %v891_v43 = vshll.u32 %v890_v41, 16 }
 0xac5   :  { %v886_v42 = vpop.xlane.xlu0 %885 }
 0xac6   :  { %v889_v44 = vcvt.f32.s32 %v886_v42  ;;  %v906_v45 = vpop.xlane.xlu1 %905 }
 0xac7   :  { %v908_v46 = vcvt.f32.s32 %v906_v45 }
 0xac8   :  { %v892_v47 = vadd.s32 %v891_v43, %v889_v44 }
 0xac9   :  { %v909_v52 = vshll.u32 %v908_v46, 16 }
 0xaca   :  { %vm893_vm4 = vcmp.ge.s32.totalorder %v892_v47, 207  ;;  %v904_v49 = vpop.xlane.xlu1 %903 }
 0xacb   :  { %v912_v50 = vsel %vm893_vm4, %v869_v17, %v858_v3  ;;  %v914_v51 = vsel %vm893_vm4, %v860_v7, %v913_v48  ;;  %v907_v53 = vcvt.f32.s32 %v904_v49 }
 0xacc   :  { %v918_v54 = vshra.s32 %v914_v51, 1  ;;  %v919_v55 = vshra.s32 %v912_v50, 1  ;;  %v921_v56 = vand.u32 %v914_v51, %v912_v50 }
 0xacd   :  { %v910_v57 = vadd.s32 %v909_v52, %v907_v53 }
 0xace   :  { %v920_v58 = vadd.s32 %v919_v55, %v918_v54  ;;  %v922_v59 = vand.u32 1, %v921_v56 }
 0xacf   :  { %vm911_vm5 = vcmp.ge.s32.totalorder %v910_v57, 212 }
 0xad0   :  { %v923_v60 = vadd.s32 %v922_v59, %v920_v58  ;;  %v915_v61 = vsel %vm911_vm5, %v875_v28, %v861_v18  ;;  %v917_v63 = vsel %vm911_vm5, %v863_v19, %v916_v62 }
 0xad1   :  { %v924_v0 = vshra.s32 %v917_v63, 1  ;;  %v925_v1 = vshra.s32 %v915_v61, 1  ;;  %v927_v2 = vand.u32 %v917_v63, %v915_v61 }
 0xad2   :  { %vm930_vm6 = vcmp.le.s32.totalorder %v1832_v4, %v923_v60  ;;  %vm931_vm7 = vcmp.le.s32.totalorder %v1834_v5, %v923_v60  ;;  %v967_v31 = vadd.s32 1, %v923_v60 }
 0xad3   :  { %v926_v3 = vadd.s32 %v925_v1, %v924_v0  ;;  %v928_v7 = vand.u32 1, %v927_v2  ;;  %v932_v8 = vsel %vm930_vm6, 1, %v1816_v6  ;;  %v933_v9 = vsel %vm931_vm7, 1, %v1816_v6 }
 0xad4   :  { %v934_v10 = vadd.s32 %v933_v9, %v932_v8 }
 0xad5   :  { %v929_v11 = vadd.s32 %v928_v7, %v926_v3 }
 0xad6   :  { %v936_v12 = vshrl.u32 %v934_v10, 16  ;;  %v935_v14 = vand.u32 65535, %v934_v10 }
 0xad7   :  { %vm948_vm8 = vcmp.le.s32.totalorder %v1832_v4, %v929_v11  ;;  %vm949_vm9 = vcmp.le.s32.totalorder %v1834_v5, %v929_v11  ;;  %v970_v43 = vadd.s32 1, %v929_v11 }
 0xad8   :  { %v938_v13 = vcvt.s32.f32 %v936_v12  ;;  %v950_v15 = vsel %vm948_vm8, 1, %v1816_v6  ;;  %v951_v16 = vsel %vm949_vm9, 1, %v1816_v6  ;;  %v937_v19 = vcvt.s32.f32 %v935_v14 }
 0xad9   :  { %v952_v17 = vadd.s32 %v951_v16, %v950_v15 }
 0xada   :  { %941 = vadd.xlane.f32.xlu0 %v938_v13 }
 0xadb   :  { %v954_v18 = vshrl.u32 %v952_v17, 16  ;;  %v953_v21 = vand.u32 65535, %v952_v17 }
 0xadd   :  { %v956_v20 = vcvt.s32.f32 %v954_v18  ;;  %v955_v22 = vcvt.s32.f32 %v953_v21 }
 0xade   :  { %939 = vadd.xlane.f32.xlu0 %v937_v19 }
 0xadf   :  { %959 = vadd.xlane.f32.xlu1 %v956_v20 }
 0xae3   :  { %957 = vadd.xlane.f32.xlu1 %v955_v22 }
 0xb63   :  { %v942_v25 = vpop.xlane.xlu0 %941 }
 0xb64   :  { %v944_v23 = vcvt.f32.s32 %v942_v25 }
 0xb66   :  { %v945_v26 = vshll.u32 %v944_v23, 16 }
 0xb67   :  { %v940_v24 = vpop.xlane.xlu0 %939 }
 0xb68   :  { %v943_v27 = vcvt.f32.s32 %v940_v24  ;;  %v960_v28 = vpop.xlane.xlu1 %959 }
 0xb69   :  { %v962_v29 = vcvt.f32.s32 %v960_v28 }
 0xb6a   :  { %v946_v30 = vadd.s32 %v945_v26, %v943_v27 }
 0xb6b   :  { %v963_v35 = vshll.u32 %v962_v29, 16 }
 0xb6c   :  { %vm947_vm10 = vcmp.ge.s32.totalorder %v946_v30, 207  ;;  %v958_v32 = vpop.xlane.xlu1 %957 }
 0xb6d   :  { %v966_v33 = vsel %vm947_vm10, %v923_v60, %v912_v50  ;;  %v968_v34 = vsel %vm947_vm10, %v914_v51, %v967_v31  ;;  %v961_v36 = vcvt.f32.s32 %v958_v32 }
 0xb6e   :  { %v972_v37 = vshra.s32 %v968_v34, 1  ;;  %v973_v38 = vshra.s32 %v966_v33, 1  ;;  %v975_v39 = vand.u32 %v968_v34, %v966_v33 }
 0xb6f   :  { %v964_v40 = vadd.s32 %v963_v35, %v961_v36 }
 0xb70   :  { %v974_v41 = vadd.s32 %v973_v38, %v972_v37  ;;  %v976_v42 = vand.u32 1, %v975_v39 }
 0xb71   :  { %vm965_vm11 = vcmp.ge.s32.totalorder %v964_v40, 212 }
 0xb72   :  { %v977_v44 = vadd.s32 %v976_v42, %v974_v41  ;;  %v969_v45 = vsel %vm965_vm11, %v929_v11, %v915_v61  ;;  %v971_v46 = vsel %vm965_vm11, %v917_v63, %v970_v43 }
 0xb73   :  { %v978_v47 = vshra.s32 %v971_v46, 1  ;;  %v979_v48 = vshra.s32 %v969_v45, 1  ;;  %v981_v49 = vand.u32 %v971_v46, %v969_v45 }
 0xb74   :  { %vm984_vm12 = vcmp.le.s32.totalorder %v1832_v4, %v977_v44  ;;  %vm985_vm13 = vcmp.le.s32.totalorder %v1834_v5, %v977_v44  ;;  %v1021_v14 = vadd.s32 1, %v977_v44 }
 0xb75   :  { %v980_v50 = vadd.s32 %v979_v48, %v978_v47  ;;  %v982_v51 = vand.u32 1, %v981_v49  ;;  %v986_v52 = vsel %vm984_vm12, 1, %v1816_v6  ;;  %v987_v53 = vsel %vm985_vm13, 1, %v1816_v6 }
 0xb76   :  { %v988_v54 = vadd.s32 %v987_v53, %v986_v52 }
 0xb77   :  { %v983_v55 = vadd.s32 %v982_v51, %v980_v50 }
 0xb78   :  { %v990_v56 = vshrl.u32 %v988_v54, 16  ;;  %v989_v58 = vand.u32 65535, %v988_v54 }
 0xb79   :  { %vm1002_vm14 = vcmp.le.s32.totalorder %v1832_v4, %v983_v55  ;;  %vm1003_vm15 = vcmp.le.s32.totalorder %v1834_v5, %v983_v55  ;;  %v1024_v26 = vadd.s32 1, %v983_v55 }
 0xb7a   :  { %v992_v57 = vcvt.s32.f32 %v990_v56  ;;  %v1004_v59 = vsel %vm1002_vm14, 1, %v1816_v6  ;;  %v1005_v62 = vsel %vm1003_vm15, 1, %v1816_v6  ;;  %v991_v63 = vcvt.s32.f32 %v989_v58 }
 0xb7b   :  { %v1006_v60 = vadd.s32 %v1005_v62, %v1004_v59 }
 0xb7c   :  { %995 = vadd.xlane.f32.xlu0 %v992_v57 }
 0xb7d   :  { %v1008_v61 = vshrl.u32 %v1006_v60, 16  ;;  %v1007_v1 = vand.u32 65535, %v1006_v60 }
 0xb7f   :  { %v1010_v0 = vcvt.s32.f32 %v1008_v61  ;;  %v1009_v2 = vcvt.s32.f32 %v1007_v1 }
 0xb80   :  { %993 = vadd.xlane.f32.xlu0 %v991_v63 }
 0xb81   :  { %1013 = vadd.xlane.f32.xlu1 %v1010_v0 }
 0xb85   :  { %1011 = vadd.xlane.f32.xlu1 %v1009_v2 }
 0xc05   :  { %v996_v3 = vpop.xlane.xlu0 %995 }
 0xc06   :  { %v998_v7 = vcvt.f32.s32 %v996_v3 }
 0xc08   :  { %v999_v9 = vshll.u32 %v998_v7, 16 }
 0xc09   :  { %v994_v8 = vpop.xlane.xlu0 %993 }
 0xc0a   :  { %v997_v10 = vcvt.f32.s32 %v994_v8  ;;  %v1014_v11 = vpop.xlane.xlu1 %1013 }
 0xc0b   :  { %v1016_v12 = vcvt.f32.s32 %v1014_v11 }
 0xc0c   :  { %v1000_v13 = vadd.s32 %v999_v9, %v997_v10 }
 0xc0d   :  { %v1017_v18 = vshll.u32 %v1016_v12, 16 }
 0xc0e   :  { %vm1001_vm0 = vcmp.ge.s32.totalorder %v1000_v13, 207  ;;  %v1012_v15 = vpop.xlane.xlu1 %1011 }
 0xc0f   :  { %v1020_v16 = vsel %vm1001_vm0, %v977_v44, %v966_v33  ;;  %v1022_v17 = vsel %vm1001_vm0, %v968_v34, %v1021_v14  ;;  %v1015_v19 = vcvt.f32.s32 %v1012_v15 }
 0xc10   :  { %v1026_v20 = vshra.s32 %v1022_v17, 1  ;;  %v1027_v21 = vshra.s32 %v1020_v16, 1  ;;  %v1029_v22 = vand.u32 %v1022_v17, %v1020_v16 }
 0xc11   :  { %v1018_v25 = vadd.s32 %v1017_v18, %v1015_v19 }
 0xc12   :  { %v1028_v23 = vadd.s32 %v1027_v21, %v1026_v20  ;;  %v1030_v24 = vand.u32 1, %v1029_v22 }
 0xc13   :  { %vm1019_vm1 = vcmp.ge.s32.totalorder %v1018_v25, 212 }
 0xc14   :  { %v1031_v27 = vadd.s32 %v1030_v24, %v1028_v23  ;;  %v1023_v28 = vsel %vm1019_vm1, %v983_v55, %v969_v45  ;;  %v1025_v29 = vsel %vm1019_vm1, %v971_v46, %v1024_v26 }
 0xc15   :  { %v1032_v30 = vshra.s32 %v1025_v29, 1  ;;  %v1033_v31 = vshra.s32 %v1023_v28, 1  ;;  %v1035_v32 = vand.u32 %v1025_v29, %v1023_v28 }
 0xc16   :  { %vm1038_vm2 = vcmp.le.s32.totalorder %v1832_v4, %v1031_v27  ;;  %vm1039_vm3 = vcmp.le.s32.totalorder %v1834_v5, %v1031_v27  ;;  %v1075_v58 = vadd.s32 1, %v1031_v27 }
 0xc17   :  { %v1034_v33 = vadd.s32 %v1033_v31, %v1032_v30  ;;  %v1036_v34 = vand.u32 1, %v1035_v32  ;;  %v1040_v35 = vsel %vm1038_vm2, 1, %v1816_v6  ;;  %v1041_v36 = vsel %vm1039_vm3, 1, %v1816_v6 }
 0xc18   :  { %v1042_v37 = vadd.s32 %v1041_v36, %v1040_v35 }
 0xc19   :  { %v1037_v38 = vadd.s32 %v1036_v34, %v1034_v33 }
 0xc1a   :  { %v1044_v39 = vshrl.u32 %v1042_v37, 16  ;;  %v1043_v41 = vand.u32 65535, %v1042_v37 }
 0xc1b   :  { %vm1056_vm4 = vcmp.le.s32.totalorder %v1832_v4, %v1037_v38  ;;  %vm1057_vm5 = vcmp.le.s32.totalorder %v1834_v5, %v1037_v38  ;;  %v1078_v9 = vadd.s32 1, %v1037_v38 }
 0xc1c   :  { %v1046_v40 = vcvt.s32.f32 %v1044_v39  ;;  %v1058_v42 = vsel %vm1056_vm4, 1, %v1816_v6  ;;  %v1059_v43 = vsel %vm1057_vm5, 1, %v1816_v6  ;;  %v1045_v46 = vcvt.s32.f32 %v1043_v41 }
 0xc1d   :  { %v1060_v44 = vadd.s32 %v1059_v43, %v1058_v42 }
 0xc1e   :  { %1049 = vadd.xlane.f32.xlu0 %v1046_v40 }
 0xc1f   :  { %v1062_v45 = vshrl.u32 %v1060_v44, 16  ;;  %v1061_v48 = vand.u32 65535, %v1060_v44 }
 0xc21   :  { %v1064_v47 = vcvt.s32.f32 %v1062_v45  ;;  %v1063_v49 = vcvt.s32.f32 %v1061_v48 }
 0xc22   :  { %1047 = vadd.xlane.f32.xlu0 %v1045_v46 }
 0xc23   :  { %1067 = vadd.xlane.f32.xlu1 %v1064_v47 }
 0xc27   :  { %1065 = vadd.xlane.f32.xlu1 %v1063_v49 }
 0xca7   :  { %v1050_v50 = vpop.xlane.xlu0 %1049 }
 0xca8   :  { %v1052_v51 = vcvt.f32.s32 %v1050_v50 }
 0xcaa   :  { %v1053_v53 = vshll.u32 %v1052_v51, 16 }
 0xcab   :  { %v1048_v52 = vpop.xlane.xlu0 %1047 }
 0xcac   :  { %v1051_v54 = vcvt.f32.s32 %v1048_v52  ;;  %v1068_v55 = vpop.xlane.xlu1 %1067 }
 0xcad   :  { %v1070_v56 = vcvt.f32.s32 %v1068_v55 }
 0xcae   :  { %v1054_v57 = vadd.s32 %v1053_v53, %v1051_v54 }
 0xcaf   :  { %v1071_v61 = vshll.u32 %v1070_v56, 16 }
 0xcb0   :  { %vm1055_vm6 = vcmp.ge.s32.totalorder %v1054_v57, 207  ;;  %v1066_v59 = vpop.xlane.xlu1 %1065 }
 0xcb1   :  { %v1074_v62 = vsel %vm1055_vm6, %v1031_v27, %v1020_v16  ;;  %v1076_v60 = vsel %vm1055_vm6, %v1022_v17, %v1075_v58  ;;  %v1069_v63 = vcvt.f32.s32 %v1066_v59 }
 0xcb2   :  { %v1080_v0 = vshra.s32 %v1076_v60, 1  ;;  %v1081_v1 = vshra.s32 %v1074_v62, 1  ;;  %v1083_v2 = vand.u32 %v1076_v60, %v1074_v62 }
 0xcb3   :  { %v1072_v3 = vadd.s32 %v1071_v61, %v1069_v63 }
 0xcb4   :  { %v1082_v7 = vadd.s32 %v1081_v1, %v1080_v0  ;;  %v1084_v8 = vand.u32 1, %v1083_v2 }
 0xcb5   :  { %vm1073_vm7 = vcmp.ge.s32.totalorder %v1072_v3, 212 }
 0xcb6   :  { %v1085_v10 = vadd.s32 %v1084_v8, %v1082_v7  ;;  %v1077_v11 = vsel %vm1073_vm7, %v1037_v38, %v1023_v28  ;;  %v1079_v12 = vsel %vm1073_vm7, %v1025_v29, %v1078_v9 }
 0xcb7   :  { %v1086_v13 = vshra.s32 %v1079_v12, 1  ;;  %v1087_v14 = vshra.s32 %v1077_v11, 1  ;;  %v1089_v15 = vand.u32 %v1079_v12, %v1077_v11 }
 0xcb8   :  { %vm1092_vm8 = vcmp.le.s32.totalorder %v1832_v4, %v1085_v10  ;;  %vm1093_vm9 = vcmp.le.s32.totalorder %v1834_v5, %v1085_v10  ;;  %v1129_v41 = vadd.s32 1, %v1085_v10 }
 0xcb9   :  { %v1088_v16 = vadd.s32 %v1087_v14, %v1086_v13  ;;  %v1090_v17 = vand.u32 1, %v1089_v15  ;;  %v1094_v18 = vsel %vm1092_vm8, 1, %v1816_v6  ;;  %v1095_v19 = vsel %vm1093_vm9, 1, %v1816_v6 }
 0xcba   :  { %v1096_v20 = vadd.s32 %v1095_v19, %v1094_v18 }
 0xcbb   :  { %v1091_v21 = vadd.s32 %v1090_v17, %v1088_v16 }
 0xcbc   :  { %v1098_v22 = vshrl.u32 %v1096_v20, 16  ;;  %v1097_v23 = vand.u32 65535, %v1096_v20 }
 0xcbd   :  { %vm1110_vm10 = vcmp.le.s32.totalorder %v1832_v4, %v1091_v21  ;;  %vm1111_vm11 = vcmp.le.s32.totalorder %v1834_v5, %v1091_v21  ;;  %v1132_v53 = vadd.s32 1, %v1091_v21 }
 0xcbe   :  { %v1100_v25 = vcvt.s32.f32 %v1098_v22  ;;  %v1112_v24 = vsel %vm1110_vm10, 1, %v1816_v6  ;;  %v1113_v26 = vsel %vm1111_vm11, 1, %v1816_v6  ;;  %v1099_v29 = vcvt.s32.f32 %v1097_v23 }
 0xcbf   :  { %v1114_v27 = vadd.s32 %v1113_v26, %v1112_v24 }
 0xcc0   :  { %1103 = vadd.xlane.f32.xlu0 %v1100_v25 }
 0xcc1   :  { %v1116_v28 = vshrl.u32 %v1114_v27, 16  ;;  %v1115_v31 = vand.u32 65535, %v1114_v27 }
 0xcc3   :  { %v1118_v30 = vcvt.s32.f32 %v1116_v28  ;;  %v1117_v32 = vcvt.s32.f32 %v1115_v31 }
 0xcc4   :  { %1101 = vadd.xlane.f32.xlu0 %v1099_v29 }
 0xcc5   :  { %1121 = vadd.xlane.f32.xlu1 %v1118_v30 }
 0xcc9   :  { %1119 = vadd.xlane.f32.xlu1 %v1117_v32 }
 0xd49   :  { %v1104_v33 = vpop.xlane.xlu0 %1103 }
 0xd4a   :  { %v1106_v34 = vcvt.f32.s32 %v1104_v33 }
 0xd4c   :  { %v1107_v36 = vshll.u32 %v1106_v34, 16 }
 0xd4d   :  { %v1102_v35 = vpop.xlane.xlu0 %1101 }
 0xd4e   :  { %v1105_v37 = vcvt.f32.s32 %v1102_v35  ;;  %v1122_v38 = vpop.xlane.xlu1 %1121 }
 0xd4f   :  { %v1124_v39 = vcvt.f32.s32 %v1122_v38 }
 0xd50   :  { %v1108_v40 = vadd.s32 %v1107_v36, %v1105_v37 }
 0xd51   :  { %v1125_v45 = vshll.u32 %v1124_v39, 16 }
 0xd52   :  { %vm1109_vm12 = vcmp.ge.s32.totalorder %v1108_v40, 207  ;;  %v1120_v42 = vpop.xlane.xlu1 %1119 }
 0xd53   :  { %v1128_v43 = vsel %vm1109_vm12, %v1085_v10, %v1074_v62  ;;  %v1130_v44 = vsel %vm1109_vm12, %v1076_v60, %v1129_v41  ;;  %v1123_v46 = vcvt.f32.s32 %v1120_v42 }
 0xd54   :  { %v1134_v47 = vshra.s32 %v1130_v44, 1  ;;  %v1135_v48 = vshra.s32 %v1128_v43, 1  ;;  %v1137_v49 = vand.u32 %v1130_v44, %v1128_v43 }
 0xd55   :  { %v1126_v50 = vadd.s32 %v1125_v45, %v1123_v46 }
 0xd56   :  { %v1136_v51 = vadd.s32 %v1135_v48, %v1134_v47  ;;  %v1138_v52 = vand.u32 1, %v1137_v49 }
 0xd57   :  { %vm1127_vm13 = vcmp.ge.s32.totalorder %v1126_v50, 212 }
 0xd58   :  { %v1139_v54 = vadd.s32 %v1138_v52, %v1136_v51  ;;  %v1131_v55 = vsel %vm1127_vm13, %v1091_v21, %v1077_v11  ;;  %v1133_v56 = vsel %vm1127_vm13, %v1079_v12, %v1132_v53 }
 0xd59   :  { %v1140_v57 = vshra.s32 %v1133_v56, 1  ;;  %v1141_v58 = vshra.s32 %v1131_v55, 1  ;;  %v1143_v59 = vand.u32 %v1133_v56, %v1131_v55 }
 0xd5a   :  { %vm1146_vm14 = vcmp.le.s32.totalorder %v1832_v4, %v1139_v54  ;;  %vm1147_vm15 = vcmp.le.s32.totalorder %v1834_v5, %v1139_v54  ;;  %v1183_v23 = vadd.s32 1, %v1139_v54 }
 0xd5b   :  { %v1142_v62 = vadd.s32 %v1141_v58, %v1140_v57  ;;  %v1144_v60 = vand.u32 1, %v1143_v59  ;;  %v1148_v61 = vsel %vm1146_vm14, 1, %v1816_v6  ;;  %v1149_v63 = vsel %vm1147_vm15, 1, %v1816_v6 }
 0xd5c   :  { %v1150_v0 = vadd.s32 %v1149_v63, %v1148_v61 }
 0xd5d   :  { %v1145_v1 = vadd.s32 %v1144_v60, %v1142_v62 }
 0xd5e   :  { %v1152_v2 = vshrl.u32 %v1150_v0, 16  ;;  %v1151_v7 = vand.u32 65535, %v1150_v0 }
 0xd5f   :  { %vm1164_vm0 = vcmp.le.s32.totalorder %v1832_v4, %v1145_v1  ;;  %vm1165_vm1 = vcmp.le.s32.totalorder %v1834_v5, %v1145_v1  ;;  %v1186_v36 = vadd.s32 1, %v1145_v1 }
 0xd60   :  { %v1154_v3 = vcvt.s32.f32 %v1152_v2  ;;  %v1166_v8 = vsel %vm1164_vm0, 1, %v1816_v6  ;;  %v1167_v9 = vsel %vm1165_vm1, 1, %v1816_v6  ;;  %v1153_v12 = vcvt.s32.f32 %v1151_v7 }
 0xd61   :  { %v1168_v10 = vadd.s32 %v1167_v9, %v1166_v8 }
 0xd62   :  { %1157 = vadd.xlane.f32.xlu0 %v1154_v3 }
 0xd63   :  { %v1170_v11 = vshrl.u32 %v1168_v10, 16  ;;  %v1169_v14 = vand.u32 65535, %v1168_v10 }
 0xd65   :  { %v1172_v13 = vcvt.s32.f32 %v1170_v11  ;;  %v1171_v15 = vcvt.s32.f32 %v1169_v14 }
 0xd66   :  { %1155 = vadd.xlane.f32.xlu0 %v1153_v12 }
 0xd67   :  { %1175 = vadd.xlane.f32.xlu1 %v1172_v13 }
 0xd6b   :  { %1173 = vadd.xlane.f32.xlu1 %v1171_v15 }
 0xdeb   :  { %v1158_v16 = vpop.xlane.xlu0 %1157 }
 0xdec   :  { %v1160_v17 = vcvt.f32.s32 %v1158_v16 }
 0xdee   :  { %v1161_v19 = vshll.u32 %v1160_v17, 16 }
 0xdef   :  { %v1156_v18 = vpop.xlane.xlu0 %1155 }
 0xdf0   :  { %v1159_v20 = vcvt.f32.s32 %v1156_v18  ;;  %v1176_v21 = vpop.xlane.xlu1 %1175 }
 0xdf1   :  { %v1178_v22 = vcvt.f32.s32 %v1176_v21 }
 0xdf2   :  { %v1162_v25 = vadd.s32 %v1161_v19, %v1159_v20 }
 0xdf3   :  { %v1179_v28 = vshll.u32 %v1178_v22, 16 }
 0xdf4   :  { %vm1163_vm2 = vcmp.ge.s32.totalorder %v1162_v25, 207  ;;  %v1174_v24 = vpop.xlane.xlu1 %1173 }
 0xdf5   :  { %v1182_v26 = vsel %vm1163_vm2, %v1139_v54, %v1128_v43  ;;  %v1184_v27 = vsel %vm1163_vm2, %v1130_v44, %v1183_v23  ;;  %v1177_v29 = vcvt.f32.s32 %v1174_v24 }
 0xdf6   :  { %v1188_v30 = vshra.s32 %v1184_v27, 1  ;;  %v1189_v31 = vshra.s32 %v1182_v26, 1  ;;  %v1191_v32 = vand.u32 %v1184_v27, %v1182_v26 }
 0xdf7   :  { %v1180_v33 = vadd.s32 %v1179_v28, %v1177_v29 }
 0xdf8   :  { %v1190_v34 = vadd.s32 %v1189_v31, %v1188_v30  ;;  %v1192_v35 = vand.u32 1, %v1191_v32 }
 0xdf9   :  { %vm1181_vm3 = vcmp.ge.s32.totalorder %v1180_v33, 212 }
 0xdfa   :  { %v1193_v37 = vadd.s32 %v1192_v35, %v1190_v34  ;;  %v1185_v38 = vsel %vm1181_vm3, %v1145_v1, %v1131_v55  ;;  %v1187_v39 = vsel %vm1181_vm3, %v1133_v56, %v1186_v36 }
 0xdfb   :  { %v1194_v40 = vshra.s32 %v1187_v39, 1  ;;  %v1195_v41 = vshra.s32 %v1185_v38, 1  ;;  %v1197_v42 = vand.u32 %v1187_v39, %v1185_v38 }
 0xdfc   :  { %vm1200_vm4 = vcmp.le.s32.totalorder %v1832_v4, %v1193_v37  ;;  %vm1201_vm5 = vcmp.le.s32.totalorder %v1834_v5, %v1193_v37  ;;  %v1237_v7 = vadd.s32 1, %v1193_v37 }
 0xdfd   :  { %v1196_v43 = vadd.s32 %v1195_v41, %v1194_v40  ;;  %v1198_v44 = vand.u32 1, %v1197_v42  ;;  %v1202_v45 = vsel %vm1200_vm4, 1, %v1816_v6  ;;  %v1203_v46 = vsel %vm1201_vm5, 1, %v1816_v6 }
 0xdfe   :  { %v1204_v47 = vadd.s32 %v1203_v46, %v1202_v45 }
 0xdff   :  { %v1199_v48 = vadd.s32 %v1198_v44, %v1196_v43 }
 0xe00   :  { %v1206_v49 = vshrl.u32 %v1204_v47, 16  ;;  %v1205_v51 = vand.u32 65535, %v1204_v47 }
 0xe01   :  { %vm1218_vm6 = vcmp.le.s32.totalorder %v1832_v4, %v1199_v48  ;;  %vm1219_vm7 = vcmp.le.s32.totalorder %v1834_v5, %v1199_v48  ;;  %v1240_v19 = vadd.s32 1, %v1199_v48 }
 0xe02   :  { %v1208_v50 = vcvt.s32.f32 %v1206_v49  ;;  %v1220_v52 = vsel %vm1218_vm6, 1, %v1816_v6  ;;  %v1221_v53 = vsel %vm1219_vm7, 1, %v1816_v6  ;;  %v1207_v56 = vcvt.s32.f32 %v1205_v51 }
 0xe03   :  { %v1222_v54 = vadd.s32 %v1221_v53, %v1220_v52 }
 0xe04   :  { %1211 = vadd.xlane.f32.xlu0 %v1208_v50 }
 0xe05   :  { %v1224_v55 = vshrl.u32 %v1222_v54, 16  ;;  %v1223_v58 = vand.u32 65535, %v1222_v54 }
 0xe07   :  { %v1226_v57 = vcvt.s32.f32 %v1224_v55  ;;  %v1225_v59 = vcvt.s32.f32 %v1223_v58 }
 0xe08   :  { %1209 = vadd.xlane.f32.xlu0 %v1207_v56 }
 0xe09   :  { %1229 = vadd.xlane.f32.xlu1 %v1226_v57 }
 0xe0d   :  { %1227 = vadd.xlane.f32.xlu1 %v1225_v59 }
 0xe8d   :  { %v1212_v62 = vpop.xlane.xlu0 %1211 }
 0xe8e   :  { %v1214_v60 = vcvt.f32.s32 %v1212_v62 }
 0xe90   :  { %v1215_v63 = vshll.u32 %v1214_v60, 16 }
 0xe91   :  { %v1210_v61 = vpop.xlane.xlu0 %1209 }
 0xe92   :  { %v1213_v0 = vcvt.f32.s32 %v1210_v61  ;;  %v1230_v1 = vpop.xlane.xlu1 %1229 }
 0xe93   :  { %v1232_v2 = vcvt.f32.s32 %v1230_v1 }
 0xe94   :  { %v1216_v3 = vadd.s32 %v1215_v63, %v1213_v0 }
 0xe95   :  { %v1233_v11 = vshll.u32 %v1232_v2, 16 }
 0xe96   :  { %vm1217_vm8 = vcmp.ge.s32.totalorder %v1216_v3, 207  ;;  %v1228_v8 = vpop.xlane.xlu1 %1227 }
 0xe97   :  { %v1236_v9 = vsel %vm1217_vm8, %v1193_v37, %v1182_v26  ;;  %v1238_v10 = vsel %vm1217_vm8, %v1184_v27, %v1237_v7  ;;  %v1231_v12 = vcvt.f32.s32 %v1228_v8 }
 0xe98   :  { %v1242_v13 = vshra.s32 %v1238_v10, 1  ;;  %v1243_v14 = vshra.s32 %v1236_v9, 1  ;;  %v1245_v15 = vand.u32 %v1238_v10, %v1236_v9 }
 0xe99   :  { %v1234_v16 = vadd.s32 %v1233_v11, %v1231_v12 }
 0xe9a   :  { %v1244_v17 = vadd.s32 %v1243_v14, %v1242_v13  ;;  %v1246_v18 = vand.u32 1, %v1245_v15 }
 0xe9b   :  { %vm1235_vm9 = vcmp.ge.s32.totalorder %v1234_v16, 212 }
 0xe9c   :  { %v1247_v20 = vadd.s32 %v1246_v18, %v1244_v17  ;;  %v1239_v21 = vsel %vm1235_vm9, %v1199_v48, %v1185_v38  ;;  %v1241_v22 = vsel %vm1235_vm9, %v1187_v39, %v1240_v19 }
 0xe9d   :  { %v1248_v25 = vshra.s32 %v1241_v22, 1  ;;  %v1249_v23 = vshra.s32 %v1239_v21, 1  ;;  %v1251_v24 = vand.u32 %v1241_v22, %v1239_v21 }
 0xe9e   :  { %vm1254_vm10 = vcmp.le.s32.totalorder %v1832_v4, %v1247_v20  ;;  %vm1255_vm11 = vcmp.le.s32.totalorder %v1834_v5, %v1247_v20  ;;  %v1291_v51 = vadd.s32 1, %v1247_v20 }
 0xe9f   :  { %v1250_v26 = vadd.s32 %v1249_v23, %v1248_v25  ;;  %v1252_v27 = vand.u32 1, %v1251_v24  ;;  %v1256_v28 = vsel %vm1254_vm10, 1, %v1816_v6  ;;  %v1257_v29 = vsel %vm1255_vm11, 1, %v1816_v6 }
 0xea0   :  { %v1258_v30 = vadd.s32 %v1257_v29, %v1256_v28 }
 0xea1   :  { %v1253_v31 = vadd.s32 %v1252_v27, %v1250_v26 }
 0xea2   :  { %v1260_v32 = vshrl.u32 %v1258_v30, 16  ;;  %v1259_v34 = vand.u32 65535, %v1258_v30 }
 0xea3   :  { %vm1272_vm12 = vcmp.le.s32.totalorder %v1832_v4, %v1253_v31  ;;  %vm1273_vm13 = vcmp.le.s32.totalorder %v1834_v5, %v1253_v31  ;;  %v1294_v63 = vadd.s32 1, %v1253_v31 }
 0xea4   :  { %v1262_v33 = vcvt.s32.f32 %v1260_v32  ;;  %v1274_v35 = vsel %vm1272_vm12, 1, %v1816_v6  ;;  %v1275_v36 = vsel %vm1273_vm13, 1, %v1816_v6  ;;  %v1261_v39 = vcvt.s32.f32 %v1259_v34 }
 0xea5   :  { %v1276_v37 = vadd.s32 %v1275_v36, %v1274_v35 }
 0xea6   :  { %1265 = vadd.xlane.f32.xlu0 %v1262_v33 }
 0xea7   :  { %v1278_v38 = vshrl.u32 %v1276_v37, 16  ;;  %v1277_v41 = vand.u32 65535, %v1276_v37 }
 0xea9   :  { %v1280_v40 = vcvt.s32.f32 %v1278_v38  ;;  %v1279_v42 = vcvt.s32.f32 %v1277_v41 }
 0xeaa   :  { %1263 = vadd.xlane.f32.xlu0 %v1261_v39 }
 0xeab   :  { %1283 = vadd.xlane.f32.xlu1 %v1280_v40 }
 0xeaf   :  { %1281 = vadd.xlane.f32.xlu1 %v1279_v42 }
 0xf2f   :  { %v1266_v43 = vpop.xlane.xlu0 %1265 }
 0xf30   :  { %v1268_v44 = vcvt.f32.s32 %v1266_v43 }
 0xf32   :  { %v1269_v46 = vshll.u32 %v1268_v44, 16 }
 0xf33   :  { %v1264_v45 = vpop.xlane.xlu0 %1263 }
 0xf34   :  { %v1267_v47 = vcvt.f32.s32 %v1264_v45  ;;  %v1284_v48 = vpop.xlane.xlu1 %1283 }
 0xf35   :  { %v1286_v49 = vcvt.f32.s32 %v1284_v48 }
 0xf36   :  { %v1270_v50 = vadd.s32 %v1269_v46, %v1267_v47 }
 0xf37   :  { %v1287_v55 = vshll.u32 %v1286_v49, 16 }
 0xf38   :  { %vm1271_vm14 = vcmp.ge.s32.totalorder %v1270_v50, 207  ;;  %v1282_v52 = vpop.xlane.xlu1 %1281 }
 0xf39   :  { %v1290_v53 = vsel %vm1271_vm14, %v1247_v20, %v1236_v9  ;;  %v1292_v54 = vsel %vm1271_vm14, %v1238_v10, %v1291_v51  ;;  %v1285_v56 = vcvt.f32.s32 %v1282_v52 }
 0xf3a   :  { %v1296_v57 = vshra.s32 %v1292_v54, 1  ;;  %v1297_v58 = vshra.s32 %v1290_v53, 1  ;;  %v1299_v59 = vand.u32 %v1292_v54, %v1290_v53 }
 0xf3b   :  { %v1288_v62 = vadd.s32 %v1287_v55, %v1285_v56 }
 0xf3c   :  { %v1298_v60 = vadd.s32 %v1297_v58, %v1296_v57  ;;  %v1300_v61 = vand.u32 1, %v1299_v59 }
 0xf3d   :  { %vm1289_vm15 = vcmp.ge.s32.totalorder %v1288_v62, 212 }
 0xf3e   :  { %v1301_v0 = vadd.s32 %v1300_v61, %v1298_v60  ;;  %v1293_v1 = vsel %vm1289_vm15, %v1253_v31, %v1239_v21  ;;  %v1295_v2 = vsel %vm1289_vm15, %v1241_v22, %v1294_v63 }
 0xf3f   :  { %v1302_v3 = vshra.s32 %v1295_v2, 1  ;;  %v1303_v7 = vshra.s32 %v1293_v1, 1  ;;  %v1305_v8 = vand.u32 %v1295_v2, %v1293_v1 }
 0xf40   :  { %vm1308_vm0 = vcmp.le.s32.totalorder %v1832_v4, %v1301_v0  ;;  %vm1309_vm1 = vcmp.le.s32.totalorder %v1834_v5, %v1301_v0  ;;  %v1345_v34 = vadd.s32 1, %v1301_v0 }
 0xf41   :  { %v1304_v9 = vadd.s32 %v1303_v7, %v1302_v3  ;;  %v1306_v10 = vand.u32 1, %v1305_v8  ;;  %v1310_v11 = vsel %vm1308_vm0, 1, %v1816_v6  ;;  %v1311_v12 = vsel %vm1309_vm1, 1, %v1816_v6 }
 0xf42   :  { %v1312_v13 = vadd.s32 %v1311_v12, %v1310_v11 }
 0xf43   :  { %v1307_v14 = vadd.s32 %v1306_v10, %v1304_v9 }
 0xf44   :  { %v1314_v15 = vshrl.u32 %v1312_v13, 16  ;;  %v1313_v17 = vand.u32 65535, %v1312_v13 }
 0xf45   :  { %vm1326_vm2 = vcmp.le.s32.totalorder %v1832_v4, %v1307_v14  ;;  %vm1327_vm3 = vcmp.le.s32.totalorder %v1834_v5, %v1307_v14  ;;  %v1348_v46 = vadd.s32 1, %v1307_v14 }
 0xf46   :  { %v1316_v16 = vcvt.s32.f32 %v1314_v15  ;;  %v1328_v18 = vsel %vm1326_vm2, 1, %v1816_v6  ;;  %v1329_v19 = vsel %vm1327_vm3, 1, %v1816_v6  ;;  %v1315_v22 = vcvt.s32.f32 %v1313_v17 }
 0xf47   :  { %v1330_v20 = vadd.s32 %v1329_v19, %v1328_v18 }
 0xf48   :  { %1319 = vadd.xlane.f32.xlu0 %v1316_v16 }
 0xf49   :  { %v1332_v21 = vshrl.u32 %v1330_v20, 16  ;;  %v1331_v23 = vand.u32 65535, %v1330_v20 }
 0xf4b   :  { %v1334_v25 = vcvt.s32.f32 %v1332_v21  ;;  %v1333_v24 = vcvt.s32.f32 %v1331_v23 }
 0xf4c   :  { %1317 = vadd.xlane.f32.xlu0 %v1315_v22 }
 0xf4d   :  { %1337 = vadd.xlane.f32.xlu1 %v1334_v25 }
 0xf51   :  { %1335 = vadd.xlane.f32.xlu1 %v1333_v24 }
 0xfd1   :  { %v1320_v26 = vpop.xlane.xlu0 %1319 }
 0xfd2   :  { %v1322_v27 = vcvt.f32.s32 %v1320_v26 }
 0xfd4   :  { %v1323_v29 = vshll.u32 %v1322_v27, 16 }
 0xfd5   :  { %v1318_v28 = vpop.xlane.xlu0 %1317 }
 0xfd6   :  { %v1321_v30 = vcvt.f32.s32 %v1318_v28  ;;  %v1338_v31 = vpop.xlane.xlu1 %1337 }
 0xfd7   :  { %v1340_v32 = vcvt.f32.s32 %v1338_v31 }
 0xfd8   :  { %v1324_v33 = vadd.s32 %v1323_v29, %v1321_v30 }
 0xfd9   :  { %v1341_v38 = vshll.u32 %v1340_v32, 16 }
 0xfda   :  { %vm1325_vm4 = vcmp.ge.s32.totalorder %v1324_v33, 207  ;;  %v1336_v35 = vpop.xlane.xlu1 %1335 }
 0xfdb   :  { %v1344_v36 = vsel %vm1325_vm4, %v1301_v0, %v1290_v53  ;;  %v1346_v37 = vsel %vm1325_vm4, %v1292_v54, %v1345_v34  ;;  %v1339_v39 = vcvt.f32.s32 %v1336_v35 }
 0xfdc   :  { %v1350_v40 = vshra.s32 %v1346_v37, 1  ;;  %v1351_v41 = vshra.s32 %v1344_v36, 1  ;;  %v1353_v42 = vand.u32 %v1346_v37, %v1344_v36 }
 0xfdd   :  { %v1342_v43 = vadd.s32 %v1341_v38, %v1339_v39 }
 0xfde   :  { %v1352_v44 = vadd.s32 %v1351_v41, %v1350_v40  ;;  %v1354_v45 = vand.u32 1, %v1353_v42 }
 0xfdf   :  { %vm1343_vm5 = vcmp.ge.s32.totalorder %v1342_v43, 212 }
 0xfe0   :  { %v1355_v47 = vadd.s32 %v1354_v45, %v1352_v44  ;;  %v1347_v48 = vsel %vm1343_vm5, %v1307_v14, %v1293_v1  ;;  %v1349_v49 = vsel %vm1343_vm5, %v1295_v2, %v1348_v46 }
 0xfe1   :  { %v1356_v50 = vshra.s32 %v1349_v49, 1  ;;  %v1357_v51 = vshra.s32 %v1347_v48, 1  ;;  %v1359_v52 = vand.u32 %v1349_v49, %v1347_v48 }
 0xfe2   :  { %vm1362_vm6 = vcmp.le.s32.totalorder %v1832_v4, %v1355_v47  ;;  %vm1363_vm7 = vcmp.le.s32.totalorder %v1834_v5, %v1355_v47  ;;  %v1399_v17 = vadd.s32 1, %v1355_v47 }
 0xfe3   :  { %v1358_v53 = vadd.s32 %v1357_v51, %v1356_v50  ;;  %v1360_v54 = vand.u32 1, %v1359_v52  ;;  %v1364_v55 = vsel %vm1362_vm6, 1, %v1816_v6  ;;  %v1365_v56 = vsel %vm1363_vm7, 1, %v1816_v6 }
 0xfe4   :  { %v1366_v57 = vadd.s32 %v1365_v56, %v1364_v55 }
 0xfe5   :  { %v1361_v58 = vadd.s32 %v1360_v54, %v1358_v53 }
 0xfe6   :  { %v1368_v59 = vshrl.u32 %v1366_v57, 16  ;;  %v1367_v60 = vand.u32 65535, %v1366_v57 }
 0xfe7   :  { %vm1380_vm8 = vcmp.le.s32.totalorder %v1832_v4, %v1361_v58  ;;  %vm1381_vm9 = vcmp.le.s32.totalorder %v1834_v5, %v1361_v58  ;;  %v1402_v29 = vadd.s32 1, %v1361_v58 }
 0xfe8   :  { %v1370_v62 = vcvt.s32.f32 %v1368_v59  ;;  %v1382_v61 = vsel %vm1380_vm8, 1, %v1816_v6  ;;  %v1383_v63 = vsel %vm1381_vm9, 1, %v1816_v6  ;;  %v1369_v2 = vcvt.s32.f32 %v1367_v60 }
 0xfe9   :  { %v1384_v0 = vadd.s32 %v1383_v63, %v1382_v61 }
 0xfea   :  { %1373 = vadd.xlane.f32.xlu0 %v1370_v62 }
 0xfeb   :  { %v1386_v1 = vshrl.u32 %v1384_v0, 16  ;;  %v1385_v7 = vand.u32 65535, %v1384_v0 }
 0xfed   :  { %v1388_v3 = vcvt.s32.f32 %v1386_v1  ;;  %v1387_v8 = vcvt.s32.f32 %v1385_v7 }
 0xfee   :  { %1371 = vadd.xlane.f32.xlu0 %v1369_v2 }
 0xfef   :  { %1391 = vadd.xlane.f32.xlu1 %v1388_v3 }
 0xff3   :  { %1389 = vadd.xlane.f32.xlu1 %v1387_v8 }
0x1073   :  { %v1374_v9 = vpop.xlane.xlu0 %1373 }
0x1074   :  { %v1376_v10 = vcvt.f32.s32 %v1374_v9 }
0x1076   :  { %v1377_v12 = vshll.u32 %v1376_v10, 16 }
0x1077   :  { %v1372_v11 = vpop.xlane.xlu0 %1371 }
0x1078   :  { %v1375_v13 = vcvt.f32.s32 %v1372_v11  ;;  %v1392_v14 = vpop.xlane.xlu1 %1391 }
0x1079   :  { %v1394_v15 = vcvt.f32.s32 %v1392_v14 }
0x107a   :  { %v1378_v16 = vadd.s32 %v1377_v12, %v1375_v13 }
0x107b   :  { %v1395_v21 = vshll.u32 %v1394_v15, 16 }
0x107c   :  { %vm1379_vm10 = vcmp.ge.s32.totalorder %v1378_v16, 207  ;;  %v1390_v18 = vpop.xlane.xlu1 %1389 }
0x107d   :  { %v1398_v19 = vsel %vm1379_vm10, %v1355_v47, %v1344_v36  ;;  %v1400_v20 = vsel %vm1379_vm10, %v1346_v37, %v1399_v17  ;;  %v1393_v22 = vcvt.f32.s32 %v1390_v18 }
0x107e   :  { %v1404_v25 = vshra.s32 %v1400_v20, 1  ;;  %v1405_v23 = vshra.s32 %v1398_v19, 1  ;;  %v1407_v24 = vand.u32 %v1400_v20, %v1398_v19 }
0x107f   :  { %v1396_v26 = vadd.s32 %v1395_v21, %v1393_v22 }
0x1080   :  { %v1406_v27 = vadd.s32 %v1405_v23, %v1404_v25  ;;  %v1408_v28 = vand.u32 1, %v1407_v24 }
0x1081   :  { %vm1397_vm11 = vcmp.ge.s32.totalorder %v1396_v26, 212 }
0x1082   :  { %v1409_v30 = vadd.s32 %v1408_v28, %v1406_v27  ;;  %v1401_v31 = vsel %vm1397_vm11, %v1361_v58, %v1347_v48  ;;  %v1403_v32 = vsel %vm1397_vm11, %v1349_v49, %v1402_v29 }
0x1083   :  { %v1410_v33 = vshra.s32 %v1403_v32, 1  ;;  %v1411_v34 = vshra.s32 %v1401_v31, 1  ;;  %v1413_v35 = vand.u32 %v1403_v32, %v1401_v31 }
0x1084   :  { %vm1416_vm12 = vcmp.le.s32.totalorder %v1832_v4, %v1409_v30  ;;  %vm1417_vm13 = vcmp.le.s32.totalorder %v1834_v5, %v1409_v30  ;;  %v1453_v60 = vadd.s32 1, %v1409_v30 }
0x1085   :  { %v1412_v36 = vadd.s32 %v1411_v34, %v1410_v33  ;;  %v1414_v37 = vand.u32 1, %v1413_v35  ;;  %v1418_v38 = vsel %vm1416_vm12, 1, %v1816_v6  ;;  %v1419_v39 = vsel %vm1417_vm13, 1, %v1816_v6 }
0x1086   :  { %v1420_v40 = vadd.s32 %v1419_v39, %v1418_v38 }
0x1087   :  { %v1415_v41 = vadd.s32 %v1414_v37, %v1412_v36 }
0x1088   :  { %v1422_v42 = vshrl.u32 %v1420_v40, 16  ;;  %v1421_v44 = vand.u32 65535, %v1420_v40 }
0x1089   :  { %vm1434_vm14 = vcmp.le.s32.totalorder %v1832_v4, %v1415_v41  ;;  %vm1435_vm15 = vcmp.le.s32.totalorder %v1834_v5, %v1415_v41  ;;  %v1456_v12 = vadd.s32 1, %v1415_v41 }
0x108a   :  { %v1424_v43 = vcvt.s32.f32 %v1422_v42  ;;  %v1436_v45 = vsel %vm1434_vm14, 1, %v1816_v6  ;;  %v1437_v46 = vsel %vm1435_vm15, 1, %v1816_v6  ;;  %v1423_v49 = vcvt.s32.f32 %v1421_v44 }
0x108b   :  { %v1438_v47 = vadd.s32 %v1437_v46, %v1436_v45 }
0x108c   :  { %1427 = vadd.xlane.f32.xlu0 %v1424_v43 }
0x108d   :  { %v1440_v48 = vshrl.u32 %v1438_v47, 16  ;;  %v1439_v51 = vand.u32 65535, %v1438_v47 }
0x108f   :  { %v1442_v50 = vcvt.s32.f32 %v1440_v48  ;;  %v1441_v52 = vcvt.s32.f32 %v1439_v51 }
0x1090   :  { %1425 = vadd.xlane.f32.xlu0 %v1423_v49 }
0x1091   :  { %1445 = vadd.xlane.f32.xlu1 %v1442_v50 }
0x1095   :  { %1443 = vadd.xlane.f32.xlu1 %v1441_v52 }
0x1115   :  { %v1428_v53 = vpop.xlane.xlu0 %1427 }
0x1116   :  { %v1430_v54 = vcvt.f32.s32 %v1428_v53 }
0x1118   :  { %v1431_v56 = vshll.u32 %v1430_v54, 16 }
0x1119   :  { %v1426_v55 = vpop.xlane.xlu0 %1425 }
0x111a   :  { %v1429_v57 = vcvt.f32.s32 %v1426_v55  ;;  %v1446_v58 = vpop.xlane.xlu1 %1445 }
0x111b   :  { %v1448_v59 = vcvt.f32.s32 %v1446_v58 }
0x111c   :  { %v1432_v62 = vadd.s32 %v1431_v56, %v1429_v57 }
0x111d   :  { %v1449_v1 = vshll.u32 %v1448_v59, 16 }
0x111e   :  { %vm1433_vm0 = vcmp.ge.s32.totalorder %v1432_v62, 207  ;;  %v1444_v61 = vpop.xlane.xlu1 %1443 }
0x111f   :  { %v1452_v63 = vsel %vm1433_vm0, %v1409_v30, %v1398_v19  ;;  %v1454_v0 = vsel %vm1433_vm0, %v1400_v20, %v1453_v60  ;;  %v1447_v2 = vcvt.f32.s32 %v1444_v61 }
0x1120   :  { %v1458_v3 = vshra.s32 %v1454_v0, 1  ;;  %v1459_v7 = vshra.s32 %v1452_v63, 1  ;;  %v1461_v8 = vand.u32 %v1454_v0, %v1452_v63 }
0x1121   :  { %v1450_v9 = vadd.s32 %v1449_v1, %v1447_v2 }
0x1122   :  { %v1460_v10 = vadd.s32 %v1459_v7, %v1458_v3  ;;  %v1462_v11 = vand.u32 1, %v1461_v8 }
0x1123   :  { %vm1451_vm1 = vcmp.ge.s32.totalorder %v1450_v9, 212 }
0x1124   :  { %v1463_v13 = vadd.s32 %v1462_v11, %v1460_v10  ;;  %v1455_v14 = vsel %vm1451_vm1, %v1415_v41, %v1401_v31  ;;  %v1457_v15 = vsel %vm1451_vm1, %v1403_v32, %v1456_v12 }
0x1125   :  { %v1464_v16 = vshra.s32 %v1457_v15, 1  ;;  %v1465_v17 = vshra.s32 %v1455_v14, 1  ;;  %v1467_v18 = vand.u32 %v1457_v15, %v1455_v14 }
0x1126   :  { %vm1470_vm2 = vcmp.le.s32.totalorder %v1832_v4, %v1463_v13  ;;  %vm1471_vm3 = vcmp.le.s32.totalorder %v1834_v5, %v1463_v13  ;;  %v1507_v44 = vadd.s32 1, %v1463_v13 }
0x1127   :  { %v1466_v19 = vadd.s32 %v1465_v17, %v1464_v16  ;;  %v1468_v20 = vand.u32 1, %v1467_v18  ;;  %v1472_v21 = vsel %vm1470_vm2, 1, %v1816_v6  ;;  %v1473_v22 = vsel %vm1471_vm3, 1, %v1816_v6 }
0x1128   :  { %v1474_v25 = vadd.s32 %v1473_v22, %v1472_v21 }
0x1129   :  { %v1469_v23 = vadd.s32 %v1468_v20, %v1466_v19 }
0x112a   :  { %v1476_v24 = vshrl.u32 %v1474_v25, 16  ;;  %v1475_v27 = vand.u32 65535, %v1474_v25 }
0x112b   :  { %vm1488_vm4 = vcmp.le.s32.totalorder %v1832_v4, %v1469_v23  ;;  %vm1489_vm5 = vcmp.le.s32.totalorder %v1834_v5, %v1469_v23  ;;  %v1510_v56 = vadd.s32 1, %v1469_v23 }
0x112c   :  { %v1478_v26 = vcvt.s32.f32 %v1476_v24  ;;  %v1490_v28 = vsel %vm1488_vm4, 1, %v1816_v6  ;;  %v1491_v29 = vsel %vm1489_vm5, 1, %v1816_v6  ;;  %v1477_v32 = vcvt.s32.f32 %v1475_v27 }
0x112d   :  { %v1492_v30 = vadd.s32 %v1491_v29, %v1490_v28 }
0x112e   :  { %1481 = vadd.xlane.f32.xlu0 %v1478_v26 }
0x112f   :  { %v1494_v31 = vshrl.u32 %v1492_v30, 16  ;;  %v1493_v34 = vand.u32 65535, %v1492_v30 }
0x1131   :  { %v1496_v33 = vcvt.s32.f32 %v1494_v31  ;;  %v1495_v35 = vcvt.s32.f32 %v1493_v34 }
0x1132   :  { %1479 = vadd.xlane.f32.xlu0 %v1477_v32 }
0x1133   :  { %1499 = vadd.xlane.f32.xlu1 %v1496_v33 }
0x1137   :  { %1497 = vadd.xlane.f32.xlu1 %v1495_v35 }
0x11b7   :  { %v1482_v36 = vpop.xlane.xlu0 %1481 }
0x11b8   :  { %v1484_v37 = vcvt.f32.s32 %v1482_v36 }
0x11ba   :  { %v1485_v39 = vshll.u32 %v1484_v37, 16 }
0x11bb   :  { %v1480_v38 = vpop.xlane.xlu0 %1479 }
0x11bc   :  { %v1483_v40 = vcvt.f32.s32 %v1480_v38  ;;  %v1500_v41 = vpop.xlane.xlu1 %1499 }
0x11bd   :  { %v1502_v42 = vcvt.f32.s32 %v1500_v41 }
0x11be   :  { %v1486_v43 = vadd.s32 %v1485_v39, %v1483_v40 }
0x11bf   :  { %v1503_v48 = vshll.u32 %v1502_v42, 16 }
0x11c0   :  { %vm1487_vm6 = vcmp.ge.s32.totalorder %v1486_v43, 207  ;;  %v1498_v45 = vpop.xlane.xlu1 %1497 }
0x11c1   :  { %v1506_v46 = vsel %vm1487_vm6, %v1463_v13, %v1452_v63  ;;  %v1508_v47 = vsel %vm1487_vm6, %v1454_v0, %v1507_v44  ;;  %v1501_v49 = vcvt.f32.s32 %v1498_v45 }
0x11c2   :  { %v1512_v50 = vshra.s32 %v1508_v47, 1  ;;  %v1513_v51 = vshra.s32 %v1506_v46, 1  ;;  %v1515_v52 = vand.u32 %v1508_v47, %v1506_v46 }
0x11c3   :  { %v1504_v53 = vadd.s32 %v1503_v48, %v1501_v49 }
0x11c4   :  { %v1514_v54 = vadd.s32 %v1513_v51, %v1512_v50  ;;  %v1516_v55 = vand.u32 1, %v1515_v52 }
0x11c5   :  { %vm1505_vm7 = vcmp.ge.s32.totalorder %v1504_v53, 212 }
0x11c6   :  { %v1517_v57 = vadd.s32 %v1516_v55, %v1514_v54  ;;  %v1509_v58 = vsel %vm1505_vm7, %v1469_v23, %v1455_v14  ;;  %v1511_v59 = vsel %vm1505_vm7, %v1457_v15, %v1510_v56 }
0x11c7   :  { %v1518_v62 = vshra.s32 %v1511_v59, 1  ;;  %v1519_v60 = vshra.s32 %v1509_v58, 1  ;;  %v1521_v61 = vand.u32 %v1511_v59, %v1509_v58 }
0x11c8   :  { %vm1524_vm8 = vcmp.le.s32.totalorder %v1832_v4, %v1517_v57  ;;  %vm1525_vm9 = vcmp.le.s32.totalorder %v1834_v5, %v1517_v57  ;;  %v1561_v27 = vadd.s32 1, %v1517_v57 }
0x11c9   :  { %v1520_v63 = vadd.s32 %v1519_v60, %v1518_v62  ;;  %v1522_v0 = vand.u32 1, %v1521_v61  ;;  %v1526_v1 = vsel %vm1524_vm8, 1, %v1816_v6  ;;  %v1527_v2 = vsel %vm1525_vm9, 1, %v1816_v6 }
0x11ca   :  { %v1528_v3 = vadd.s32 %v1527_v2, %v1526_v1 }
0x11cb   :  { %v1523_v7 = vadd.s32 %v1522_v0, %v1520_v63 }
0x11cc   :  { %v1530_v8 = vshrl.u32 %v1528_v3, 16  ;;  %v1529_v10 = vand.u32 65535, %v1528_v3 }
0x11cd   :  { %vm1542_vm10 = vcmp.le.s32.totalorder %v1832_v4, %v1523_v7  ;;  %vm1543_vm11 = vcmp.le.s32.totalorder %v1834_v5, %v1523_v7  ;;  %v1564_v39 = vadd.s32 1, %v1523_v7 }
0x11ce   :  { %v1532_v9 = vcvt.s32.f32 %v1530_v8  ;;  %v1544_v11 = vsel %vm1542_vm10, 1, %v1816_v6  ;;  %v1545_v12 = vsel %vm1543_vm11, 1, %v1816_v6  ;;  %v1531_v15 = vcvt.s32.f32 %v1529_v10 }
0x11cf   :  { %v1546_v13 = vadd.s32 %v1545_v12, %v1544_v11 }
0x11d0   :  { %1535 = vadd.xlane.f32.xlu0 %v1532_v9 }
0x11d1   :  { %v1548_v14 = vshrl.u32 %v1546_v13, 16  ;;  %v1547_v17 = vand.u32 65535, %v1546_v13 }
0x11d3   :  { %v1550_v16 = vcvt.s32.f32 %v1548_v14  ;;  %v1549_v18 = vcvt.s32.f32 %v1547_v17 }
0x11d4   :  { %1533 = vadd.xlane.f32.xlu0 %v1531_v15 }
0x11d5   :  { %1553 = vadd.xlane.f32.xlu1 %v1550_v16 }
0x11d9   :  { %1551 = vadd.xlane.f32.xlu1 %v1549_v18 }
0x1259   :  { %v1536_v19 = vpop.xlane.xlu0 %1535 }
0x125a   :  { %v1538_v20 = vcvt.f32.s32 %v1536_v19 }
0x125c   :  { %v1539_v22 = vshll.u32 %v1538_v20, 16 }
0x125d   :  { %v1534_v21 = vpop.xlane.xlu0 %1533 }
0x125e   :  { %v1537_v25 = vcvt.f32.s32 %v1534_v21  ;;  %v1554_v23 = vpop.xlane.xlu1 %1553 }
0x125f   :  { %v1556_v24 = vcvt.f32.s32 %v1554_v23 }
0x1260   :  { %v1540_v26 = vadd.s32 %v1539_v22, %v1537_v25 }
0x1261   :  { %v1557_v31 = vshll.u32 %v1556_v24, 16 }
0x1262   :  { %vm1541_vm12 = vcmp.ge.s32.totalorder %v1540_v26, 207  ;;  %v1552_v28 = vpop.xlane.xlu1 %1551 }
0x1263   :  { %v1560_v29 = vsel %vm1541_vm12, %v1517_v57, %v1506_v46  ;;  %v1562_v30 = vsel %vm1541_vm12, %v1508_v47, %v1561_v27  ;;  %v1555_v32 = vcvt.f32.s32 %v1552_v28 }
0x1264   :  { %v1566_v33 = vshra.s32 %v1562_v30, 1  ;;  %v1567_v34 = vshra.s32 %v1560_v29, 1  ;;  %v1569_v35 = vand.u32 %v1562_v30, %v1560_v29 }
0x1265   :  { %v1558_v36 = vadd.s32 %v1557_v31, %v1555_v32 }
0x1266   :  { %v1568_v37 = vadd.s32 %v1567_v34, %v1566_v33  ;;  %v1570_v38 = vand.u32 1, %v1569_v35 }
0x1267   :  { %vm1559_vm13 = vcmp.ge.s32.totalorder %v1558_v36, 212 }
0x1268   :  { %v1571_v40 = vadd.s32 %v1570_v38, %v1568_v37  ;;  %v1563_v41 = vsel %vm1559_vm13, %v1523_v7, %v1509_v58  ;;  %v1565_v42 = vsel %vm1559_vm13, %v1511_v59, %v1564_v39 }
0x1269   :  { %v1572_v43 = vshra.s32 %v1565_v42, 1  ;;  %v1573_v44 = vshra.s32 %v1563_v41, 1  ;;  %v1575_v45 = vand.u32 %v1565_v42, %v1563_v41 }
0x126a   :  { %vm1578_vm14 = vcmp.le.s32.totalorder %v1832_v4, %v1571_v40  ;;  %vm1579_vm15 = vcmp.le.s32.totalorder %v1834_v5, %v1571_v40  ;;  %v1615_v10 = vadd.s32 1, %v1571_v40 }
0x126b   :  { %v1574_v46 = vadd.s32 %v1573_v44, %v1572_v43  ;;  %v1576_v47 = vand.u32 1, %v1575_v45  ;;  %v1580_v48 = vsel %vm1578_vm14, 1, %v1816_v6  ;;  %v1581_v49 = vsel %vm1579_vm15, 1, %v1816_v6 }
0x126c   :  { %v1582_v50 = vadd.s32 %v1581_v49, %v1580_v48 }
0x126d   :  { %v1577_v51 = vadd.s32 %v1576_v47, %v1574_v46 }
0x126e   :  { %v1584_v52 = vshrl.u32 %v1582_v50, 16  ;;  %v1583_v54 = vand.u32 65535, %v1582_v50 }
0x126f   :  { %vm1596_vm0 = vcmp.le.s32.totalorder %v1832_v4, %v1577_v51  ;;  %vm1597_vm1 = vcmp.le.s32.totalorder %v1834_v5, %v1577_v51  ;;  %v1618_v22 = vadd.s32 1, %v1577_v51 }
0x1270   :  { %v1586_v53 = vcvt.s32.f32 %v1584_v52  ;;  %v1598_v55 = vsel %vm1596_vm0, 1, %v1816_v6  ;;  %v1599_v56 = vsel %vm1597_vm1, 1, %v1816_v6  ;;  %v1585_v59 = vcvt.s32.f32 %v1583_v54 }
0x1271   :  { %v1600_v57 = vadd.s32 %v1599_v56, %v1598_v55 }
0x1272   :  { %1589 = vadd.xlane.f32.xlu0 %v1586_v53 }
0x1273   :  { %v1602_v58 = vshrl.u32 %v1600_v57, 16  ;;  %v1601_v60 = vand.u32 65535, %v1600_v57 }
0x1275   :  { %v1604_v62 = vcvt.s32.f32 %v1602_v58  ;;  %v1603_v61 = vcvt.s32.f32 %v1601_v60 }
0x1276   :  { %1587 = vadd.xlane.f32.xlu0 %v1585_v59 }
0x1277   :  { %1607 = vadd.xlane.f32.xlu1 %v1604_v62 }
0x127b   :  { %1605 = vadd.xlane.f32.xlu1 %v1603_v61 }
0x12fb   :  { %v1590_v63 = vpop.xlane.xlu0 %1589 }
0x12fc   :  { %v1592_v0 = vcvt.f32.s32 %v1590_v63 }
0x12fe   :  { %v1593_v2 = vshll.u32 %v1592_v0, 16 }
0x12ff   :  { %v1588_v1 = vpop.xlane.xlu0 %1587 }
0x1300   :  { %v1591_v3 = vcvt.f32.s32 %v1588_v1  ;;  %v1608_v7 = vpop.xlane.xlu1 %1607 }
0x1301   :  { %v1610_v8 = vcvt.f32.s32 %v1608_v7 }
0x1302   :  { %v1594_v9 = vadd.s32 %v1593_v2, %v1591_v3 }
0x1303   :  { %v1611_v14 = vshll.u32 %v1610_v8, 16 }
0x1304   :  { %vm1595_vm2 = vcmp.ge.s32.totalorder %v1594_v9, 207  ;;  %v1606_v11 = vpop.xlane.xlu1 %1605 }
0x1305   :  { %v1614_v12 = vsel %vm1595_vm2, %v1571_v40, %v1560_v29  ;;  %v1616_v13 = vsel %vm1595_vm2, %v1562_v30, %v1615_v10  ;;  %v1609_v15 = vcvt.f32.s32 %v1606_v11 }
0x1306   :  { %v1620_v16 = vshra.s32 %v1616_v13, 1  ;;  %v1621_v17 = vshra.s32 %v1614_v12, 1  ;;  %v1623_v18 = vand.u32 %v1616_v13, %v1614_v12 }
0x1307   :  { %v1612_v19 = vadd.s32 %v1611_v14, %v1609_v15 }
0x1308   :  { %v1622_v20 = vadd.s32 %v1621_v17, %v1620_v16  ;;  %v1624_v21 = vand.u32 1, %v1623_v18 }
0x1309   :  { %vm1613_vm3 = vcmp.ge.s32.totalorder %v1612_v19, 212 }
0x130a   :  { %v1625_v25 = vadd.s32 %v1624_v21, %v1622_v20  ;;  %v1617_v23 = vsel %vm1613_vm3, %v1577_v51, %v1563_v41  ;;  %v1619_v24 = vsel %vm1613_vm3, %v1565_v42, %v1618_v22 }
0x130b   :  { %v1626_v26 = vshra.s32 %v1619_v24, 1  ;;  %v1627_v27 = vshra.s32 %v1617_v23, 1  ;;  %v1629_v28 = vand.u32 %v1619_v24, %v1617_v23 }
0x130c   :  { %vm1632_vm4 = vcmp.le.s32.totalorder %v1832_v4, %v1625_v25  ;;  %vm1633_vm5 = vcmp.le.s32.totalorder %v1834_v5, %v1625_v25  ;;  %v1669_v54 = vadd.s32 1, %v1625_v25 }
0x130d   :  { %v1628_v29 = vadd.s32 %v1627_v27, %v1626_v26  ;;  %v1630_v30 = vand.u32 1, %v1629_v28  ;;  %v1634_v31 = vsel %vm1632_vm4, 1, %v1816_v6  ;;  %v1635_v32 = vsel %vm1633_vm5, 1, %v1816_v6 }
0x130e   :  { %v1636_v33 = vadd.s32 %v1635_v32, %v1634_v31 }
0x130f   :  { %v1631_v34 = vadd.s32 %v1630_v30, %v1628_v29 }
0x1310   :  { %v1638_v35 = vshrl.u32 %v1636_v33, 16  ;;  %v1637_v37 = vand.u32 65535, %v1636_v33 }
0x1311   :  { %vm1650_vm6 = vcmp.le.s32.totalorder %v1832_v4, %v1631_v34  ;;  %vm1651_vm7 = vcmp.le.s32.totalorder %v1834_v5, %v1631_v34  ;;  %v1672_v2 = vadd.s32 1, %v1631_v34 }
0x1312   :  { %v1640_v36 = vcvt.s32.f32 %v1638_v35  ;;  %v1652_v38 = vsel %vm1650_vm6, 1, %v1816_v6  ;;  %v1653_v39 = vsel %vm1651_vm7, 1, %v1816_v6  ;;  %v1639_v42 = vcvt.s32.f32 %v1637_v37 }
0x1313   :  { %v1654_v40 = vadd.s32 %v1653_v39, %v1652_v38 }
0x1314   :  { %1643 = vadd.xlane.f32.xlu0 %v1640_v36 }
0x1315   :  { %v1656_v41 = vshrl.u32 %v1654_v40, 16  ;;  %v1655_v44 = vand.u32 65535, %v1654_v40 }
0x1317   :  { %v1658_v43 = vcvt.s32.f32 %v1656_v41  ;;  %v1657_v45 = vcvt.s32.f32 %v1655_v44 }
0x1318   :  { %1641 = vadd.xlane.f32.xlu0 %v1639_v42 }
0x1319   :  { %1661 = vadd.xlane.f32.xlu1 %v1658_v43 }
0x131d   :  { %1659 = vadd.xlane.f32.xlu1 %v1657_v45  ;;  %v1769_v45 = vld [vmem:[#allocation2] sm:$0xff] }
0x139d   :  { %v1644_v46 = vpop.xlane.xlu0 %1643 }
0x139e   :  { %v1646_v47 = vcvt.f32.s32 %v1644_v46 }
0x13a0   :  { %v1647_v49 = vshll.u32 %v1646_v47, 16  ;;  %v1770_v47 = vld [vmem:[#allocation2 + $0x8] sm:$0xff] }
0x13a1   :  { %v1642_v48 = vpop.xlane.xlu0 %1641 }
0x13a2   :  { %v1645_v50 = vcvt.f32.s32 %v1642_v48  ;;  %v1662_v51 = vpop.xlane.xlu1 %1661 }
0x13a3   :  { %v1664_v52 = vcvt.f32.s32 %v1662_v51 }
0x13a4   :  { %v1648_v53 = vadd.s32 %v1647_v49, %v1645_v50 }
0x13a5   :  { %v1665_v58 = vshll.u32 %v1664_v52, 16 }
0x13a6   :  { %vm1649_vm8 = vcmp.ge.s32.totalorder %v1648_v53, 207  ;;  %v1660_v55 = vpop.xlane.xlu1 %1659 }
0x13a7   :  { %v1668_v56 = vsel %vm1649_vm8, %v1625_v25, %v1614_v12  ;;  %v1670_v57 = vsel %vm1649_vm8, %v1616_v13, %v1669_v54  ;;  %v1663_v59 = vcvt.f32.s32 %v1660_v55 }
0x13a8   :  { %v1674_v62 = vshra.s32 %v1670_v57, 1  ;;  %v1675_v60 = vshra.s32 %v1668_v56, 1  ;;  %v1677_v61 = vand.u32 %v1670_v57, %v1668_v56 }
0x13a9   :  { %v1666_v63 = vadd.s32 %v1665_v58, %v1663_v59 }
0x13aa   :  { %v1676_v0 = vadd.s32 %v1675_v60, %v1674_v62  ;;  %v1678_v1 = vand.u32 1, %v1677_v61 }
0x13ab   :  { %vm1667_vm9 = vcmp.ge.s32.totalorder %v1666_v63, 212 }
0x13ac   :  { %v1679_v3 = vadd.s32 %v1678_v1, %v1676_v0  ;;  %v1671_v7 = vsel %vm1667_vm9, %v1631_v34, %v1617_v23  ;;  %v1673_v8 = vsel %vm1667_vm9, %v1619_v24, %v1672_v2 }
0x13ad   :  { %v1680_v9 = vshra.s32 %v1673_v8, 1  ;;  %v1681_v10 = vshra.s32 %v1671_v7, 1  ;;  %v1683_v11 = vand.u32 %v1673_v8, %v1671_v7 }
0x13ae   :  { %vm1686_vm10 = vcmp.le.s32.totalorder %v1832_v4, %v1679_v3  ;;  %vm1687_vm11 = vcmp.le.s32.totalorder %v1834_v5, %v1679_v3  ;;  %v1722_v35 = vadd.s32 1, %v1679_v3 }
0x13af   :  { %v1682_v12 = vadd.s32 %v1681_v10, %v1680_v9  ;;  %v1684_v13 = vand.u32 1, %v1683_v11  ;;  %v1688_v14 = vsel %vm1686_vm10, 1, %v1816_v6  ;;  %v1689_v15 = vsel %vm1687_vm11, 1, %v1816_v6 }
0x13b0   :  { %v1690_v16 = vadd.s32 %v1689_v15, %v1688_v14 }
0x13b1   :  { %v1685_v17 = vadd.s32 %v1684_v13, %v1682_v12 }
0x13b2   :  { %v1692_v18 = vshrl.u32 %v1690_v16, 16  ;;  %v1691_v20 = vand.u32 65535, %v1690_v16 }
0x13b3   :  { %vm1704_vm12 = vcmp.le.s32.totalorder %v1832_v4, %v1685_v17  ;;  %vm1705_vm13 = vcmp.le.s32.totalorder %v1834_v5, %v1685_v17  ;;  %v1724_v41 = vadd.s32 1, %v1685_v17 }
0x13b4   :  { %v1694_v19 = vcvt.s32.f32 %v1692_v18  ;;  %v1706_v21 = vsel %vm1704_vm12, 1, %v1816_v6  ;;  %v1707_v22 = vsel %vm1705_vm13, 1, %v1816_v6  ;;  %v1693_v24 = vcvt.s32.f32 %v1691_v20 }
0x13b5   :  { %v1708_v25 = vadd.s32 %v1707_v22, %v1706_v21 }
0x13b6   :  { %1697 = vadd.xlane.f32.xlu0 %v1694_v19 }
0x13b7   :  { %v1710_v23 = vshrl.u32 %v1708_v25, 16  ;;  %v1709_v27 = vand.u32 65535, %v1708_v25 }
0x13b9   :  { %v1712_v26 = vcvt.s32.f32 %v1710_v23  ;;  %v1711_v28 = vcvt.s32.f32 %v1709_v27 }
0x13ba   :  { %1695 = vadd.xlane.f32.xlu0 %v1693_v24 }
0x13bb   :  { %1715 = vadd.xlane.f32.xlu1 %v1712_v26 }
0x13bf   :  { %1713 = vadd.xlane.f32.xlu1 %v1711_v28 }
0x143f   :  { %v1698_v29 = vpop.xlane.xlu0 %1697 }
0x1440   :  { %v1700_v4 = vcvt.f32.s32 %v1698_v29 }
0x1442   :  { %v1701_v5 = vshll.u32 %v1700_v4, 16 }
0x1443   :  { %v1696_v30 = vpop.xlane.xlu0 %1695 }
0x1444   :  { %v1699_v31 = vcvt.f32.s32 %v1696_v30  ;;  %v1716_v32 = vpop.xlane.xlu1 %1715 }
0x1445   :  { %v1718_v33 = vcvt.f32.s32 %v1716_v32 }
0x1446   :  { %v1702_v34 = vadd.s32 %v1701_v5, %v1699_v31 }
0x1447   :  { %v1719_v37 = vshll.u32 %v1718_v33, 16 }
0x1448   :  { %vm1703_vm14 = vcmp.ge.s32.totalorder %v1702_v34, 207  ;;  %v1714_v6 = vpop.xlane.xlu1 %1713 }
0x1449   :  { %v1723_v36 = vsel %vm1703_vm14, %v1670_v57, %v1722_v35  ;;  %v1717_v38 = vcvt.f32.s32 %v1714_v6 }
0x144a   :  { %vm1726_vm15 = vcmp.ge.s32.totalorder %v1723_v36, 0  ;;  %v1727_v39 = vxor.u32 2147483647, %v1723_v36 }
0x144b   :  { %v1720_v40 = vadd.s32 %v1719_v37, %v1717_v38 }
0x144c   :  { %v1728_v42 = vsel %vm1726_vm15, %v1723_v36, %v1727_v39 }
0x144d   :  { %vm1721_vm0 = vcmp.ge.s32.totalorder %v1720_v40, 212  ;;  %v1734_v46 = vsub.f32 %v1769_v45, %v1728_v42  ;;  %v1735_v48 = vsub.f32 %v1770_v47, %v1728_v42 }
0x144e   :  { %v1725_v43 = vsel %vm1721_vm0, %v1673_v8, %v1724_v41 }
0x144f   :  { %vm1730_vm1 = vcmp.ge.s32.totalorder %v1725_v43, 0  ;;  %v1731_v44 = vxor.u32 2147483647, %v1725_v43  ;;  %v1736_v54 = vmax.f32 %v1734_v46, 0.0  ;;  %v1737_v55 = vmax.f32 %v1735_v48, 0.0 }
0x1451   :  { %v1732_v49 = vsel %vm1730_vm1, %v1725_v43, %v1731_v44 }
0x1452   :  { %v1738_v50 = vsub.f32 %v1769_v45, %v1732_v49  ;;  %v1739_v51 = vsub.f32 %v1770_v47, %v1732_v49 }
0x1454   :  { %v1740_v52 = vmax.f32 %v1738_v50, 0.0  ;;  %v1741_v53 = vmax.f32 %v1739_v51, 0.0 }
0x1456   :  { %v1742_v56 = vsub.f32 %v1740_v52, %v1736_v54  ;;  %v1743_v57 = vsub.f32 %v1741_v53, %v1737_v55 }
0x1458   :  { %v1744_v58 = vmul.f32 0.81757444, %v1742_v56  ;;  %v1745_v59 = vmul.f32 0.81757444, %v1743_v57 }
0x145a   :  { %v1746_v62 = vadd.f32 %v1744_v58, %v1736_v54  ;;  %v1747_v60 = vadd.f32 %v1745_v59, %v1737_v55 }
0x145c   :  { %1748 = vst [vmem:[#allocation5] sm:$0xff] %v1746_v62  ;;  %1749 = vst [vmem:[#allocation5 + $0x8] sm:$0xff] %v1747_v60 }
0x145d   :  { %1802 = shalt.err (!%p1799_p9)
}
0x145e   :  { %1759 = dma.vmem_to_hbm [thread:$0]  %s1757_s11, 256, %s2094_s1, [#allocation4]  }
0x145f   :  { %1813 = dma.done.wait [#allocation4], 256  }
0x1460   :  { %1814 = vsyncadd [#allocation4], 4294967040 }
0x1461   :  { %1763 = vsyncpa [#allocation3], 1 }
0x1462   :  { %1764 = vsyncpa [#allocation4], 1 }

</bundles_post_ra>
